<compile_context>
chip_gen: v6e
topology: v6e:2x2x1
jax: 0.10.0
libtpu: 0.0.40
codegen_flags: <defaults>
</compile_context>

<pallas_src>
import math

import numpy as np

import jax
import jax.numpy as jnp
from jax.experimental import pallas as pl
from jax.experimental.pallas import tpu as pltpu


# ----------------------------------------------------------------------------
# Pallas kernel: whole network for one batch element, resident in VMEM.
# ----------------------------------------------------------------------------
def _fused_cnn_kernel(p_ref,
                      w1_ref, b1_ref,
                      s2_ref, w2_ref, b2_ref,
                      s3_ref, w3_ref, b3_ref,
                      s4_ref, w4_ref, b4_ref,
                      s5_ref, w5_ref, b5_ref,
                      wl_ref, bl_ref,
                      o_ref):
    def leaky(y):
        return jnp.maximum(y, 0.2 * y)            # LeakyReLU(0.2)

    # Conv1 (+bias) + LeakyReLU: host-prepared im2col patches @ (9*Cin, Cout).
    a = jnp.dot(p_ref[0], w1_ref[...], preferred_element_type=jnp.float32)
    a = leaky(a + b1_ref[...])

    # Conv2..Conv5: 3x3 / stride-2 conv as 9 constant-gather + matmul taps.
    # BN scale is pre-folded into w*_ref; b*_ref = conv_bias*scale + beta.
    for s_ref, w_ref, b_ref in ((s2_ref, w2_ref, b2_ref),
                                (s3_ref, w3_ref, b3_ref),
                                (s4_ref, w4_ref, b4_ref),
                                (s5_ref, w5_ref, b5_ref)):
        acc = None
        for t in range(9):                         # static unroll, 9 taps
            tap = jnp.dot(s_ref[t], a, preferred_element_type=jnp.float32)
            contrib = jnp.dot(tap, w_ref[t],
                              preferred_element_type=jnp.float32)
            acc = contrib if acc is None else acc + contrib
        a = leaky(acc + b_ref[...])

    # Linear head: spatial is 1x1 after five stride-2 convs, so `a` is (1, C5).
    logits = jnp.dot(a, wl_ref[...], preferred_element_type=jnp.float32)
    logits = logits + bl_ref[...]
    o_ref[0] = logits.astype(o_ref.dtype)


def _const_spec(shape):
    zeros = (0,) * len(shape)
    return pl.BlockSpec(shape, lambda n: zeros)


# ----------------------------------------------------------------------------
# Host-side constant preparation (weights folded, tap gather matrices).
# ----------------------------------------------------------------------------
def _tap_gathers(H, W):
    """(9, Ho*Wo, H*W) 0/1 matrices selecting input pixel (2i+ky-1, 2j+kx-1)."""
    Ho, Wo = H // 2, W // 2
    S = np.zeros((9, Ho * Wo, H * W), np.float32)
    for ky in range(3):
        for kx in range(3):
            t = ky * 3 + kx
            for i in range(Ho):
                r = 2 * i + ky - 1
                if not 0 <= r < H:
                    continue
                for j in range(Wo):
                    c = 2 * j + kx - 1
                    if 0 <= c < W:
                        S[t, i * Wo + j, r * W + c] = 1.0
    return jnp.asarray(S)


def prepare_fused_operands(params, H, W, eps=1e-5):
    """Flat tuple of constant kernel operands in kernel-argument order."""
    ops = []
    convs = params["convs"]

    # Conv1: no BN.
    w, b, _, _ = convs[0]
    cout, cin = w.shape[0], w.shape[1]
    ops.append(jnp.transpose(w, (2, 3, 1, 0)).reshape(9 * cin, cout))
    ops.append(b.reshape(1, cout))

    # Conv2..Conv5: inference BN (running_mean=0, running_var=1) folded in.
    for li in range(1, 5):
        w, b, gamma, beta = convs[li]
        cout, cin = w.shape[0], w.shape[1]
        s = gamma / jnp.sqrt(1.0 + eps)
        w_taps = (jnp.transpose(w, (2, 3, 1, 0)).reshape(9, cin, cout)
                  * s[None, None, :])
        shift = (b * s + beta).reshape(1, cout)
        ops.append(_tap_gathers(H >> li, W >> li))
        ops.append(w_taps)
        ops.append(shift)

    wl, bl = params["linear"]
    ops.append(wl.T)                     # (nf*16, num_classes)
    ops.append(bl.reshape(1, -1))
    return tuple(ops)


# ----------------------------------------------------------------------------
# Forward pass
# ----------------------------------------------------------------------------
def cnn_model_forward(x_nchw, const_ops):
    N, Cin, H, W = x_nchw.shape
    Ho, Wo = H // 2, W // 2

    # Glue (pure data movement): NCHW -> NHWC, pad, im2col for the first conv.
    xh = jnp.transpose(x_nchw, (0, 2, 3, 1)).astype(jnp.float32)
    xp = jnp.pad(xh, ((0, 0), (1, 1), (1, 1), (0, 0)))
    cols = []
    for ky in range(3):
        for kx in range(3):
            cols.append(xp[:, ky:ky + 2 * Ho:2, kx:kx + 2 * Wo:2, :])
    patches = jnp.concatenate(cols, axis=-1).reshape(N, Ho * Wo, 9 * Cin)

    num_classes = const_ops[-1].shape[-1]

    in_specs = [pl.BlockSpec((1, Ho * Wo, 9 * Cin), lambda n: (n, 0, 0))]
    for op in const_ops:
        in_specs.append(_const_spec(op.shape))

    out = pl.pallas_call(
        _fused_cnn_kernel,
        out_shape=jax.ShapeDtypeStruct((N, 1, num_classes), jnp.float32),
        grid=(N,),
        in_specs=in_specs,
        out_specs=pl.BlockSpec((1, 1, num_classes), lambda n: (n, 0, 0)),
        compiler_params=pltpu.CompilerParams(
            dimension_semantics=("arbitrary",)),
    )(patches, *const_ops)
    return out.reshape(N, num_classes)


# ----------------------------------------------------------------------------
# Parameter init (matches CnnModel._initialize_weights)
# ----------------------------------------------------------------------------
def init_params(key, input_nc, nf, num_classes):
    chans = [input_nc, nf, nf * 2, nf * 4, nf * 8, nf * 16]
    params = {"convs": []}
    keys = jax.random.split(key, len(chans))
    for li in range(5):
        cin, cout = chans[li], chans[li + 1]
        std = math.sqrt(2.0 / (3 * 3 * cout))
        w = std * jax.random.normal(keys[li], (cout, cin, 3, 3), jnp.float32)
        b = jnp.zeros((cout,), jnp.float32)
        gamma = jnp.ones((cout,), jnp.float32)
        beta = jnp.zeros((cout,), jnp.float32)
        params["convs"].append((w, b, gamma, beta))
    wl = 0.01 * jax.random.normal(keys[5], (num_classes, nf * 16), jnp.float32)
    bl = jnp.zeros((num_classes,), jnp.float32)
    params["linear"] = (wl, bl)
    return params


if __name__ == "__main__":
    # Small config; spatial must reduce to 1x1 after 5 stride-2 convs -> 32x32.
    input_nc, nf, num_classes = 3, 4, 5
    N, H, W = 2, 32, 32

    key = jax.random.PRNGKey(0)
    kparam, kx = jax.random.split(key)
    params = init_params(kparam, input_nc, nf, num_classes)
    x = jax.random.normal(kx, (N, input_nc, H, W), jnp.float32)

    const_ops = prepare_fused_operands(params, H, W)
    out = jax.jit(cnn_model_forward)(x, const_ops)
    out = jax.block_until_ready(out)
    assert out.shape == (N, num_classes), out.shape
    print("KERNEL_OK")
</pallas_src>

<mosaic_0001>
module attributes {stable_mosaic.version = 11 : i64} {
  func.func @_fused_cnn_kernel(%arg0: i32, %arg1: memref<1x256x27xf32, #tpu.memory_space<vmem>>, %arg2: memref<27x4xf32, #tpu.memory_space<vmem>>, %arg3: memref<1x4xf32, #tpu.memory_space<vmem>>, %arg4: memref<9x64x256xf32, #tpu.memory_space<vmem>>, %arg5: memref<9x4x8xf32, #tpu.memory_space<vmem>>, %arg6: memref<1x8xf32, #tpu.memory_space<vmem>>, %arg7: memref<9x16x64xf32, #tpu.memory_space<vmem>>, %arg8: memref<9x8x16xf32, #tpu.memory_space<vmem>>, %arg9: memref<1x16xf32, #tpu.memory_space<vmem>>, %arg10: memref<9x4x16xf32, #tpu.memory_space<vmem>>, %arg11: memref<9x16x32xf32, #tpu.memory_space<vmem>>, %arg12: memref<1x32xf32, #tpu.memory_space<vmem>>, %arg13: memref<9x1x4xf32, #tpu.memory_space<vmem>>, %arg14: memref<9x32x64xf32, #tpu.memory_space<vmem>>, %arg15: memref<1x64xf32, #tpu.memory_space<vmem>>, %arg16: memref<64x5xf32, #tpu.memory_space<vmem>>, %arg17: memref<1x5xf32, #tpu.memory_space<vmem>>, %arg18: memref<1x1x5xf32, #tpu.memory_space<vmem>>) attributes {dimension_semantics = [#tpu.dimension_semantics<arbitrary>], iteration_bounds = array<i64: 2>, scalar_prefetch = 0 : i64, scratch_operands = 0 : i64, tpu.core_type = #tpu.core_type<tc>, window_params = [{transform_indices = @transform_0, window_bounds = array<i64: 1, 256, 27>}, {pipeline_mode = #tpu.pipeline_mode<synchronous>, transform_indices = @transform_1, window_bounds = array<i64: 27, 4>}, {pipeline_mode = #tpu.pipeline_mode<synchronous>, transform_indices = @transform_2, window_bounds = array<i64: 1, 4>}, {pipeline_mode = #tpu.pipeline_mode<synchronous>, transform_indices = @transform_3, window_bounds = array<i64: 9, 64, 256>}, {pipeline_mode = #tpu.pipeline_mode<synchronous>, transform_indices = @transform_4, window_bounds = array<i64: 9, 4, 8>}, {pipeline_mode = #tpu.pipeline_mode<synchronous>, transform_indices = @transform_5, window_bounds = array<i64: 1, 8>}, {pipeline_mode = #tpu.pipeline_mode<synchronous>, transform_indices = @transform_6, window_bounds = array<i64: 9, 16, 64>}, {pipeline_mode = #tpu.pipeline_mode<synchronous>, transform_indices = @transform_7, window_bounds = array<i64: 9, 8, 16>}, {pipeline_mode = #tpu.pipeline_mode<synchronous>, transform_indices = @transform_8, window_bounds = array<i64: 1, 16>}, {pipeline_mode = #tpu.pipeline_mode<synchronous>, transform_indices = @transform_9, window_bounds = array<i64: 9, 4, 16>}, {pipeline_mode = #tpu.pipeline_mode<synchronous>, transform_indices = @transform_10, window_bounds = array<i64: 9, 16, 32>}, {pipeline_mode = #tpu.pipeline_mode<synchronous>, transform_indices = @transform_11, window_bounds = array<i64: 1, 32>}, {pipeline_mode = #tpu.pipeline_mode<synchronous>, transform_indices = @transform_12, window_bounds = array<i64: 9, 1, 4>}, {pipeline_mode = #tpu.pipeline_mode<synchronous>, transform_indices = @transform_13, window_bounds = array<i64: 9, 32, 64>}, {pipeline_mode = #tpu.pipeline_mode<synchronous>, transform_indices = @transform_14, window_bounds = array<i64: 1, 64>}, {pipeline_mode = #tpu.pipeline_mode<synchronous>, transform_indices = @transform_15, window_bounds = array<i64: 64, 5>}, {pipeline_mode = #tpu.pipeline_mode<synchronous>, transform_indices = @transform_16, window_bounds = array<i64: 1, 5>}, {transform_indices = @transform_17, window_bounds = array<i64: 1, 1, 5>}]} {
    %c0 = arith.constant 0 : index
    %c0_0 = arith.constant 0 : index
    %c0_1 = arith.constant 0 : index
    %0 = vector.load %arg1[%c0, %c0_0, %c0_1] : memref<1x256x27xf32, #tpu.memory_space<vmem>>, vector<1x256x27xf32>
    %1 = vector.shape_cast %0 : vector<1x256x27xf32> to vector<256x27xf32>
    %c0_2 = arith.constant 0 : index
    %c0_3 = arith.constant 0 : index
    %2 = vector.load %arg2[%c0_2, %c0_3] : memref<27x4xf32, #tpu.memory_space<vmem>>, vector<27x4xf32>
    %cst = arith.constant dense<0.000000e+00> : vector<256x4xf32>
    %3 = tpu.matmul %1, %2, %cst {dimension_numbers = #tpu.dot_dimension_numbers<[1], [0], [0], [1], [0, 0, 1, 1], [], []>} : vector<256x27xf32>, vector<27x4xf32>, vector<256x4xf32> -> vector<256x4xf32>
    %c0_4 = arith.constant 0 : index
    %c0_5 = arith.constant 0 : index
    %4 = vector.load %arg3[%c0_4, %c0_5] : memref<1x4xf32, #tpu.memory_space<vmem>>, vector<1x4xf32>
    %5 = vector.broadcast %4 : vector<1x4xf32> to vector<256x4xf32>
    %6 = arith.addf %3, %5 : vector<256x4xf32>
    %cst_6 = arith.constant 2.000000e-01 : f32
    %7 = vector.broadcast %cst_6 : f32 to vector<256x4xf32>
    %8 = arith.mulf %7, %6 : vector<256x4xf32>
    %9 = arith.maximumf %6, %8 : vector<256x4xf32>
    %c0_7 = arith.constant 0 : index
    %c0_8 = arith.constant 0 : index
    %c0_9 = arith.constant 0 : index
    %10 = vector.load %arg4[%c0_7, %c0_8, %c0_9] : memref<9x64x256xf32, #tpu.memory_space<vmem>>, vector<1x64x256xf32>
    %11 = vector.shape_cast %10 : vector<1x64x256xf32> to vector<64x256xf32>
    %cst_10 = arith.constant dense<0.000000e+00> : vector<64x4xf32>
    %12 = tpu.matmul %11, %9, %cst_10 {dimension_numbers = #tpu.dot_dimension_numbers<[1], [0], [0], [1], [0, 0, 1, 1], [], []>} : vector<64x256xf32>, vector<256x4xf32>, vector<64x4xf32> -> vector<64x4xf32>
    %c0_11 = arith.constant 0 : index
    %c0_12 = arith.constant 0 : index
    %c0_13 = arith.constant 0 : index
    %13 = vector.load %arg5[%c0_11, %c0_12, %c0_13] : memref<9x4x8xf32, #tpu.memory_space<vmem>>, vector<1x4x8xf32>
    %14 = vector.shape_cast %13 : vector<1x4x8xf32> to vector<4x8xf32>
    %cst_14 = arith.constant dense<0.000000e+00> : vector<64x8xf32>
    %15 = tpu.matmul %12, %14, %cst_14 {dimension_numbers = #tpu.dot_dimension_numbers<[1], [0], [0], [1], [0, 0, 1, 1], [], []>} : vector<64x4xf32>, vector<4x8xf32>, vector<64x8xf32> -> vector<64x8xf32>
    %c1 = arith.constant 1 : index
    %c0_15 = arith.constant 0 : index
    %c0_16 = arith.constant 0 : index
    %16 = vector.load %arg4[%c1, %c0_15, %c0_16] : memref<9x64x256xf32, #tpu.memory_space<vmem>>, vector<1x64x256xf32>
    %17 = vector.shape_cast %16 : vector<1x64x256xf32> to vector<64x256xf32>
    %cst_17 = arith.constant dense<0.000000e+00> : vector<64x4xf32>
    %18 = tpu.matmul %17, %9, %cst_17 {dimension_numbers = #tpu.dot_dimension_numbers<[1], [0], [0], [1], [0, 0, 1, 1], [], []>} : vector<64x256xf32>, vector<256x4xf32>, vector<64x4xf32> -> vector<64x4xf32>
    %c1_18 = arith.constant 1 : index
    %c0_19 = arith.constant 0 : index
    %c0_20 = arith.constant 0 : index
    %19 = vector.load %arg5[%c1_18, %c0_19, %c0_20] : memref<9x4x8xf32, #tpu.memory_space<vmem>>, vector<1x4x8xf32>
    %20 = vector.shape_cast %19 : vector<1x4x8xf32> to vector<4x8xf32>
    %cst_21 = arith.constant dense<0.000000e+00> : vector<64x8xf32>
    %21 = tpu.matmul %18, %20, %cst_21 {dimension_numbers = #tpu.dot_dimension_numbers<[1], [0], [0], [1], [0, 0, 1, 1], [], []>} : vector<64x4xf32>, vector<4x8xf32>, vector<64x8xf32> -> vector<64x8xf32>
    %22 = arith.addf %15, %21 : vector<64x8xf32>
    %c2 = arith.constant 2 : index
    %c0_22 = arith.constant 0 : index
    %c0_23 = arith.constant 0 : index
    %23 = vector.load %arg4[%c2, %c0_22, %c0_23] : memref<9x64x256xf32, #tpu.memory_space<vmem>>, vector<1x64x256xf32>
    %24 = vector.shape_cast %23 : vector<1x64x256xf32> to vector<64x256xf32>
    %cst_24 = arith.constant dense<0.000000e+00> : vector<64x4xf32>
    %25 = tpu.matmul %24, %9, %cst_24 {dimension_numbers = #tpu.dot_dimension_numbers<[1], [0], [0], [1], [0, 0, 1, 1], [], []>} : vector<64x256xf32>, vector<256x4xf32>, vector<64x4xf32> -> vector<64x4xf32>
    %c2_25 = arith.constant 2 : index
    %c0_26 = arith.constant 0 : index
    %c0_27 = arith.constant 0 : index
    %26 = vector.load %arg5[%c2_25, %c0_26, %c0_27] : memref<9x4x8xf32, #tpu.memory_space<vmem>>, vector<1x4x8xf32>
    %27 = vector.shape_cast %26 : vector<1x4x8xf32> to vector<4x8xf32>
    %cst_28 = arith.constant dense<0.000000e+00> : vector<64x8xf32>
    %28 = tpu.matmul %25, %27, %cst_28 {dimension_numbers = #tpu.dot_dimension_numbers<[1], [0], [0], [1], [0, 0, 1, 1], [], []>} : vector<64x4xf32>, vector<4x8xf32>, vector<64x8xf32> -> vector<64x8xf32>
    %29 = arith.addf %22, %28 : vector<64x8xf32>
    %c3 = arith.constant 3 : index
    %c0_29 = arith.constant 0 : index
    %c0_30 = arith.constant 0 : index
    %30 = vector.load %arg4[%c3, %c0_29, %c0_30] : memref<9x64x256xf32, #tpu.memory_space<vmem>>, vector<1x64x256xf32>
    %31 = vector.shape_cast %30 : vector<1x64x256xf32> to vector<64x256xf32>
    %cst_31 = arith.constant dense<0.000000e+00> : vector<64x4xf32>
    %32 = tpu.matmul %31, %9, %cst_31 {dimension_numbers = #tpu.dot_dimension_numbers<[1], [0], [0], [1], [0, 0, 1, 1], [], []>} : vector<64x256xf32>, vector<256x4xf32>, vector<64x4xf32> -> vector<64x4xf32>
    %c3_32 = arith.constant 3 : index
    %c0_33 = arith.constant 0 : index
    %c0_34 = arith.constant 0 : index
    %33 = vector.load %arg5[%c3_32, %c0_33, %c0_34] : memref<9x4x8xf32, #tpu.memory_space<vmem>>, vector<1x4x8xf32>
    %34 = vector.shape_cast %33 : vector<1x4x8xf32> to vector<4x8xf32>
    %cst_35 = arith.constant dense<0.000000e+00> : vector<64x8xf32>
    %35 = tpu.matmul %32, %34, %cst_35 {dimension_numbers = #tpu.dot_dimension_numbers<[1], [0], [0], [1], [0, 0, 1, 1], [], []>} : vector<64x4xf32>, vector<4x8xf32>, vector<64x8xf32> -> vector<64x8xf32>
    %36 = arith.addf %29, %35 : vector<64x8xf32>
    %c4 = arith.constant 4 : index
    %c0_36 = arith.constant 0 : index
    %c0_37 = arith.constant 0 : index
    %37 = vector.load %arg4[%c4, %c0_36, %c0_37] : memref<9x64x256xf32, #tpu.memory_space<vmem>>, vector<1x64x256xf32>
    %38 = vector.shape_cast %37 : vector<1x64x256xf32> to vector<64x256xf32>
    %cst_38 = arith.constant dense<0.000000e+00> : vector<64x4xf32>
    %39 = tpu.matmul %38, %9, %cst_38 {dimension_numbers = #tpu.dot_dimension_numbers<[1], [0], [0], [1], [0, 0, 1, 1], [], []>} : vector<64x256xf32>, vector<256x4xf32>, vector<64x4xf32> -> vector<64x4xf32>
    %c4_39 = arith.constant 4 : index
    %c0_40 = arith.constant 0 : index
    %c0_41 = arith.constant 0 : index
    %40 = vector.load %arg5[%c4_39, %c0_40, %c0_41] : memref<9x4x8xf32, #tpu.memory_space<vmem>>, vector<1x4x8xf32>
    %41 = vector.shape_cast %40 : vector<1x4x8xf32> to vector<4x8xf32>
    %cst_42 = arith.constant dense<0.000000e+00> : vector<64x8xf32>
    %42 = tpu.matmul %39, %41, %cst_42 {dimension_numbers = #tpu.dot_dimension_numbers<[1], [0], [0], [1], [0, 0, 1, 1], [], []>} : vector<64x4xf32>, vector<4x8xf32>, vector<64x8xf32> -> vector<64x8xf32>
    %43 = arith.addf %36, %42 : vector<64x8xf32>
    %c5 = arith.constant 5 : index
    %c0_43 = arith.constant 0 : index
    %c0_44 = arith.constant 0 : index
    %44 = vector.load %arg4[%c5, %c0_43, %c0_44] : memref<9x64x256xf32, #tpu.memory_space<vmem>>, vector<1x64x256xf32>
    %45 = vector.shape_cast %44 : vector<1x64x256xf32> to vector<64x256xf32>
    %cst_45 = arith.constant dense<0.000000e+00> : vector<64x4xf32>
    %46 = tpu.matmul %45, %9, %cst_45 {dimension_numbers = #tpu.dot_dimension_numbers<[1], [0], [0], [1], [0, 0, 1, 1], [], []>} : vector<64x256xf32>, vector<256x4xf32>, vector<64x4xf32> -> vector<64x4xf32>
    %c5_46 = arith.constant 5 : index
    %c0_47 = arith.constant 0 : index
    %c0_48 = arith.constant 0 : index
    %47 = vector.load %arg5[%c5_46, %c0_47, %c0_48] : memref<9x4x8xf32, #tpu.memory_space<vmem>>, vector<1x4x8xf32>
    %48 = vector.shape_cast %47 : vector<1x4x8xf32> to vector<4x8xf32>
    %cst_49 = arith.constant dense<0.000000e+00> : vector<64x8xf32>
    %49 = tpu.matmul %46, %48, %cst_49 {dimension_numbers = #tpu.dot_dimension_numbers<[1], [0], [0], [1], [0, 0, 1, 1], [], []>} : vector<64x4xf32>, vector<4x8xf32>, vector<64x8xf32> -> vector<64x8xf32>
    %50 = arith.addf %43, %49 : vector<64x8xf32>
    %c6 = arith.constant 6 : index
    %c0_50 = arith.constant 0 : index
    %c0_51 = arith.constant 0 : index
    %51 = vector.load %arg4[%c6, %c0_50, %c0_51] : memref<9x64x256xf32, #tpu.memory_space<vmem>>, vector<1x64x256xf32>
    %52 = vector.shape_cast %51 : vector<1x64x256xf32> to vector<64x256xf32>
    %cst_52 = arith.constant dense<0.000000e+00> : vector<64x4xf32>
    %53 = tpu.matmul %52, %9, %cst_52 {dimension_numbers = #tpu.dot_dimension_numbers<[1], [0], [0], [1], [0, 0, 1, 1], [], []>} : vector<64x256xf32>, vector<256x4xf32>, vector<64x4xf32> -> vector<64x4xf32>
    %c6_53 = arith.constant 6 : index
    %c0_54 = arith.constant 0 : index
    %c0_55 = arith.constant 0 : index
    %54 = vector.load %arg5[%c6_53, %c0_54, %c0_55] : memref<9x4x8xf32, #tpu.memory_space<vmem>>, vector<1x4x8xf32>
    %55 = vector.shape_cast %54 : vector<1x4x8xf32> to vector<4x8xf32>
    %cst_56 = arith.constant dense<0.000000e+00> : vector<64x8xf32>
    %56 = tpu.matmul %53, %55, %cst_56 {dimension_numbers = #tpu.dot_dimension_numbers<[1], [0], [0], [1], [0, 0, 1, 1], [], []>} : vector<64x4xf32>, vector<4x8xf32>, vector<64x8xf32> -> vector<64x8xf32>
    %57 = arith.addf %50, %56 : vector<64x8xf32>
    %c7 = arith.constant 7 : index
    %c0_57 = arith.constant 0 : index
    %c0_58 = arith.constant 0 : index
    %58 = vector.load %arg4[%c7, %c0_57, %c0_58] : memref<9x64x256xf32, #tpu.memory_space<vmem>>, vector<1x64x256xf32>
    %59 = vector.shape_cast %58 : vector<1x64x256xf32> to vector<64x256xf32>
    %cst_59 = arith.constant dense<0.000000e+00> : vector<64x4xf32>
    %60 = tpu.matmul %59, %9, %cst_59 {dimension_numbers = #tpu.dot_dimension_numbers<[1], [0], [0], [1], [0, 0, 1, 1], [], []>} : vector<64x256xf32>, vector<256x4xf32>, vector<64x4xf32> -> vector<64x4xf32>
    %c7_60 = arith.constant 7 : index
    %c0_61 = arith.constant 0 : index
    %c0_62 = arith.constant 0 : index
    %61 = vector.load %arg5[%c7_60, %c0_61, %c0_62] : memref<9x4x8xf32, #tpu.memory_space<vmem>>, vector<1x4x8xf32>
    %62 = vector.shape_cast %61 : vector<1x4x8xf32> to vector<4x8xf32>
    %cst_63 = arith.constant dense<0.000000e+00> : vector<64x8xf32>
    %63 = tpu.matmul %60, %62, %cst_63 {dimension_numbers = #tpu.dot_dimension_numbers<[1], [0], [0], [1], [0, 0, 1, 1], [], []>} : vector<64x4xf32>, vector<4x8xf32>, vector<64x8xf32> -> vector<64x8xf32>
    %64 = arith.addf %57, %63 : vector<64x8xf32>
    %c8 = arith.constant 8 : index
    %c0_64 = arith.constant 0 : index
    %c0_65 = arith.constant 0 : index
    %65 = vector.load %arg4[%c8, %c0_64, %c0_65] : memref<9x64x256xf32, #tpu.memory_space<vmem>>, vector<1x64x256xf32>
    %66 = vector.shape_cast %65 : vector<1x64x256xf32> to vector<64x256xf32>
    %cst_66 = arith.constant dense<0.000000e+00> : vector<64x4xf32>
    %67 = tpu.matmul %66, %9, %cst_66 {dimension_numbers = #tpu.dot_dimension_numbers<[1], [0], [0], [1], [0, 0, 1, 1], [], []>} : vector<64x256xf32>, vector<256x4xf32>, vector<64x4xf32> -> vector<64x4xf32>
    %c8_67 = arith.constant 8 : index
    %c0_68 = arith.constant 0 : index
    %c0_69 = arith.constant 0 : index
    %68 = vector.load %arg5[%c8_67, %c0_68, %c0_69] : memref<9x4x8xf32, #tpu.memory_space<vmem>>, vector<1x4x8xf32>
    %69 = vector.shape_cast %68 : vector<1x4x8xf32> to vector<4x8xf32>
    %cst_70 = arith.constant dense<0.000000e+00> : vector<64x8xf32>
    %70 = tpu.matmul %67, %69, %cst_70 {dimension_numbers = #tpu.dot_dimension_numbers<[1], [0], [0], [1], [0, 0, 1, 1], [], []>} : vector<64x4xf32>, vector<4x8xf32>, vector<64x8xf32> -> vector<64x8xf32>
    %71 = arith.addf %64, %70 : vector<64x8xf32>
    %c0_71 = arith.constant 0 : index
    %c0_72 = arith.constant 0 : index
    %72 = vector.load %arg6[%c0_71, %c0_72] : memref<1x8xf32, #tpu.memory_space<vmem>>, vector<1x8xf32>
    %73 = vector.broadcast %72 : vector<1x8xf32> to vector<64x8xf32>
    %74 = arith.addf %71, %73 : vector<64x8xf32>
    %cst_73 = arith.constant 2.000000e-01 : f32
    %75 = vector.broadcast %cst_73 : f32 to vector<64x8xf32>
    %76 = arith.mulf %75, %74 : vector<64x8xf32>
    %77 = arith.maximumf %74, %76 : vector<64x8xf32>
    %c0_74 = arith.constant 0 : index
    %c0_75 = arith.constant 0 : index
    %c0_76 = arith.constant 0 : index
    %78 = vector.load %arg7[%c0_74, %c0_75, %c0_76] : memref<9x16x64xf32, #tpu.memory_space<vmem>>, vector<1x16x64xf32>
    %79 = vector.shape_cast %78 : vector<1x16x64xf32> to vector<16x64xf32>
    %cst_77 = arith.constant dense<0.000000e+00> : vector<16x8xf32>
    %80 = tpu.matmul %79, %77, %cst_77 {dimension_numbers = #tpu.dot_dimension_numbers<[1], [0], [0], [1], [0, 0, 1, 1], [], []>} : vector<16x64xf32>, vector<64x8xf32>, vector<16x8xf32> -> vector<16x8xf32>
    %c0_78 = arith.constant 0 : index
    %c0_79 = arith.constant 0 : index
    %c0_80 = arith.constant 0 : index
    %81 = vector.load %arg8[%c0_78, %c0_79, %c0_80] : memref<9x8x16xf32, #tpu.memory_space<vmem>>, vector<1x8x16xf32>
    %82 = vector.shape_cast %81 : vector<1x8x16xf32> to vector<8x16xf32>
    %cst_81 = arith.constant dense<0.000000e+00> : vector<16x16xf32>
    %83 = tpu.matmul %80, %82, %cst_81 {dimension_numbers = #tpu.dot_dimension_numbers<[1], [0], [0], [1], [0, 0, 1, 1], [], []>} : vector<16x8xf32>, vector<8x16xf32>, vector<16x16xf32> -> vector<16x16xf32>
    %c1_82 = arith.constant 1 : index
    %c0_83 = arith.constant 0 : index
    %c0_84 = arith.constant 0 : index
    %84 = vector.load %arg7[%c1_82, %c0_83, %c0_84] : memref<9x16x64xf32, #tpu.memory_space<vmem>>, vector<1x16x64xf32>
    %85 = vector.shape_cast %84 : vector<1x16x64xf32> to vector<16x64xf32>
    %cst_85 = arith.constant dense<0.000000e+00> : vector<16x8xf32>
    %86 = tpu.matmul %85, %77, %cst_85 {dimension_numbers = #tpu.dot_dimension_numbers<[1], [0], [0], [1], [0, 0, 1, 1], [], []>} : vector<16x64xf32>, vector<64x8xf32>, vector<16x8xf32> -> vector<16x8xf32>
    %c1_86 = arith.constant 1 : index
    %c0_87 = arith.constant 0 : index
    %c0_88 = arith.constant 0 : index
    %87 = vector.load %arg8[%c1_86, %c0_87, %c0_88] : memref<9x8x16xf32, #tpu.memory_space<vmem>>, vector<1x8x16xf32>
    %88 = vector.shape_cast %87 : vector<1x8x16xf32> to vector<8x16xf32>
    %cst_89 = arith.constant dense<0.000000e+00> : vector<16x16xf32>
    %89 = tpu.matmul %86, %88, %cst_89 {dimension_numbers = #tpu.dot_dimension_numbers<[1], [0], [0], [1], [0, 0, 1, 1], [], []>} : vector<16x8xf32>, vector<8x16xf32>, vector<16x16xf32> -> vector<16x16xf32>
    %90 = arith.addf %83, %89 : vector<16x16xf32>
    %c2_90 = arith.constant 2 : index
    %c0_91 = arith.constant 0 : index
    %c0_92 = arith.constant 0 : index
    %91 = vector.load %arg7[%c2_90, %c0_91, %c0_92] : memref<9x16x64xf32, #tpu.memory_space<vmem>>, vector<1x16x64xf32>
    %92 = vector.shape_cast %91 : vector<1x16x64xf32> to vector<16x64xf32>
    %cst_93 = arith.constant dense<0.000000e+00> : vector<16x8xf32>
    %93 = tpu.matmul %92, %77, %cst_93 {dimension_numbers = #tpu.dot_dimension_numbers<[1], [0], [0], [1], [0, 0, 1, 1], [], []>} : vector<16x64xf32>, vector<64x8xf32>, vector<16x8xf32> -> vector<16x8xf32>
    %c2_94 = arith.constant 2 : index
    %c0_95 = arith.constant 0 : index
    %c0_96 = arith.constant 0 : index
    %94 = vector.load %arg8[%c2_94, %c0_95, %c0_96] : memref<9x8x16xf32, #tpu.memory_space<vmem>>, vector<1x8x16xf32>
    %95 = vector.shape_cast %94 : vector<1x8x16xf32> to vector<8x16xf32>
    %cst_97 = arith.constant dense<0.000000e+00> : vector<16x16xf32>
    %96 = tpu.matmul %93, %95, %cst_97 {dimension_numbers = #tpu.dot_dimension_numbers<[1], [0], [0], [1], [0, 0, 1, 1], [], []>} : vector<16x8xf32>, vector<8x16xf32>, vector<16x16xf32> -> vector<16x16xf32>
    %97 = arith.addf %90, %96 : vector<16x16xf32>
    %c3_98 = arith.constant 3 : index
    %c0_99 = arith.constant 0 : index
    %c0_100 = arith.constant 0 : index
    %98 = vector.load %arg7[%c3_98, %c0_99, %c0_100] : memref<9x16x64xf32, #tpu.memory_space<vmem>>, vector<1x16x64xf32>
    %99 = vector.shape_cast %98 : vector<1x16x64xf32> to vector<16x64xf32>
    %cst_101 = arith.constant dense<0.000000e+00> : vector<16x8xf32>
    %100 = tpu.matmul %99, %77, %cst_101 {dimension_numbers = #tpu.dot_dimension_numbers<[1], [0], [0], [1], [0, 0, 1, 1], [], []>} : vector<16x64xf32>, vector<64x8xf32>, vector<16x8xf32> -> vector<16x8xf32>
    %c3_102 = arith.constant 3 : index
    %c0_103 = arith.constant 0 : index
    %c0_104 = arith.constant 0 : index
    %101 = vector.load %arg8[%c3_102, %c0_103, %c0_104] : memref<9x8x16xf32, #tpu.memory_space<vmem>>, vector<1x8x16xf32>
    %102 = vector.shape_cast %101 : vector<1x8x16xf32> to vector<8x16xf32>
    %cst_105 = arith.constant dense<0.000000e+00> : vector<16x16xf32>
    %103 = tpu.matmul %100, %102, %cst_105 {dimension_numbers = #tpu.dot_dimension_numbers<[1], [0], [0], [1], [0, 0, 1, 1], [], []>} : vector<16x8xf32>, vector<8x16xf32>, vector<16x16xf32> -> vector<16x16xf32>
    %104 = arith.addf %97, %103 : vector<16x16xf32>
    %c4_106 = arith.constant 4 : index
    %c0_107 = arith.constant 0 : index
    %c0_108 = arith.constant 0 : index
    %105 = vector.load %arg7[%c4_106, %c0_107, %c0_108] : memref<9x16x64xf32, #tpu.memory_space<vmem>>, vector<1x16x64xf32>
    %106 = vector.shape_cast %105 : vector<1x16x64xf32> to vector<16x64xf32>
    %cst_109 = arith.constant dense<0.000000e+00> : vector<16x8xf32>
    %107 = tpu.matmul %106, %77, %cst_109 {dimension_numbers = #tpu.dot_dimension_numbers<[1], [0], [0], [1], [0, 0, 1, 1], [], []>} : vector<16x64xf32>, vector<64x8xf32>, vector<16x8xf32> -> vector<16x8xf32>
    %c4_110 = arith.constant 4 : index
    %c0_111 = arith.constant 0 : index
    %c0_112 = arith.constant 0 : index
    %108 = vector.load %arg8[%c4_110, %c0_111, %c0_112] : memref<9x8x16xf32, #tpu.memory_space<vmem>>, vector<1x8x16xf32>
    %109 = vector.shape_cast %108 : vector<1x8x16xf32> to vector<8x16xf32>
    %cst_113 = arith.constant dense<0.000000e+00> : vector<16x16xf32>
    %110 = tpu.matmul %107, %109, %cst_113 {dimension_numbers = #tpu.dot_dimension_numbers<[1], [0], [0], [1], [0, 0, 1, 1], [], []>} : vector<16x8xf32>, vector<8x16xf32>, vector<16x16xf32> -> vector<16x16xf32>
    %111 = arith.addf %104, %110 : vector<16x16xf32>
    %c5_114 = arith.constant 5 : index
    %c0_115 = arith.constant 0 : index
    %c0_116 = arith.constant 0 : index
    %112 = vector.load %arg7[%c5_114, %c0_115, %c0_116] : memref<9x16x64xf32, #tpu.memory_space<vmem>>, vector<1x16x64xf32>
    %113 = vector.shape_cast %112 : vector<1x16x64xf32> to vector<16x64xf32>
    %cst_117 = arith.constant dense<0.000000e+00> : vector<16x8xf32>
    %114 = tpu.matmul %113, %77, %cst_117 {dimension_numbers = #tpu.dot_dimension_numbers<[1], [0], [0], [1], [0, 0, 1, 1], [], []>} : vector<16x64xf32>, vector<64x8xf32>, vector<16x8xf32> -> vector<16x8xf32>
    %c5_118 = arith.constant 5 : index
    %c0_119 = arith.constant 0 : index
    %c0_120 = arith.constant 0 : index
    %115 = vector.load %arg8[%c5_118, %c0_119, %c0_120] : memref<9x8x16xf32, #tpu.memory_space<vmem>>, vector<1x8x16xf32>
    %116 = vector.shape_cast %115 : vector<1x8x16xf32> to vector<8x16xf32>
    %cst_121 = arith.constant dense<0.000000e+00> : vector<16x16xf32>
    %117 = tpu.matmul %114, %116, %cst_121 {dimension_numbers = #tpu.dot_dimension_numbers<[1], [0], [0], [1], [0, 0, 1, 1], [], []>} : vector<16x8xf32>, vector<8x16xf32>, vector<16x16xf32> -> vector<16x16xf32>
    %118 = arith.addf %111, %117 : vector<16x16xf32>
    %c6_122 = arith.constant 6 : index
    %c0_123 = arith.constant 0 : index
    %c0_124 = arith.constant 0 : index
    %119 = vector.load %arg7[%c6_122, %c0_123, %c0_124] : memref<9x16x64xf32, #tpu.memory_space<vmem>>, vector<1x16x64xf32>
    %120 = vector.shape_cast %119 : vector<1x16x64xf32> to vector<16x64xf32>
    %cst_125 = arith.constant dense<0.000000e+00> : vector<16x8xf32>
    %121 = tpu.matmul %120, %77, %cst_125 {dimension_numbers = #tpu.dot_dimension_numbers<[1], [0], [0], [1], [0, 0, 1, 1], [], []>} : vector<16x64xf32>, vector<64x8xf32>, vector<16x8xf32> -> vector<16x8xf32>
    %c6_126 = arith.constant 6 : index
    %c0_127 = arith.constant 0 : index
    %c0_128 = arith.constant 0 : index
    %122 = vector.load %arg8[%c6_126, %c0_127, %c0_128] : memref<9x8x16xf32, #tpu.memory_space<vmem>>, vector<1x8x16xf32>
    %123 = vector.shape_cast %122 : vector<1x8x16xf32> to vector<8x16xf32>
    %cst_129 = arith.constant dense<0.000000e+00> : vector<16x16xf32>
    %124 = tpu.matmul %121, %123, %cst_129 {dimension_numbers = #tpu.dot_dimension_numbers<[1], [0], [0], [1], [0, 0, 1, 1], [], []>} : vector<16x8xf32>, vector<8x16xf32>, vector<16x16xf32> -> vector<16x16xf32>
    %125 = arith.addf %118, %124 : vector<16x16xf32>
    %c7_130 = arith.constant 7 : index
    %c0_131 = arith.constant 0 : index
    %c0_132 = arith.constant 0 : index
    %126 = vector.load %arg7[%c7_130, %c0_131, %c0_132] : memref<9x16x64xf32, #tpu.memory_space<vmem>>, vector<1x16x64xf32>
    %127 = vector.shape_cast %126 : vector<1x16x64xf32> to vector<16x64xf32>
    %cst_133 = arith.constant dense<0.000000e+00> : vector<16x8xf32>
    %128 = tpu.matmul %127, %77, %cst_133 {dimension_numbers = #tpu.dot_dimension_numbers<[1], [0], [0], [1], [0, 0, 1, 1], [], []>} : vector<16x64xf32>, vector<64x8xf32>, vector<16x8xf32> -> vector<16x8xf32>
    %c7_134 = arith.constant 7 : index
    %c0_135 = arith.constant 0 : index
    %c0_136 = arith.constant 0 : index
    %129 = vector.load %arg8[%c7_134, %c0_135, %c0_136] : memref<9x8x16xf32, #tpu.memory_space<vmem>>, vector<1x8x16xf32>
    %130 = vector.shape_cast %129 : vector<1x8x16xf32> to vector<8x16xf32>
    %cst_137 = arith.constant dense<0.000000e+00> : vector<16x16xf32>
    %131 = tpu.matmul %128, %130, %cst_137 {dimension_numbers = #tpu.dot_dimension_numbers<[1], [0], [0], [1], [0, 0, 1, 1], [], []>} : vector<16x8xf32>, vector<8x16xf32>, vector<16x16xf32> -> vector<16x16xf32>
    %132 = arith.addf %125, %131 : vector<16x16xf32>
    %c8_138 = arith.constant 8 : index
    %c0_139 = arith.constant 0 : index
    %c0_140 = arith.constant 0 : index
    %133 = vector.load %arg7[%c8_138, %c0_139, %c0_140] : memref<9x16x64xf32, #tpu.memory_space<vmem>>, vector<1x16x64xf32>
    %134 = vector.shape_cast %133 : vector<1x16x64xf32> to vector<16x64xf32>
    %cst_141 = arith.constant dense<0.000000e+00> : vector<16x8xf32>
    %135 = tpu.matmul %134, %77, %cst_141 {dimension_numbers = #tpu.dot_dimension_numbers<[1], [0], [0], [1], [0, 0, 1, 1], [], []>} : vector<16x64xf32>, vector<64x8xf32>, vector<16x8xf32> -> vector<16x8xf32>
    %c8_142 = arith.constant 8 : index
    %c0_143 = arith.constant 0 : index
    %c0_144 = arith.constant 0 : index
    %136 = vector.load %arg8[%c8_142, %c0_143, %c0_144] : memref<9x8x16xf32, #tpu.memory_space<vmem>>, vector<1x8x16xf32>
    %137 = vector.shape_cast %136 : vector<1x8x16xf32> to vector<8x16xf32>
    %cst_145 = arith.constant dense<0.000000e+00> : vector<16x16xf32>
    %138 = tpu.matmul %135, %137, %cst_145 {dimension_numbers = #tpu.dot_dimension_numbers<[1], [0], [0], [1], [0, 0, 1, 1], [], []>} : vector<16x8xf32>, vector<8x16xf32>, vector<16x16xf32> -> vector<16x16xf32>
    %139 = arith.addf %132, %138 : vector<16x16xf32>
    %c0_146 = arith.constant 0 : index
    %c0_147 = arith.constant 0 : index
    %140 = vector.load %arg9[%c0_146, %c0_147] : memref<1x16xf32, #tpu.memory_space<vmem>>, vector<1x16xf32>
    %141 = vector.broadcast %140 : vector<1x16xf32> to vector<16x16xf32>
    %142 = arith.addf %139, %141 : vector<16x16xf32>
    %cst_148 = arith.constant 2.000000e-01 : f32
    %143 = vector.broadcast %cst_148 : f32 to vector<16x16xf32>
    %144 = arith.mulf %143, %142 : vector<16x16xf32>
    %145 = arith.maximumf %142, %144 : vector<16x16xf32>
    %c0_149 = arith.constant 0 : index
    %c0_150 = arith.constant 0 : index
    %c0_151 = arith.constant 0 : index
    %146 = vector.load %arg10[%c0_149, %c0_150, %c0_151] : memref<9x4x16xf32, #tpu.memory_space<vmem>>, vector<1x4x16xf32>
    %147 = vector.shape_cast %146 : vector<1x4x16xf32> to vector<4x16xf32>
    %cst_152 = arith.constant dense<0.000000e+00> : vector<4x16xf32>
    %148 = tpu.matmul %147, %145, %cst_152 {dimension_numbers = #tpu.dot_dimension_numbers<[1], [0], [0], [1], [0, 0, 1, 1], [], []>} : vector<4x16xf32>, vector<16x16xf32>, vector<4x16xf32> -> vector<4x16xf32>
    %c0_153 = arith.constant 0 : index
    %c0_154 = arith.constant 0 : index
    %c0_155 = arith.constant 0 : index
    %149 = vector.load %arg11[%c0_153, %c0_154, %c0_155] : memref<9x16x32xf32, #tpu.memory_space<vmem>>, vector<1x16x32xf32>
    %150 = vector.shape_cast %149 : vector<1x16x32xf32> to vector<16x32xf32>
    %cst_156 = arith.constant dense<0.000000e+00> : vector<4x32xf32>
    %151 = tpu.matmul %148, %150, %cst_156 {dimension_numbers = #tpu.dot_dimension_numbers<[1], [0], [0], [1], [0, 0, 1, 1], [], []>} : vector<4x16xf32>, vector<16x32xf32>, vector<4x32xf32> -> vector<4x32xf32>
    %c1_157 = arith.constant 1 : index
    %c0_158 = arith.constant 0 : index
    %c0_159 = arith.constant 0 : index
    %152 = vector.load %arg10[%c1_157, %c0_158, %c0_159] : memref<9x4x16xf32, #tpu.memory_space<vmem>>, vector<1x4x16xf32>
    %153 = vector.shape_cast %152 : vector<1x4x16xf32> to vector<4x16xf32>
    %cst_160 = arith.constant dense<0.000000e+00> : vector<4x16xf32>
    %154 = tpu.matmul %153, %145, %cst_160 {dimension_numbers = #tpu.dot_dimension_numbers<[1], [0], [0], [1], [0, 0, 1, 1], [], []>} : vector<4x16xf32>, vector<16x16xf32>, vector<4x16xf32> -> vector<4x16xf32>
    %c1_161 = arith.constant 1 : index
    %c0_162 = arith.constant 0 : index
    %c0_163 = arith.constant 0 : index
    %155 = vector.load %arg11[%c1_161, %c0_162, %c0_163] : memref<9x16x32xf32, #tpu.memory_space<vmem>>, vector<1x16x32xf32>
    %156 = vector.shape_cast %155 : vector<1x16x32xf32> to vector<16x32xf32>
    %cst_164 = arith.constant dense<0.000000e+00> : vector<4x32xf32>
    %157 = tpu.matmul %154, %156, %cst_164 {dimension_numbers = #tpu.dot_dimension_numbers<[1], [0], [0], [1], [0, 0, 1, 1], [], []>} : vector<4x16xf32>, vector<16x32xf32>, vector<4x32xf32> -> vector<4x32xf32>
    %158 = arith.addf %151, %157 : vector<4x32xf32>
    %c2_165 = arith.constant 2 : index
    %c0_166 = arith.constant 0 : index
    %c0_167 = arith.constant 0 : index
    %159 = vector.load %arg10[%c2_165, %c0_166, %c0_167] : memref<9x4x16xf32, #tpu.memory_space<vmem>>, vector<1x4x16xf32>
    %160 = vector.shape_cast %159 : vector<1x4x16xf32> to vector<4x16xf32>
    %cst_168 = arith.constant dense<0.000000e+00> : vector<4x16xf32>
    %161 = tpu.matmul %160, %145, %cst_168 {dimension_numbers = #tpu.dot_dimension_numbers<[1], [0], [0], [1], [0, 0, 1, 1], [], []>} : vector<4x16xf32>, vector<16x16xf32>, vector<4x16xf32> -> vector<4x16xf32>
    %c2_169 = arith.constant 2 : index
    %c0_170 = arith.constant 0 : index
    %c0_171 = arith.constant 0 : index
    %162 = vector.load %arg11[%c2_169, %c0_170, %c0_171] : memref<9x16x32xf32, #tpu.memory_space<vmem>>, vector<1x16x32xf32>
    %163 = vector.shape_cast %162 : vector<1x16x32xf32> to vector<16x32xf32>
    %cst_172 = arith.constant dense<0.000000e+00> : vector<4x32xf32>
    %164 = tpu.matmul %161, %163, %cst_172 {dimension_numbers = #tpu.dot_dimension_numbers<[1], [0], [0], [1], [0, 0, 1, 1], [], []>} : vector<4x16xf32>, vector<16x32xf32>, vector<4x32xf32> -> vector<4x32xf32>
    %165 = arith.addf %158, %164 : vector<4x32xf32>
    %c3_173 = arith.constant 3 : index
    %c0_174 = arith.constant 0 : index
    %c0_175 = arith.constant 0 : index
    %166 = vector.load %arg10[%c3_173, %c0_174, %c0_175] : memref<9x4x16xf32, #tpu.memory_space<vmem>>, vector<1x4x16xf32>
    %167 = vector.shape_cast %166 : vector<1x4x16xf32> to vector<4x16xf32>
    %cst_176 = arith.constant dense<0.000000e+00> : vector<4x16xf32>
    %168 = tpu.matmul %167, %145, %cst_176 {dimension_numbers = #tpu.dot_dimension_numbers<[1], [0], [0], [1], [0, 0, 1, 1], [], []>} : vector<4x16xf32>, vector<16x16xf32>, vector<4x16xf32> -> vector<4x16xf32>
    %c3_177 = arith.constant 3 : index
    %c0_178 = arith.constant 0 : index
    %c0_179 = arith.constant 0 : index
    %169 = vector.load %arg11[%c3_177, %c0_178, %c0_179] : memref<9x16x32xf32, #tpu.memory_space<vmem>>, vector<1x16x32xf32>
    %170 = vector.shape_cast %169 : vector<1x16x32xf32> to vector<16x32xf32>
    %cst_180 = arith.constant dense<0.000000e+00> : vector<4x32xf32>
    %171 = tpu.matmul %168, %170, %cst_180 {dimension_numbers = #tpu.dot_dimension_numbers<[1], [0], [0], [1], [0, 0, 1, 1], [], []>} : vector<4x16xf32>, vector<16x32xf32>, vector<4x32xf32> -> vector<4x32xf32>
    %172 = arith.addf %165, %171 : vector<4x32xf32>
    %c4_181 = arith.constant 4 : index
    %c0_182 = arith.constant 0 : index
    %c0_183 = arith.constant 0 : index
    %173 = vector.load %arg10[%c4_181, %c0_182, %c0_183] : memref<9x4x16xf32, #tpu.memory_space<vmem>>, vector<1x4x16xf32>
    %174 = vector.shape_cast %173 : vector<1x4x16xf32> to vector<4x16xf32>
    %cst_184 = arith.constant dense<0.000000e+00> : vector<4x16xf32>
    %175 = tpu.matmul %174, %145, %cst_184 {dimension_numbers = #tpu.dot_dimension_numbers<[1], [0], [0], [1], [0, 0, 1, 1], [], []>} : vector<4x16xf32>, vector<16x16xf32>, vector<4x16xf32> -> vector<4x16xf32>
    %c4_185 = arith.constant 4 : index
    %c0_186 = arith.constant 0 : index
    %c0_187 = arith.constant 0 : index
    %176 = vector.load %arg11[%c4_185, %c0_186, %c0_187] : memref<9x16x32xf32, #tpu.memory_space<vmem>>, vector<1x16x32xf32>
    %177 = vector.shape_cast %176 : vector<1x16x32xf32> to vector<16x32xf32>
    %cst_188 = arith.constant dense<0.000000e+00> : vector<4x32xf32>
    %178 = tpu.matmul %175, %177, %cst_188 {dimension_numbers = #tpu.dot_dimension_numbers<[1], [0], [0], [1], [0, 0, 1, 1], [], []>} : vector<4x16xf32>, vector<16x32xf32>, vector<4x32xf32> -> vector<4x32xf32>
    %179 = arith.addf %172, %178 : vector<4x32xf32>
    %c5_189 = arith.constant 5 : index
    %c0_190 = arith.constant 0 : index
    %c0_191 = arith.constant 0 : index
    %180 = vector.load %arg10[%c5_189, %c0_190, %c0_191] : memref<9x4x16xf32, #tpu.memory_space<vmem>>, vector<1x4x16xf32>
    %181 = vector.shape_cast %180 : vector<1x4x16xf32> to vector<4x16xf32>
    %cst_192 = arith.constant dense<0.000000e+00> : vector<4x16xf32>
    %182 = tpu.matmul %181, %145, %cst_192 {dimension_numbers = #tpu.dot_dimension_numbers<[1], [0], [0], [1], [0, 0, 1, 1], [], []>} : vector<4x16xf32>, vector<16x16xf32>, vector<4x16xf32> -> vector<4x16xf32>
    %c5_193 = arith.constant 5 : index
    %c0_194 = arith.constant 0 : index
    %c0_195 = arith.constant 0 : index
    %183 = vector.load %arg11[%c5_193, %c0_194, %c0_195] : memref<9x16x32xf32, #tpu.memory_space<vmem>>, vector<1x16x32xf32>
    %184 = vector.shape_cast %183 : vector<1x16x32xf32> to vector<16x32xf32>
    %cst_196 = arith.constant dense<0.000000e+00> : vector<4x32xf32>
    %185 = tpu.matmul %182, %184, %cst_196 {dimension_numbers = #tpu.dot_dimension_numbers<[1], [0], [0], [1], [0, 0, 1, 1], [], []>} : vector<4x16xf32>, vector<16x32xf32>, vector<4x32xf32> -> vector<4x32xf32>
    %186 = arith.addf %179, %185 : vector<4x32xf32>
    %c6_197 = arith.constant 6 : index
    %c0_198 = arith.constant 0 : index
    %c0_199 = arith.constant 0 : index
    %187 = vector.load %arg10[%c6_197, %c0_198, %c0_199] : memref<9x4x16xf32, #tpu.memory_space<vmem>>, vector<1x4x16xf32>
    %188 = vector.shape_cast %187 : vector<1x4x16xf32> to vector<4x16xf32>
    %cst_200 = arith.constant dense<0.000000e+00> : vector<4x16xf32>
    %189 = tpu.matmul %188, %145, %cst_200 {dimension_numbers = #tpu.dot_dimension_numbers<[1], [0], [0], [1], [0, 0, 1, 1], [], []>} : vector<4x16xf32>, vector<16x16xf32>, vector<4x16xf32> -> vector<4x16xf32>
    %c6_201 = arith.constant 6 : index
    %c0_202 = arith.constant 0 : index
    %c0_203 = arith.constant 0 : index
    %190 = vector.load %arg11[%c6_201, %c0_202, %c0_203] : memref<9x16x32xf32, #tpu.memory_space<vmem>>, vector<1x16x32xf32>
    %191 = vector.shape_cast %190 : vector<1x16x32xf32> to vector<16x32xf32>
    %cst_204 = arith.constant dense<0.000000e+00> : vector<4x32xf32>
    %192 = tpu.matmul %189, %191, %cst_204 {dimension_numbers = #tpu.dot_dimension_numbers<[1], [0], [0], [1], [0, 0, 1, 1], [], []>} : vector<4x16xf32>, vector<16x32xf32>, vector<4x32xf32> -> vector<4x32xf32>
    %193 = arith.addf %186, %192 : vector<4x32xf32>
    %c7_205 = arith.constant 7 : index
    %c0_206 = arith.constant 0 : index
    %c0_207 = arith.constant 0 : index
    %194 = vector.load %arg10[%c7_205, %c0_206, %c0_207] : memref<9x4x16xf32, #tpu.memory_space<vmem>>, vector<1x4x16xf32>
    %195 = vector.shape_cast %194 : vector<1x4x16xf32> to vector<4x16xf32>
    %cst_208 = arith.constant dense<0.000000e+00> : vector<4x16xf32>
    %196 = tpu.matmul %195, %145, %cst_208 {dimension_numbers = #tpu.dot_dimension_numbers<[1], [0], [0], [1], [0, 0, 1, 1], [], []>} : vector<4x16xf32>, vector<16x16xf32>, vector<4x16xf32> -> vector<4x16xf32>
    %c7_209 = arith.constant 7 : index
    %c0_210 = arith.constant 0 : index
    %c0_211 = arith.constant 0 : index
    %197 = vector.load %arg11[%c7_209, %c0_210, %c0_211] : memref<9x16x32xf32, #tpu.memory_space<vmem>>, vector<1x16x32xf32>
    %198 = vector.shape_cast %197 : vector<1x16x32xf32> to vector<16x32xf32>
    %cst_212 = arith.constant dense<0.000000e+00> : vector<4x32xf32>
    %199 = tpu.matmul %196, %198, %cst_212 {dimension_numbers = #tpu.dot_dimension_numbers<[1], [0], [0], [1], [0, 0, 1, 1], [], []>} : vector<4x16xf32>, vector<16x32xf32>, vector<4x32xf32> -> vector<4x32xf32>
    %200 = arith.addf %193, %199 : vector<4x32xf32>
    %c8_213 = arith.constant 8 : index
    %c0_214 = arith.constant 0 : index
    %c0_215 = arith.constant 0 : index
    %201 = vector.load %arg10[%c8_213, %c0_214, %c0_215] : memref<9x4x16xf32, #tpu.memory_space<vmem>>, vector<1x4x16xf32>
    %202 = vector.shape_cast %201 : vector<1x4x16xf32> to vector<4x16xf32>
    %cst_216 = arith.constant dense<0.000000e+00> : vector<4x16xf32>
    %203 = tpu.matmul %202, %145, %cst_216 {dimension_numbers = #tpu.dot_dimension_numbers<[1], [0], [0], [1], [0, 0, 1, 1], [], []>} : vector<4x16xf32>, vector<16x16xf32>, vector<4x16xf32> -> vector<4x16xf32>
    %c8_217 = arith.constant 8 : index
    %c0_218 = arith.constant 0 : index
    %c0_219 = arith.constant 0 : index
    %204 = vector.load %arg11[%c8_217, %c0_218, %c0_219] : memref<9x16x32xf32, #tpu.memory_space<vmem>>, vector<1x16x32xf32>
    %205 = vector.shape_cast %204 : vector<1x16x32xf32> to vector<16x32xf32>
    %cst_220 = arith.constant dense<0.000000e+00> : vector<4x32xf32>
    %206 = tpu.matmul %203, %205, %cst_220 {dimension_numbers = #tpu.dot_dimension_numbers<[1], [0], [0], [1], [0, 0, 1, 1], [], []>} : vector<4x16xf32>, vector<16x32xf32>, vector<4x32xf32> -> vector<4x32xf32>
    %207 = arith.addf %200, %206 : vector<4x32xf32>
    %c0_221 = arith.constant 0 : index
    %c0_222 = arith.constant 0 : index
    %208 = vector.load %arg12[%c0_221, %c0_222] : memref<1x32xf32, #tpu.memory_space<vmem>>, vector<1x32xf32>
    %209 = vector.broadcast %208 : vector<1x32xf32> to vector<4x32xf32>
    %210 = arith.addf %207, %209 : vector<4x32xf32>
    %cst_223 = arith.constant 2.000000e-01 : f32
    %211 = vector.broadcast %cst_223 : f32 to vector<4x32xf32>
    %212 = arith.mulf %211, %210 : vector<4x32xf32>
    %213 = arith.maximumf %210, %212 : vector<4x32xf32>
    %c0_224 = arith.constant 0 : index
    %c0_225 = arith.constant 0 : index
    %c0_226 = arith.constant 0 : index
    %214 = vector.load %arg13[%c0_224, %c0_225, %c0_226] : memref<9x1x4xf32, #tpu.memory_space<vmem>>, vector<1x1x4xf32>
    %215 = vector.shape_cast %214 : vector<1x1x4xf32> to vector<1x4xf32>
    %cst_227 = arith.constant dense<0.000000e+00> : vector<1x32xf32>
    %216 = tpu.matmul %215, %213, %cst_227 {dimension_numbers = #tpu.dot_dimension_numbers<[1], [0], [0], [1], [0, 0, 1, 1], [], []>} : vector<1x4xf32>, vector<4x32xf32>, vector<1x32xf32> -> vector<1x32xf32>
    %c0_228 = arith.constant 0 : index
    %c0_229 = arith.constant 0 : index
    %c0_230 = arith.constant 0 : index
    %217 = vector.load %arg14[%c0_228, %c0_229, %c0_230] : memref<9x32x64xf32, #tpu.memory_space<vmem>>, vector<1x32x64xf32>
    %218 = vector.shape_cast %217 : vector<1x32x64xf32> to vector<32x64xf32>
    %cst_231 = arith.constant dense<0.000000e+00> : vector<1x64xf32>
    %219 = tpu.matmul %216, %218, %cst_231 {dimension_numbers = #tpu.dot_dimension_numbers<[1], [0], [0], [1], [0, 0, 1, 1], [], []>} : vector<1x32xf32>, vector<32x64xf32>, vector<1x64xf32> -> vector<1x64xf32>
    %c1_232 = arith.constant 1 : index
    %c0_233 = arith.constant 0 : index
    %c0_234 = arith.constant 0 : index
    %220 = vector.load %arg13[%c1_232, %c0_233, %c0_234] : memref<9x1x4xf32, #tpu.memory_space<vmem>>, vector<1x1x4xf32>
    %221 = vector.shape_cast %220 : vector<1x1x4xf32> to vector<1x4xf32>
    %cst_235 = arith.constant dense<0.000000e+00> : vector<1x32xf32>
    %222 = tpu.matmul %221, %213, %cst_235 {dimension_numbers = #tpu.dot_dimension_numbers<[1], [0], [0], [1], [0, 0, 1, 1], [], []>} : vector<1x4xf32>, vector<4x32xf32>, vector<1x32xf32> -> vector<1x32xf32>
    %c1_236 = arith.constant 1 : index
    %c0_237 = arith.constant 0 : index
    %c0_238 = arith.constant 0 : index
    %223 = vector.load %arg14[%c1_236, %c0_237, %c0_238] : memref<9x32x64xf32, #tpu.memory_space<vmem>>, vector<1x32x64xf32>
    %224 = vector.shape_cast %223 : vector<1x32x64xf32> to vector<32x64xf32>
    %cst_239 = arith.constant dense<0.000000e+00> : vector<1x64xf32>
    %225 = tpu.matmul %222, %224, %cst_239 {dimension_numbers = #tpu.dot_dimension_numbers<[1], [0], [0], [1], [0, 0, 1, 1], [], []>} : vector<1x32xf32>, vector<32x64xf32>, vector<1x64xf32> -> vector<1x64xf32>
    %226 = arith.addf %219, %225 : vector<1x64xf32>
    %c2_240 = arith.constant 2 : index
    %c0_241 = arith.constant 0 : index
    %c0_242 = arith.constant 0 : index
    %227 = vector.load %arg13[%c2_240, %c0_241, %c0_242] : memref<9x1x4xf32, #tpu.memory_space<vmem>>, vector<1x1x4xf32>
    %228 = vector.shape_cast %227 : vector<1x1x4xf32> to vector<1x4xf32>
    %cst_243 = arith.constant dense<0.000000e+00> : vector<1x32xf32>
    %229 = tpu.matmul %228, %213, %cst_243 {dimension_numbers = #tpu.dot_dimension_numbers<[1], [0], [0], [1], [0, 0, 1, 1], [], []>} : vector<1x4xf32>, vector<4x32xf32>, vector<1x32xf32> -> vector<1x32xf32>
    %c2_244 = arith.constant 2 : index
    %c0_245 = arith.constant 0 : index
    %c0_246 = arith.constant 0 : index
    %230 = vector.load %arg14[%c2_244, %c0_245, %c0_246] : memref<9x32x64xf32, #tpu.memory_space<vmem>>, vector<1x32x64xf32>
    %231 = vector.shape_cast %230 : vector<1x32x64xf32> to vector<32x64xf32>
    %cst_247 = arith.constant dense<0.000000e+00> : vector<1x64xf32>
    %232 = tpu.matmul %229, %231, %cst_247 {dimension_numbers = #tpu.dot_dimension_numbers<[1], [0], [0], [1], [0, 0, 1, 1], [], []>} : vector<1x32xf32>, vector<32x64xf32>, vector<1x64xf32> -> vector<1x64xf32>
    %233 = arith.addf %226, %232 : vector<1x64xf32>
    %c3_248 = arith.constant 3 : index
    %c0_249 = arith.constant 0 : index
    %c0_250 = arith.constant 0 : index
    %234 = vector.load %arg13[%c3_248, %c0_249, %c0_250] : memref<9x1x4xf32, #tpu.memory_space<vmem>>, vector<1x1x4xf32>
    %235 = vector.shape_cast %234 : vector<1x1x4xf32> to vector<1x4xf32>
    %cst_251 = arith.constant dense<0.000000e+00> : vector<1x32xf32>
    %236 = tpu.matmul %235, %213, %cst_251 {dimension_numbers = #tpu.dot_dimension_numbers<[1], [0], [0], [1], [0, 0, 1, 1], [], []>} : vector<1x4xf32>, vector<4x32xf32>, vector<1x32xf32> -> vector<1x32xf32>
    %c3_252 = arith.constant 3 : index
    %c0_253 = arith.constant 0 : index
    %c0_254 = arith.constant 0 : index
    %237 = vector.load %arg14[%c3_252, %c0_253, %c0_254] : memref<9x32x64xf32, #tpu.memory_space<vmem>>, vector<1x32x64xf32>
    %238 = vector.shape_cast %237 : vector<1x32x64xf32> to vector<32x64xf32>
    %cst_255 = arith.constant dense<0.000000e+00> : vector<1x64xf32>
    %239 = tpu.matmul %236, %238, %cst_255 {dimension_numbers = #tpu.dot_dimension_numbers<[1], [0], [0], [1], [0, 0, 1, 1], [], []>} : vector<1x32xf32>, vector<32x64xf32>, vector<1x64xf32> -> vector<1x64xf32>
    %240 = arith.addf %233, %239 : vector<1x64xf32>
    %c4_256 = arith.constant 4 : index
    %c0_257 = arith.constant 0 : index
    %c0_258 = arith.constant 0 : index
    %241 = vector.load %arg13[%c4_256, %c0_257, %c0_258] : memref<9x1x4xf32, #tpu.memory_space<vmem>>, vector<1x1x4xf32>
    %242 = vector.shape_cast %241 : vector<1x1x4xf32> to vector<1x4xf32>
    %cst_259 = arith.constant dense<0.000000e+00> : vector<1x32xf32>
    %243 = tpu.matmul %242, %213, %cst_259 {dimension_numbers = #tpu.dot_dimension_numbers<[1], [0], [0], [1], [0, 0, 1, 1], [], []>} : vector<1x4xf32>, vector<4x32xf32>, vector<1x32xf32> -> vector<1x32xf32>
    %c4_260 = arith.constant 4 : index
    %c0_261 = arith.constant 0 : index
    %c0_262 = arith.constant 0 : index
    %244 = vector.load %arg14[%c4_260, %c0_261, %c0_262] : memref<9x32x64xf32, #tpu.memory_space<vmem>>, vector<1x32x64xf32>
    %245 = vector.shape_cast %244 : vector<1x32x64xf32> to vector<32x64xf32>
    %cst_263 = arith.constant dense<0.000000e+00> : vector<1x64xf32>
    %246 = tpu.matmul %243, %245, %cst_263 {dimension_numbers = #tpu.dot_dimension_numbers<[1], [0], [0], [1], [0, 0, 1, 1], [], []>} : vector<1x32xf32>, vector<32x64xf32>, vector<1x64xf32> -> vector<1x64xf32>
    %247 = arith.addf %240, %246 : vector<1x64xf32>
    %c5_264 = arith.constant 5 : index
    %c0_265 = arith.constant 0 : index
    %c0_266 = arith.constant 0 : index
    %248 = vector.load %arg13[%c5_264, %c0_265, %c0_266] : memref<9x1x4xf32, #tpu.memory_space<vmem>>, vector<1x1x4xf32>
    %249 = vector.shape_cast %248 : vector<1x1x4xf32> to vector<1x4xf32>
    %cst_267 = arith.constant dense<0.000000e+00> : vector<1x32xf32>
    %250 = tpu.matmul %249, %213, %cst_267 {dimension_numbers = #tpu.dot_dimension_numbers<[1], [0], [0], [1], [0, 0, 1, 1], [], []>} : vector<1x4xf32>, vector<4x32xf32>, vector<1x32xf32> -> vector<1x32xf32>
    %c5_268 = arith.constant 5 : index
    %c0_269 = arith.constant 0 : index
    %c0_270 = arith.constant 0 : index
    %251 = vector.load %arg14[%c5_268, %c0_269, %c0_270] : memref<9x32x64xf32, #tpu.memory_space<vmem>>, vector<1x32x64xf32>
    %252 = vector.shape_cast %251 : vector<1x32x64xf32> to vector<32x64xf32>
    %cst_271 = arith.constant dense<0.000000e+00> : vector<1x64xf32>
    %253 = tpu.matmul %250, %252, %cst_271 {dimension_numbers = #tpu.dot_dimension_numbers<[1], [0], [0], [1], [0, 0, 1, 1], [], []>} : vector<1x32xf32>, vector<32x64xf32>, vector<1x64xf32> -> vector<1x64xf32>
    %254 = arith.addf %247, %253 : vector<1x64xf32>
    %c6_272 = arith.constant 6 : index
    %c0_273 = arith.constant 0 : index
    %c0_274 = arith.constant 0 : index
    %255 = vector.load %arg13[%c6_272, %c0_273, %c0_274] : memref<9x1x4xf32, #tpu.memory_space<vmem>>, vector<1x1x4xf32>
    %256 = vector.shape_cast %255 : vector<1x1x4xf32> to vector<1x4xf32>
    %cst_275 = arith.constant dense<0.000000e+00> : vector<1x32xf32>
    %257 = tpu.matmul %256, %213, %cst_275 {dimension_numbers = #tpu.dot_dimension_numbers<[1], [0], [0], [1], [0, 0, 1, 1], [], []>} : vector<1x4xf32>, vector<4x32xf32>, vector<1x32xf32> -> vector<1x32xf32>
    %c6_276 = arith.constant 6 : index
    %c0_277 = arith.constant 0 : index
    %c0_278 = arith.constant 0 : index
    %258 = vector.load %arg14[%c6_276, %c0_277, %c0_278] : memref<9x32x64xf32, #tpu.memory_space<vmem>>, vector<1x32x64xf32>
    %259 = vector.shape_cast %258 : vector<1x32x64xf32> to vector<32x64xf32>
    %cst_279 = arith.constant dense<0.000000e+00> : vector<1x64xf32>
    %260 = tpu.matmul %257, %259, %cst_279 {dimension_numbers = #tpu.dot_dimension_numbers<[1], [0], [0], [1], [0, 0, 1, 1], [], []>} : vector<1x32xf32>, vector<32x64xf32>, vector<1x64xf32> -> vector<1x64xf32>
    %261 = arith.addf %254, %260 : vector<1x64xf32>
    %c7_280 = arith.constant 7 : index
    %c0_281 = arith.constant 0 : index
    %c0_282 = arith.constant 0 : index
    %262 = vector.load %arg13[%c7_280, %c0_281, %c0_282] : memref<9x1x4xf32, #tpu.memory_space<vmem>>, vector<1x1x4xf32>
    %263 = vector.shape_cast %262 : vector<1x1x4xf32> to vector<1x4xf32>
    %cst_283 = arith.constant dense<0.000000e+00> : vector<1x32xf32>
    %264 = tpu.matmul %263, %213, %cst_283 {dimension_numbers = #tpu.dot_dimension_numbers<[1], [0], [0], [1], [0, 0, 1, 1], [], []>} : vector<1x4xf32>, vector<4x32xf32>, vector<1x32xf32> -> vector<1x32xf32>
    %c7_284 = arith.constant 7 : index
    %c0_285 = arith.constant 0 : index
    %c0_286 = arith.constant 0 : index
    %265 = vector.load %arg14[%c7_284, %c0_285, %c0_286] : memref<9x32x64xf32, #tpu.memory_space<vmem>>, vector<1x32x64xf32>
    %266 = vector.shape_cast %265 : vector<1x32x64xf32> to vector<32x64xf32>
    %cst_287 = arith.constant dense<0.000000e+00> : vector<1x64xf32>
    %267 = tpu.matmul %264, %266, %cst_287 {dimension_numbers = #tpu.dot_dimension_numbers<[1], [0], [0], [1], [0, 0, 1, 1], [], []>} : vector<1x32xf32>, vector<32x64xf32>, vector<1x64xf32> -> vector<1x64xf32>
    %268 = arith.addf %261, %267 : vector<1x64xf32>
    %c8_288 = arith.constant 8 : index
    %c0_289 = arith.constant 0 : index
    %c0_290 = arith.constant 0 : index
    %269 = vector.load %arg13[%c8_288, %c0_289, %c0_290] : memref<9x1x4xf32, #tpu.memory_space<vmem>>, vector<1x1x4xf32>
    %270 = vector.shape_cast %269 : vector<1x1x4xf32> to vector<1x4xf32>
    %cst_291 = arith.constant dense<0.000000e+00> : vector<1x32xf32>
    %271 = tpu.matmul %270, %213, %cst_291 {dimension_numbers = #tpu.dot_dimension_numbers<[1], [0], [0], [1], [0, 0, 1, 1], [], []>} : vector<1x4xf32>, vector<4x32xf32>, vector<1x32xf32> -> vector<1x32xf32>
    %c8_292 = arith.constant 8 : index
    %c0_293 = arith.constant 0 : index
    %c0_294 = arith.constant 0 : index
    %272 = vector.load %arg14[%c8_292, %c0_293, %c0_294] : memref<9x32x64xf32, #tpu.memory_space<vmem>>, vector<1x32x64xf32>
    %273 = vector.shape_cast %272 : vector<1x32x64xf32> to vector<32x64xf32>
    %cst_295 = arith.constant dense<0.000000e+00> : vector<1x64xf32>
    %274 = tpu.matmul %271, %273, %cst_295 {dimension_numbers = #tpu.dot_dimension_numbers<[1], [0], [0], [1], [0, 0, 1, 1], [], []>} : vector<1x32xf32>, vector<32x64xf32>, vector<1x64xf32> -> vector<1x64xf32>
    %275 = arith.addf %268, %274 : vector<1x64xf32>
    %c0_296 = arith.constant 0 : index
    %c0_297 = arith.constant 0 : index
    %276 = vector.load %arg15[%c0_296, %c0_297] : memref<1x64xf32, #tpu.memory_space<vmem>>, vector<1x64xf32>
    %277 = arith.addf %275, %276 : vector<1x64xf32>
    %cst_298 = arith.constant 2.000000e-01 : f32
    %278 = vector.broadcast %cst_298 : f32 to vector<1x64xf32>
    %279 = arith.mulf %278, %277 : vector<1x64xf32>
    %280 = arith.maximumf %277, %279 : vector<1x64xf32>
    %c0_299 = arith.constant 0 : index
    %c0_300 = arith.constant 0 : index
    %281 = vector.load %arg16[%c0_299, %c0_300] : memref<64x5xf32, #tpu.memory_space<vmem>>, vector<64x5xf32>
    %cst_301 = arith.constant dense<0.000000e+00> : vector<1x5xf32>
    %282 = tpu.matmul %280, %281, %cst_301 {dimension_numbers = #tpu.dot_dimension_numbers<[1], [0], [0], [1], [0, 0, 1, 1], [], []>} : vector<1x64xf32>, vector<64x5xf32>, vector<1x5xf32> -> vector<1x5xf32>
    %c0_302 = arith.constant 0 : index
    %c0_303 = arith.constant 0 : index
    %283 = vector.load %arg17[%c0_302, %c0_303] : memref<1x5xf32, #tpu.memory_space<vmem>>, vector<1x5xf32>
    %284 = arith.addf %282, %283 : vector<1x5xf32>
    %c0_304 = arith.constant 0 : index
    %c0_305 = arith.constant 0 : index
    %c0_306 = arith.constant 0 : index
    %285 = vector.load %arg18[%c0_304, %c0_305, %c0_306] : memref<1x1x5xf32, #tpu.memory_space<vmem>>, vector<1x1x5xf32>
    %286 = vector.shape_cast %285 : vector<1x1x5xf32> to vector<1x5xf32>
    %287 = vector.shape_cast %284 : vector<1x5xf32> to vector<1x1x5xf32>
    tpu.vector_store %arg18[%c0_304, %c0_305, %c0_306], %287 {strides = array<i32>} : memref<1x1x5xf32, #tpu.memory_space<vmem>>, vector<1x1x5xf32>,
    return
  }
  func.func @transform_0(%arg0: i32) -> (i32, i32, i32) {
    %c0_i32 = arith.constant 0 : i32
    %c0_i32_0 = arith.constant 0 : i32
    %c0_i32_1 = arith.constant 0 : i32
    return %arg0, %c0_i32, %c0_i32_0 : i32, i32, i32
  }
  func.func @transform_1(%arg0: i32) -> (i32, i32) {
    %c0_i32 = arith.constant 0 : i32
    %c0_i32_0 = arith.constant 0 : i32
    %c0_i32_1 = arith.constant 0 : i32
    return %c0_i32, %c0_i32_0 : i32, i32
  }
  func.func @transform_2(%arg0: i32) -> (i32, i32) {
    %c0_i32 = arith.constant 0 : i32
    %c0_i32_0 = arith.constant 0 : i32
    %c0_i32_1 = arith.constant 0 : i32
    return %c0_i32, %c0_i32_0 : i32, i32
  }
  func.func @transform_3(%arg0: i32) -> (i32, i32, i32) {
    %c0_i32 = arith.constant 0 : i32
    %c0_i32_0 = arith.constant 0 : i32
    %c0_i32_1 = arith.constant 0 : i32
    %c0_i32_2 = arith.constant 0 : i32
    return %c0_i32, %c0_i32_0, %c0_i32_1 : i32, i32, i32
  }
  func.func @transform_4(%arg0: i32) -> (i32, i32, i32) {
    %c0_i32 = arith.constant 0 : i32
    %c0_i32_0 = arith.constant 0 : i32
    %c0_i32_1 = arith.constant 0 : i32
    %c0_i32_2 = arith.constant 0 : i32
    return %c0_i32, %c0_i32_0, %c0_i32_1 : i32, i32, i32
  }
  func.func @transform_5(%arg0: i32) -> (i32, i32) {
    %c0_i32 = arith.constant 0 : i32
    %c0_i32_0 = arith.constant 0 : i32
    %c0_i32_1 = arith.constant 0 : i32
    return %c0_i32, %c0_i32_0 : i32, i32
  }
  func.func @transform_6(%arg0: i32) -> (i32, i32, i32) {
    %c0_i32 = arith.constant 0 : i32
    %c0_i32_0 = arith.constant 0 : i32
    %c0_i32_1 = arith.constant 0 : i32
    %c0_i32_2 = arith.constant 0 : i32
    return %c0_i32, %c0_i32_0, %c0_i32_1 : i32, i32, i32
  }
  func.func @transform_7(%arg0: i32) -> (i32, i32, i32) {
    %c0_i32 = arith.constant 0 : i32
    %c0_i32_0 = arith.constant 0 : i32
    %c0_i32_1 = arith.constant 0 : i32
    %c0_i32_2 = arith.constant 0 : i32
    return %c0_i32, %c0_i32_0, %c0_i32_1 : i32, i32, i32
  }
  func.func @transform_8(%arg0: i32) -> (i32, i32) {
    %c0_i32 = arith.constant 0 : i32
    %c0_i32_0 = arith.constant 0 : i32
    %c0_i32_1 = arith.constant 0 : i32
    return %c0_i32, %c0_i32_0 : i32, i32
  }
  func.func @transform_9(%arg0: i32) -> (i32, i32, i32) {
    %c0_i32 = arith.constant 0 : i32
    %c0_i32_0 = arith.constant 0 : i32
    %c0_i32_1 = arith.constant 0 : i32
    %c0_i32_2 = arith.constant 0 : i32
    return %c0_i32, %c0_i32_0, %c0_i32_1 : i32, i32, i32
  }
  func.func @transform_10(%arg0: i32) -> (i32, i32, i32) {
    %c0_i32 = arith.constant 0 : i32
    %c0_i32_0 = arith.constant 0 : i32
    %c0_i32_1 = arith.constant 0 : i32
    %c0_i32_2 = arith.constant 0 : i32
    return %c0_i32, %c0_i32_0, %c0_i32_1 : i32, i32, i32
  }
  func.func @transform_11(%arg0: i32) -> (i32, i32) {
    %c0_i32 = arith.constant 0 : i32
    %c0_i32_0 = arith.constant 0 : i32
    %c0_i32_1 = arith.constant 0 : i32
    return %c0_i32, %c0_i32_0 : i32, i32
  }
  func.func @transform_12(%arg0: i32) -> (i32, i32, i32) {
    %c0_i32 = arith.constant 0 : i32
    %c0_i32_0 = arith.constant 0 : i32
    %c0_i32_1 = arith.constant 0 : i32
    %c0_i32_2 = arith.constant 0 : i32
    return %c0_i32, %c0_i32_0, %c0_i32_1 : i32, i32, i32
  }
  func.func @transform_13(%arg0: i32) -> (i32, i32, i32) {
    %c0_i32 = arith.constant 0 : i32
    %c0_i32_0 = arith.constant 0 : i32
    %c0_i32_1 = arith.constant 0 : i32
    %c0_i32_2 = arith.constant 0 : i32
    return %c0_i32, %c0_i32_0, %c0_i32_1 : i32, i32, i32
  }
  func.func @transform_14(%arg0: i32) -> (i32, i32) {
    %c0_i32 = arith.constant 0 : i32
    %c0_i32_0 = arith.constant 0 : i32
    %c0_i32_1 = arith.constant 0 : i32
    return %c0_i32, %c0_i32_0 : i32, i32
  }
  func.func @transform_15(%arg0: i32) -> (i32, i32) {
    %c0_i32 = arith.constant 0 : i32
    %c0_i32_0 = arith.constant 0 : i32
    %c0_i32_1 = arith.constant 0 : i32
    return %c0_i32, %c0_i32_0 : i32, i32
  }
  func.func @transform_16(%arg0: i32) -> (i32, i32) {
    %c0_i32 = arith.constant 0 : i32
    %c0_i32_0 = arith.constant 0 : i32
    %c0_i32_1 = arith.constant 0 : i32
    return %c0_i32, %c0_i32_0 : i32, i32
  }
  func.func @transform_17(%arg0: i32) -> (i32, i32, i32) {
    %c0_i32 = arith.constant 0 : i32
    %c0_i32_0 = arith.constant 0 : i32
    %c0_i32_1 = arith.constant 0 : i32
    return %arg0, %c0_i32, %c0_i32_0 : i32, i32, i32
  }
}

</mosaic_0001>

<bundles_post_ra>
// kernel: cnn_model_forward.1
= control target key start
LH: loop header
LB: loop body
LE: loop exit
PB: predicated region body
PF: predicated region fallthrough
CT: control target
= control target key end

     0   :  { %s12022_s0 = inlined_call_operand.vmem [shape: f32[2,256,27], index: 0, kind: input, shape index: {}]   ;;  %s12023_s1 = inlined_call_operand.vmem [shape: f32[27,4], index: 1, kind: input, shape index: {}]   ;;  %s12024_s2 = inlined_call_operand.vmem [shape: f32[1,4], index: 2, kind: input, shape index: {}]   ;;  %s12025_s3 = inlined_call_operand.vmem [shape: f32[9,64,256], index: 3, kind: input, shape index: {}]   ;;  %s12026_s4 = inlined_call_operand.vmem [shape: f32[9,4,8], index: 4, kind: input, shape index: {}]   ;;  %s12027_s5 = inlined_call_operand.vmem [shape: f32[1,8], index: 5, kind: input, shape index: {}]   ;;  %s12028_s6 = inlined_call_operand.vmem [shape: f32[9,16,64], index: 6, kind: input, shape index: {}]   ;;  %s12029_s7 = inlined_call_operand.vmem [shape: f32[9,8,16], index: 7, kind: input, shape index: {}]   ;;  %s12030_s8 = inlined_call_operand.vmem [shape: f32[1,16], index: 8, kind: input, shape index: {}]   ;;  %s12031_s9 = inlined_call_operand.vmem [shape: f32[9,4,16], index: 9, kind: input, shape index: {}]   ;;  %s12032_s10 = inlined_call_operand.vmem [shape: f32[9,16,32], index: 10, kind: input, shape index: {}]   ;;  %s12033_s11 = inlined_call_operand.vmem [shape: f32[1,32], index: 11, kind: input, shape index: {}]   ;;  %s12034_s12 = inlined_call_operand.vmem [shape: f32[9,1,4], index: 12, kind: input, shape index: {}]   ;;  %s12035_s13 = inlined_call_operand.vmem [shape: f32[9,32,64], index: 13, kind: input, shape index: {}]   ;;  %s12036_s14 = inlined_call_operand.vmem [shape: f32[1,64], index: 14, kind: input, shape index: {}]   ;;  %s12037_s15 = inlined_call_operand.vmem [shape: f32[64,5], index: 15, kind: input, shape index: {}]   ;;  %s12038_s16 = inlined_call_operand.vmem [shape: f32[1,5], index: 16, kind: input, shape index: {}]   ;;  %s12039_s17 = inlined_call_operand.hbm [shape: f32[2,1,5], index: 17, kind: output, shape index: {}]  }
   0x1   :  { %12046 = sst [smem:[#allocation15_spill]] %s12022_s0 }
   0x2   :  { %12047 = sst [smem:[#allocation16_spill]] %s12023_s1 }
   0x3   :  { %12048 = sst [smem:[#allocation17_spill]] %s12024_s2 }
   0x4   :  { %22 = vsyncpa [#allocation3], 0 }
   0x5   :  { %24 = vsyncpa [#allocation3 + $0x1], 0  ;;  %s9998_s24 = smov 0   ;;  %s10000_s25 = smov 0  }
   0x6   :  { %s10002_s26 = smov 0   ;;  %s10004_s27 = smov 0  }
   0x7 LB: > { %12049 = sst [smem:[#allocation5_spill]] %s9891_s24  ;;  %s10019_s28 = sadd.s32 4294967295, %s9903_s27   ;;  %s9903_s27 = sphi %s10004_s27, %s12071_s27   ;;  %s9899_s26 = sphi %s10002_s26, %s12073_s26   ;;  %s9895_s25 = sphi %s10000_s25, %s12075_s25   ;;  %s9891_s24 = sphi %s9998_s24, %s12074_s24  }
   0x8   : > { %12050 = sst [smem:[#allocation6_spill]] %s9899_s26  ;;  %s7817_s29 = sadd.s32 4294967294, %s9903_s27  }
   0x9   : > { %s10023_s0 = sadd.s32 1, %s9903_s27   ;;  %s399_s30 = sadd.s32 1, %s9899_s26 }
   0xa   : > { %12051 = sst [smem:[#allocation7_spill]] %s10023_s0  ;;  %s396_s18 = ssub.s32 %s9903_s27, %s10023_s0 }
   0xb   : > { %p409_p0 = scmp.ne.s32.totalorder %s9899_s26, %s9895_s25  ;;  %p397_p1 = scmp.eq.s32.totalorder %s396_s18, 0 }
   0xc   : > { %p410_p2 = scmp.eq.s32.totalorder %s10019_s28, 1  ;;  %p415_p3 = scmp.ne.s32.totalorder %s9895_s25, %s9891_s24 }
   0xd   : > { %p416_p4 = scmp.eq.s32.totalorder %s7817_s29, 1  ;;  %p7820_p7 = scmp.ge.s32.totalorder %s9903_s27, 1 }
   0xe   : > { %s10034_s19 = scalar_select %p397_p1, %s9899_s26, %s399_s30  }
   0xf   : > { %p10036_p5 = por %p410_p2, %p409_p0  ;;  %p10040_p6 = por %p416_p4, %p415_p3 }
  0x10   : > { %12052 = sst [smem:[#allocation8_spill]] %s10034_s19  ;;  %p490_p8 = scmp.lt.s32.totalorder %s9903_s27, 3 }
  0x11   : > { %s12054_s20 = scalar_select %p10040_p6, 1, 0 }
  0x12   : > { %p491_p9 = pnand %p7820_p7, %p490_p8 }
  0x13   : > { %12055 = sst [smem:[#allocation9_spill]] %s12054_s20 }
  0x14   : > { %494 = sbr.rel (%p491_p9) target bundleno = 5526 (0x1596), region = 88 }
  0x19   : > { %s12056_s23 = sld [smem:[#allocation16_spill]]  ;;  %vm686_vm0 = vcmask 1042432   ;;  %p541_p10 = scmp.lt.s32.totalorder %s10019_s28, 1  ;;  %vm589_vm1 = vcmask 220160   ;;  %v980_v36 = vld [vmem:[%s12025_s3 + $0x8] sm:$0xff]  ;;  %vm1250_vm2 = vcmask 1043456  }
  0x1a   : > { %s12057_s30 = sld [smem:[#allocation15_spill]]  ;;  %1059 = vmatprep.mubr.f32.mxu1 %v980_v36  ;;  %vm1225_vm3 = vcmask 31744   ;;  %vm3372_vm4 = vcmask 523264   ;;  %vm3541_vm5 = vcmask 64512   ;;  %vm9906_vm6 = vmmov 0   ;;  %s8247_s19 = sshll.u32 %s10019_s28, 4 }
  0x1b   : > { %s542_s26 = scalar_select %p541_p10, %s10019_s28, 1  ;;  %vm4901_vm7 = vcmask 130048   ;;  %vm6436_vm8 = vcmask 261120   ;;  %vm7747_vm9 = vcmask 32768  }
  0x1c   : > { %s12058_s2 = sld [smem:[#allocation17_spill]]  ;;  %s11987_s29 = scalar_lea.hbm %s12039_s17, %s8247_s19 }
  0x1d   : > { %s8250_s22 = sshll.u32 %s542_s26, 8  ;;  %s539_s26 = sand.u32 1, %s9895_s25  }
  0x1e   : > { %s540_s20 = scalar_lea.vmem [#allocation2], %s539_s26  ;;  %s9907_s28 = smov [#allocation2]  }
  0x1f   : > { %v581_v0 = vld [vmem:[%s12056_s23 + $0x18] sm:$0x7]  ;;  %v580_v1 = vld [vmem:[%s12056_s23 + $0x10] sm:$0xff]  ;;  %v579_v2 = vld [vmem:[%s12056_s23 + $0x8] sm:$0xff]  ;;  %s7762_s18 = sshll.u32 %s540_s20, 4  ;;  %s9847_s0 = sshll.u32 %s9907_s28, 4  ;;  %s7763_s18 = int_to_ptr.vmem [resolvable:$true] %s7762_s18  ;;  %s9848_s0 = int_to_ptr.vmem [resolvable:$false] %s9847_s0 }
  0x20   : > { %9115 = vmatprep.subr.msk.mxu0 %vm686_vm0, %v581_v0  ;;  %v578_v3 = vld [vmem:[%s12056_s23] sm:$0xff]  ;;  %s10063_s24 = scalar_lea.vmem %s12057_s30, %s8250_s22  ;;  %s7750_s30 = scalar_lea.sflag [#allocation3], %s539_s26 }
  0x21   : > { %9116 = vmatpush3.msk.msra.mxu0 %vm686_vm0, %v581_v0  ;;  %v546_v4 = vld [vmem:[%s10063_s24] sm:$0xff]  ;;  %v547_v5 = vld [vmem:[%s10063_s24 + $0x8] sm:$0xff]  ;;  %v548_v6 = vld [vmem:[%s10063_s24 + $0x10] sm:$0xff]  ;;  %p9850_p0 = scmp.lt.s32.totalorder %s7763_s18, %s9848_s0 }
  0x22   : > { %9117 = vmatprep.subr.mxu0 %v580_v1  ;;  %9123 = vmatprep.mubr.msk.f32.mxu0 %vm589_vm1, %v546_v4  ;;  %v549_v7 = vld [vmem:[%s10063_s24 + $0x18] sm:$0xff]  ;;  %v550_v8 = vld [vmem:[%s10063_s24 + $0x20] sm:$0xff]  ;;  %v551_v9 = vld [vmem:[%s10063_s24 + $0x28] sm:$0xff] }
  0x23   : > { %9118 = vmatpush3.msra.mxu0 %v580_v1  ;;  %v552_v10 = vld [vmem:[%s10063_s24 + $0x30] sm:$0xff]  ;;  %v553_v11 = vld [vmem:[%s10063_s24 + $0x38] sm:$0xff]  ;;  %v554_v12 = vld [vmem:[%s10063_s24 + $0x40] sm:$0xff] }
  0x24   : > { %9119 = vmatprep.subr.mxu0 %v579_v2  ;;  %v555_v13 = vld [vmem:[%s10063_s24 + $0x48] sm:$0xff]  ;;  %v556_v14 = vld [vmem:[%s10063_s24 + $0x50] sm:$0xff]  ;;  %v557_v15 = vld [vmem:[%s10063_s24 + $0x58] sm:$0xff] }
  0x25   : > { %9120 = vmatpush3.msra.mxu0 %v579_v2  ;;  %v558_v16 = vld [vmem:[%s10063_s24 + $0x60] sm:$0xff]  ;;  %v559_v17 = vld [vmem:[%s10063_s24 + $0x68] sm:$0xff]  ;;  %v560_v18 = vld [vmem:[%s10063_s24 + $0x70] sm:$0xff] }
  0x26   : > { %9121 = vmatprep.subr.mxu0 %v578_v3  ;;  %v561_v19 = vld [vmem:[%s10063_s24 + $0x78] sm:$0xff]  ;;  %v562_v20 = vld [vmem:[%s10063_s24 + $0x80] sm:$0xff]  ;;  %v563_v21 = vld [vmem:[%s10063_s24 + $0x88] sm:$0xff] }
  0x27   : > { %9122 = vmatpush3.msra.mxu0 %v578_v3  ;;  %v564_v22 = vld [vmem:[%s10063_s24 + $0x90] sm:$0xff]  ;;  %v565_v23 = vld [vmem:[%s10063_s24 + $0x98] sm:$0xff]  ;;  %v566_v24 = vld [vmem:[%s10063_s24 + $0xa0] sm:$0xff] }
  0x28   : > { %9124 = vmatmul.mubr.msk.f32.vlgmr.msra.gmra.mxu0 %vm589_vm1, %v547_v5  ;;  %v567_v25 = vld [vmem:[%s10063_s24 + $0xa8] sm:$0xff]  ;;  %v568_v26 = vld [vmem:[%s10063_s24 + $0xb0] sm:$0xff]  ;;  %v569_v27 = vld [vmem:[%s10063_s24 + $0xb8] sm:$0xff] }
  0x29   : > { %9126 = vmatprep.mubr.msk.f32.mxu0 %vm589_vm1, %v548_v6  ;;  %v570_v28 = vld [vmem:[%s10063_s24 + $0xc0] sm:$0xff]  ;;  %v571_v29 = vld [vmem:[%s10063_s24 + $0xc8] sm:$0xff]  ;;  %v572_v30 = vld [vmem:[%s10063_s24 + $0xd0] sm:$0xff] }
  0x2a   : > { %v573_v31 = vld [vmem:[%s10063_s24 + $0xd8] sm:$0xff]  ;;  %v574_v32 = vld [vmem:[%s10063_s24 + $0xe0] sm:$0xff]  ;;  %v575_v33 = vld [vmem:[%s10063_s24 + $0xe8] sm:$0xff] }
  0x2b   : > { %v576_v34 = vld [vmem:[%s10063_s24 + $0xf0] sm:$0xff]  ;;  %v577_v35 = vld [vmem:[%s10063_s24 + $0xf8] sm:$0xff]  ;;  %v10163_v2 = vld [vmem:[%s12058_s2] ss:$0 sm:$0xff]  ;;  %s9843_s2 = scalar_lea.vmem %s7763_s18, 16  ;;  %s9849_s24 = scalar_lea.vmem %s9848_s0, 32 }
  0x2c   : > { %9127 = vmatmul.mubr.msk.f32.gmra.mxu0 %vm589_vm1, %v549_v7  ;;  %p9844_p11 = scmp.ne.s32.totalorder %s7763_s18, %s9843_s2  ;;  %p9851_p1 = scmp.lt.s32.totalorder %s9849_s24, %s9843_s2 }
  0x2d   : > { %9129 = vmatprep.mubr.msk.f32.mxu0 %vm589_vm1, %v550_v8 }
  0x2e   : > { %p9845_p12 = pnand %p9844_p11, %p10036_p5  ;;  %p9852_p2 = por %p9851_p1, %p9850_p0 }
  0x30   : > { %9130 = vmatmul.mubr.msk.f32.gmra.mxu0 %vm589_vm1, %v551_v9  ;;  %p9846_p13 = pneg %p9845_p12 }
  0x31   : > { %9132 = vmatprep.mubr.msk.f32.mxu0 %vm589_vm1, %v552_v10 }
  0x32   : > { %p9853_p3 = pnand %p9852_p2, %p9846_p13 }
  0x34   : > { %9133 = vmatmul.mubr.msk.f32.gmra.mxu0 %vm589_vm1, %v553_v11 }
  0x35   : > { %9135 = vmatprep.mubr.msk.f32.mxu0 %vm589_vm1, %v554_v12 }
  0x38   : > { %9136 = vmatmul.mubr.msk.f32.gmra.mxu0 %vm589_vm1, %v555_v13 }
  0x39   : > { %9138 = vmatprep.mubr.msk.f32.mxu0 %vm589_vm1, %v556_v14 }
  0x3c   : > { %9139 = vmatmul.mubr.msk.f32.gmra.mxu0 %vm589_vm1, %v557_v15 }
  0x3d   : > { %9141 = vmatprep.mubr.msk.f32.mxu0 %vm589_vm1, %v558_v16 }
  0x40   : > { %9142 = vmatmul.mubr.msk.f32.gmra.mxu0 %vm589_vm1, %v559_v17 }
  0x41   : > { %9144 = vmatprep.mubr.msk.f32.mxu0 %vm589_vm1, %v560_v18 }
  0x44   : > { %9145 = vmatmul.mubr.msk.f32.gmra.mxu0 %vm589_vm1, %v561_v19 }
  0x45   : > { %9147 = vmatprep.mubr.msk.f32.mxu0 %vm589_vm1, %v562_v20 }
  0x48   : > { %9148 = vmatmul.mubr.msk.f32.gmra.mxu0 %vm589_vm1, %v563_v21 }
  0x49   : > { %9150 = vmatprep.mubr.msk.f32.mxu0 %vm589_vm1, %v564_v22 }
  0x4c   : > { %9151 = vmatmul.mubr.msk.f32.gmra.mxu0 %vm589_vm1, %v565_v23 }
  0x4d   : > { %9153 = vmatprep.mubr.msk.f32.mxu0 %vm589_vm1, %v566_v24 }
  0x50   : > { %9154 = vmatmul.mubr.msk.f32.gmra.mxu0 %vm589_vm1, %v567_v25 }
  0x51   : > { %9156 = vmatprep.mubr.msk.f32.mxu0 %vm589_vm1, %v568_v26 }
  0x54   : > { %9157 = vmatmul.mubr.msk.f32.gmra.mxu0 %vm589_vm1, %v569_v27 }
  0x55   : > { %9159 = vmatprep.mubr.msk.f32.mxu0 %vm589_vm1, %v570_v28 }
  0x58   : > { %9160 = vmatmul.mubr.msk.f32.gmra.mxu0 %vm589_vm1, %v571_v29 }
  0x59   : > { %9162 = vmatprep.mubr.msk.f32.mxu0 %vm589_vm1, %v572_v30 }
  0x5c   : > { %9163 = vmatmul.mubr.msk.f32.gmra.mxu0 %vm589_vm1, %v573_v31 }
  0x5d   : > { %9165 = vmatprep.mubr.msk.f32.mxu0 %vm589_vm1, %v574_v32 }
  0x60   : > { %9166 = vmatmul.mubr.msk.f32.gmra.mxu0 %vm589_vm1, %v575_v33 }
  0x61   : > { %9168 = vmatprep.mubr.msk.f32.mxu0 %vm589_vm1, %v576_v34 }
  0x64   : > { %9169 = vmatmul.mubr.msk.f32.gmra.mxu0 %vm589_vm1, %v577_v35 }
  0xe8   : > { %v10132_v37 = vpop.f32.mrf.mxu0 }
  0xea   : > { %v10134_v38 = vpop.f32.mrf.mxu0 }
  0xec   : > { %v10136_v39 = vpop.f32.mrf.mxu0 }
  0xee   : > { %v10138_v40 = vpop.f32.mrf.mxu0 }
  0xf0   : > { %v10140_v41 = vpop.f32.mrf.mxu0 }
  0xf2   : > { %v10142_v42 = vpop.f32.mrf.mxu0 }
  0xf4   : > { %v10144_v43 = vpop.f32.mrf.mxu0 }
  0xf6   : > { %v10146_v44 = vpop.f32.mrf.mxu0 }
  0xf8   : > { %v9137_v45 = vpop.f32.mrf.mxu0 }
  0xf9   : > { %v802_v33 = vadd.f32 %v9137_v45, %v10163_v2 }
  0xfa   : > { %v796_v46 = vpop.f32.mrf.mxu0 }
  0xfc   : > { %v9140_v47 = vpop.f32.mrf.mxu0 }
  0xfd   : > { %v812_v21 = vadd.f32 %v9140_v47, %v10163_v2 }
  0xfe   : > { %v806_v48 = vpop.f32.mrf.mxu0 }
  0xff   : > { %v807_v27 = vadd.f32 %v10163_v2, %v806_v48  ;;  %v926_v34 = vmul.f32 0.2, %v812_v21 }
 0x100   : > { %v9143_v49 = vpop.f32.mrf.mxu0 }
 0x101   : > { %v822_v9 = vadd.f32 %v9143_v49, %v10163_v2  ;;  %v797_v49 = vadd.f32 %v10163_v2, %v796_v46 }
 0x102   : > { %v816_v50 = vpop.f32.mrf.mxu0 }
 0x103   : > { %v817_v15 = vadd.f32 %v10163_v2, %v816_v50  ;;  %v928_v22 = vmul.f32 0.2, %v822_v9  ;;  %v925_v50 = vmul.f32 0.2, %v807_v27 }
 0x104   : > { %v9146_v51 = vpop.f32.mrf.mxu0 }
 0x105   : > { %v832_v3 = vadd.f32 %v9146_v51, %v10163_v2  ;;  %v927_v28 = vmul.f32 0.2, %v817_v15  ;;  %v10192_v35 = vmax.f32 %v822_v9, %v928_v22 }
 0x106   : > { %v826_v52 = vpop.f32.mrf.mxu0 }
 0x107   : > { %v827_v5 = vadd.f32 %v10163_v2, %v826_v52  ;;  %v930_v10 = vmul.f32 0.2, %v832_v3  ;;  %v10200_v51 = vmax.f32 %v817_v15, %v927_v28 }
 0x108   : > { %v10148_v53 = vpop.f32.mrf.mxu0 }
 0x109   : > { %v929_v16 = vmul.f32 0.2, %v827_v5  ;;  %v10177_v23 = vmax.f32 %v832_v3, %v930_v10 }
 0x10a   : > { %v10150_v54 = vpop.f32.mrf.mxu0 }
 0x10b   : > { %v10184_v29 = vmax.f32 %v827_v5, %v929_v16  ;;  %v10218_v5 = vmax.f32 %v807_v27, %v925_v50 }
 0x10c   : > { %v10152_v55 = vpop.f32.mrf.mxu0 }
 0x10e   : > { %v10154_v56 = vpop.f32.mrf.mxu0 }
 0x110   : > { %v10156_v57 = vpop.f32.mrf.mxu0 }
 0x112   : > { %v10158_v58 = vpop.f32.mrf.mxu0 }
 0x114   : > { %v9158_v59 = vpop.f32.mrf.mxu0 }
 0x115   : > { %v872_v45 = vadd.f32 %v9158_v59, %v10163_v2  ;;  %v787_v59 = vadd.f32 %v10163_v2, %v10146_v44  ;;  %v857_v44 = vadd.f32 %v10163_v2, %v10158_v58  ;;  %v772_v58 = vadd.f32 %v10136_v39, %v10163_v2 }
 0x116   : > { %v866_v60 = vpop.f32.mrf.mxu0  ;;  %v842_v39 = vadd.f32 %v10148_v53, %v10163_v2  ;;  %v757_v53 = vadd.f32 %v10163_v2, %v10134_v38 }
 0x117   : > { %v867_v46 = vadd.f32 %v10163_v2, %v866_v60  ;;  %v782_v60 = vadd.f32 %v10140_v41, %v10163_v2  ;;  %v852_v41 = vadd.f32 %v10152_v55, %v10163_v2  ;;  %v767_v55 = vadd.f32 %v10163_v2, %v10138_v40 }
 0x118   : > { %v9161_v61 = vpop.f32.mrf.mxu0  ;;  %v918_v27 = vmul.f32 0.2, %v772_v58  ;;  %v837_v40 = vadd.f32 %v10163_v2, %v10150_v54  ;;  %v915_v38 = vmul.f32 0.2, %v757_v53 }
 0x119   : > { %v882_v30 = vadd.f32 %v9161_v61, %v10163_v2  ;;  %v937_v10 = vmul.f32 0.2, %v867_v46  ;;  %v920_v16 = vmul.f32 0.2, %v782_v60 }
 0x11a   : > { %v876_v62 = vpop.f32.mrf.mxu0  ;;  %v10284_v54 = vmax.f32 %v772_v58, %v918_v27  ;;  %v993_v58 = vld [vmem:[%s12025_s3 + $0x70] sm:$0xff]  ;;  %v7866_v27 = vld [vmem:[%s12025_s3 + $0xc8] sm:$0xff] }
 0x11b   : > { %v877_v36 = vadd.f32 %v10163_v2, %v876_v62  ;;  %v940_v52 = vmul.f32 0.2, %v882_v30  ;;  %v792_v62 = vadd.f32 %v10144_v43, %v10163_v2  ;;  %v862_v43 = vadd.f32 %v10156_v57, %v10163_v2 }
 0x11c   : > { %v9164_v63 = vpop.f32.mrf.mxu0  ;;  %v777_v57 = vadd.f32 %v10163_v2, %v10142_v42  ;;  %v847_v42 = vadd.f32 %v10163_v2, %v10154_v56  ;;  %v762_v56 = vadd.f32 %v10132_v37, %v10163_v2  ;;  %v10268_v28 = vmax.f32 %v782_v60, %v920_v16  ;;  %v985_v60 = vld [vmem:[%s12025_s3 + $0x30] sm:$0xff]  ;;  %v7858_v16 = vld [vmem:[%s12025_s3 + $0x88] sm:$0xff] }
 0x11d   : > { %v892_v17 = vadd.f32 %v9164_v63, %v10163_v2  ;;  %v924_v63 = vmul.f32 0.2, %v802_v33  ;;  %v932_v37 = vmul.f32 0.2, %v842_v39 }
 0x11e   : > { %v886_v0 = vpop.f32.mrf.mxu0 }
 0x11f   : > { %v887_v24 = vadd.f32 %v10163_v2, %v886_v0  ;;  %v942_v31 = vmul.f32 0.2, %v892_v17  ;;  %v10209_v0 = vmax.f32 %v812_v21, %v926_v34  ;;  %v10228_v9 = vmax.f32 %v802_v33, %v924_v63 }
 0x120   : > { %v9167_v1 = vpop.f32.mrf.mxu0  ;;  %v919_v21 = vmul.f32 0.2, %v777_v57  ;;  %v917_v33 = vmul.f32 0.2, %v767_v55  ;;  %v10302_v63 = vmax.f32 %v757_v53, %v915_v38  ;;  %v7867_v53 = vld [vmem:[%s12025_s3 + $0xd0] sm:$0xff]  ;;  %v7893_v38 = vld [vmem:[%s12025_s3 + $0x108] sm:$0xff] }
 0x121   : > { %v902_v7 = vadd.f32 %v9167_v1, %v10163_v2  ;;  %v941_v47 = vmul.f32 0.2, %v887_v24  ;;  %v10204_v61 = vmax.f32 %v892_v17, %v942_v31  ;;  %v939_v1 = vmul.f32 0.2, %v877_v36 }
 0x122   : > { %v896_v4 = vpop.f32.mrf.mxu0  ;;  %v10278_v34 = vmax.f32 %v777_v57, %v919_v21  ;;  %v989_v57 = vld [vmem:[%s12025_s3 + $0x50] sm:$0xff]  ;;  %v7862_v21 = vld [vmem:[%s12025_s3 + $0xa8] sm:$0xff] }
 0x123   : > { %v897_v12 = vadd.f32 %v10163_v2, %v896_v4  ;;  %v944_v18 = vmul.f32 0.2, %v902_v7  ;;  %v10213_v3 = vmax.f32 %v887_v24, %v941_v47  ;;  %v923_v4 = vmul.f32 0.2, %v797_v49 }
 0x124   : > { %v9170_v6 = vpop.f32.mrf.mxu0  ;;  %v934_v24 = vmul.f32 0.2, %v852_v41  ;;  %v916_v47 = vmul.f32 0.2, %v762_v56 }
 0x125   : > { %v912_v8 = vadd.f32 %v9170_v6, %v10163_v2  ;;  %v943_v25 = vmul.f32 0.2, %v897_v12  ;;  %v10188_v32 = vmax.f32 %v902_v7, %v944_v18  ;;  %v938_v6 = vmul.f32 0.2, %v872_v45 }
 0x126   : > { %v906_v11 = vpop.f32.mrf.mxu0  ;;  %v10223_v7 = vmax.f32 %v882_v30, %v940_v52  ;;  %v935_v18 = vmul.f32 0.2, %v857_v44  ;;  %v933_v30 = vmul.f32 0.2, %v847_v42  ;;  %v10296_v52 = vmax.f32 %v762_v56, %v916_v47  ;;  %v7863_v56 = vld [vmem:[%s12025_s3 + $0xb0] sm:$0xff]  ;;  %v7872_v47 = vld [vmem:[%s12025_s3 + $0xf8] sm:$0xff] }
 0x127   : > { %v946_v13 = vmul.f32 0.2, %v912_v8  ;;  %v907_v14 = vadd.f32 %v10163_v2, %v906_v11  ;;  %v10196_v48 = vmax.f32 %v897_v12, %v943_v25  ;;  %v10233_v11 = vmax.f32 %v877_v36, %v939_v1  ;;  %v982_v1 = vld [vmem:[%s12025_s3 + $0x18] sm:$0xff] }
 0x128   : > { %v921_v12 = vmul.f32 0.2, %v787_v59  ;;  %v10243_v15 = vmax.f32 %v872_v45, %v938_v6  ;;  %v10273_v31 = vmax.f32 %v857_v44, %v935_v18  ;;  %v10281_v36 = vmax.f32 %v852_v41, %v934_v24  ;;  %v986_v6 = vld [vmem:[%s12025_s3 + $0x38] sm:$0xff]  ;;  %v987_v44 = vld [vmem:[%s12025_s3 + $0x40] sm:$0xff] }
 0x129   : > { %v10174_v19 = vmax.f32 %v912_v8, %v946_v13  ;;  %v945_v20 = vmul.f32 0.2, %v907_v14  ;;  %v922_v8 = vmul.f32 0.2, %v792_v62  ;;  %v10238_v13 = vmax.f32 %v797_v49, %v923_v4  ;;  %v984_v4 = vld [vmem:[%s12025_s3 + $0x28] sm:$0xff]  ;;  %v991_v41 = vld [vmem:[%s12025_s3 + $0x60] sm:$0xff] }
 0x12a   : > { %v10258_v22 = vmax.f32 %v787_v59, %v921_v12  ;;  %v931_v49 = vmul.f32 0.2, %v837_v40  ;;  %v10287_v50 = vmax.f32 %v847_v42, %v933_v30  ;;  %v10290_v2 = vmax.f32 %v767_v55, %v917_v33  ;;  %v981_v59 = vld [vmem:[%s12025_s3 + $0x10] sm:$0xff]  ;;  %v992_v12 = vld [vmem:[%s12025_s3 + $0x68] sm:$0xff]  ;;  %v7857_v42 = vld [vmem:[%s12025_s3 + $0x80] sm:$0xff] }
 0x12b   : > { %v10180_v26 = vmax.f32 %v907_v14, %v945_v20  ;;  %8287 = vmatprep.subr.mxu1 %v10174_v19  ;;  %v936_v14 = vmul.f32 0.2, %v862_v43  ;;  %v10248_v17 = vmax.f32 %v792_v62, %v922_v8  ;;  %v10253_v20 = vmax.f32 %v867_v46, %v937_v10  ;;  %v979_v46 = vld [vmem:[%s12025_s3] sm:$0xff]  ;;  %v988_v8 = vld [vmem:[%s12025_s3 + $0x48] sm:$0xff]  ;;  %v990_v10 = vld [vmem:[%s12025_s3 + $0x58] sm:$0xff] }
 0x12c   : > { %8288 = vmatpush3.msra.mxu1 %v10177_v23  ;;  %v10293_v45 = vmax.f32 %v842_v39, %v932_v37  ;;  %v10299_v62 = vmax.f32 %v837_v40, %v931_v49  ;;  %v7860_v18 = vld [vmem:[%s12025_s3 + $0x98] sm:$0xff]  ;;  %v7859_v55 = vld [vmem:[%s12025_s3 + $0x90] sm:$0xff]  ;;  %v7861_v39 = vld [vmem:[%s12025_s3 + $0xa0] sm:$0xff] }
 0x12d   : > { %8289 = vmatprep.subr.mxu1 %v10180_v26  ;;  %v10263_v25 = vmax.f32 %v862_v43, %v936_v14  ;;  %v983_v43 = vld [vmem:[%s12025_s3 + $0x20] sm:$0xff]  ;;  %v994_v14 = vld [vmem:[%s12025_s3 + $0x78] sm:$0xff]  ;;  %v7870_v33 = vld [vmem:[%s12025_s3 + $0xe8] sm:$0xff] }
 0x12e   : > { %8290 = vmatpush3.msra.mxu1 %v10184_v29  ;;  %v7864_v24 = vld [vmem:[%s12025_s3 + $0xb8] sm:$0xff]  ;;  %v7865_v40 = vld [vmem:[%s12025_s3 + $0xc0] sm:$0xff]  ;;  %v7871_v49 = vld [vmem:[%s12025_s3 + $0xf0] sm:$0xff] }
 0x12f   : > { %8291 = vmatprep.subr.mxu1 %v10188_v32  ;;  %v7868_v30 = vld [vmem:[%s12025_s3 + $0xd8] sm:$0xff]  ;;  %v7869_v37 = vld [vmem:[%s12025_s3 + $0xe0] sm:$0xff] }
 0x130   : > { %8292 = vmatpush3.msra.mxu1 %v10192_v35 }
 0x131   : > { %8293 = vmatprep.subr.mxu1 %v10196_v48 }
 0x132   : > { %8294 = vmatpush3.msra.mxu1 %v10200_v51 }
 0x133   : > { %8295 = vmatprep.subr.mxu1 %v10204_v61 }
 0x134   : > { %8296 = vmatpush3.msra.mxu1 %v10209_v0 }
 0x135   : > { %8297 = vmatprep.subr.mxu1 %v10213_v3 }
 0x136   : > { %8298 = vmatpush3.msra.mxu1 %v10218_v5 }
 0x137   : > { %8299 = vmatprep.subr.mxu1 %v10223_v7 }
 0x138   : > { %8300 = vmatpush3.msra.mxu1 %v10228_v9 }
 0x139   : > { %8301 = vmatprep.subr.mxu1 %v10233_v11 }
 0x13a   : > { %8302 = vmatpush3.msra.mxu1 %v10238_v13 }
 0x13b   : > { %8303 = vmatprep.subr.mxu1 %v10243_v15 }
 0x13c   : > { %8304 = vmatpush3.msra.mxu1 %v10248_v17 }
 0x13d   : > { %8305 = vmatprep.subr.mxu1 %v10253_v20 }
 0x13e   : > { %8306 = vmatpush3.msra.mxu1 %v10258_v22 }
 0x13f   : > { %8307 = vmatprep.subr.mxu1 %v10263_v25 }
 0x140   : > { %8308 = vmatpush3.msra.mxu1 %v10268_v28 }
 0x141   : > { %8309 = vmatprep.subr.mxu1 %v10273_v31 }
 0x142   : > { %8310 = vmatpush3.msra.mxu1 %v10278_v34 }
 0x143   : > { %8311 = vmatprep.subr.mxu1 %v10281_v36 }
 0x144   : > { %8312 = vmatpush3.msra.mxu1 %v10284_v54 }
 0x145   : > { %8313 = vmatprep.subr.mxu1 %v10287_v50 }
 0x146   : > { %8314 = vmatpush3.msra.mxu1 %v10290_v2 }
 0x147   : > { %8315 = vmatprep.subr.mxu1 %v10293_v45 }
 0x148   : > { %8316 = vmatpush3.msra.mxu1 %v10296_v52 }
 0x149   : > { %8317 = vmatprep.subr.mxu1 %v10299_v62 }
 0x14a   : > { %8318 = vmatpush3.msra.mxu1 %v10302_v63 }
 0x14b   : > { %1060 = vmatmul.mubr.f32.vlgmr.msra.gmra.mxu1 %v979_v46  ;;  %8343 = vmatprep.subr.mxu1 %v10174_v19  ;;  %v7892_v46 = vld [vmem:[%s12025_s3 + $0x100] sm:$0xff] }
 0x14c   : > { %8344 = vmatpush3.msra.mxu1 %v10177_v23  ;;  %1064 = vmatprep.mubr.f32.mxu1 %v982_v1  ;;  %v7895_v1 = vld [vmem:[%s12025_s3 + $0x118] sm:$0xff] }
 0x14d   : > { %8345 = vmatprep.subr.mxu1 %v10180_v26 }
 0x14e   : > { %8346 = vmatpush3.msra.mxu1 %v10184_v29 }
 0x14f   : > { %1065 = vmatmul.mubr.f32.gmra.mxu1 %v981_v59  ;;  %8347 = vmatprep.subr.mxu1 %v10188_v32  ;;  %v7894_v59 = vld [vmem:[%s12025_s3 + $0x110] sm:$0xff] }
 0x150   : > { %8348 = vmatpush3.msra.mxu1 %v10192_v35  ;;  %1069 = vmatprep.mubr.f32.mxu1 %v984_v4  ;;  %v7897_v4 = vld [vmem:[%s12025_s3 + $0x128] sm:$0xff] }
 0x151   : > { %8349 = vmatprep.subr.mxu1 %v10196_v48 }
 0x152   : > { %8350 = vmatpush3.msra.mxu1 %v10200_v51 }
 0x153   : > { %1070 = vmatmul.mubr.f32.gmra.mxu1 %v983_v43  ;;  %8351 = vmatprep.subr.mxu1 %v10204_v61  ;;  %v7896_v43 = vld [vmem:[%s12025_s3 + $0x120] sm:$0xff] }
 0x154   : > { %8352 = vmatpush3.msra.mxu1 %v10209_v0  ;;  %1074 = vmatprep.mubr.f32.mxu1 %v986_v6  ;;  %v7899_v6 = vld [vmem:[%s12025_s3 + $0x138] sm:$0xff] }
 0x155   : > { %8353 = vmatprep.subr.mxu1 %v10213_v3 }
 0x156   : > { %8354 = vmatpush3.msra.mxu1 %v10218_v5 }
 0x157   : > { %1075 = vmatmul.mubr.f32.gmra.mxu1 %v985_v60  ;;  %8355 = vmatprep.subr.mxu1 %v10223_v7  ;;  %v7873_v60 = vld [vmem:[%s12026_s4 + $0x4] sm:$0xf] }
 0x158   : > { %8356 = vmatpush3.msra.mxu1 %v10228_v9  ;;  %1079 = vmatprep.mubr.f32.mxu1 %v988_v8  ;;  %v7898_v8 = vld [vmem:[%s12025_s3 + $0x130] sm:$0xff] }
 0x159   : > { %8357 = vmatprep.subr.mxu1 %v10233_v11  ;;  %9171 = vmatprep.subr.msk.mxu0 %vm1250_vm2, %v7873_v60 }
 0x15a   : > { %8358 = vmatpush3.msra.mxu1 %v10238_v13  ;;  %9172 = vmatpush3.msk.msra.mxu0 %vm1250_vm2, %v7873_v60 }
 0x15b   : > { %1080 = vmatmul.mubr.f32.gmra.mxu1 %v987_v44  ;;  %8359 = vmatprep.subr.mxu1 %v10243_v15  ;;  %v7901_v44 = vld [vmem:[%s12025_s3 + $0x148] sm:$0xff] }
 0x15c   : > { %8360 = vmatpush3.msra.mxu1 %v10248_v17  ;;  %1084 = vmatprep.mubr.f32.mxu1 %v990_v10  ;;  %v7900_v10 = vld [vmem:[%s12025_s3 + $0x140] sm:$0xff] }
 0x15d   : > { %8361 = vmatprep.subr.mxu1 %v10253_v20 }
 0x15e   : > { %8362 = vmatpush3.msra.mxu1 %v10258_v22 }
 0x15f   : > { %1085 = vmatmul.mubr.f32.gmra.mxu1 %v989_v57  ;;  %8363 = vmatprep.subr.mxu1 %v10263_v25  ;;  %v7903_v57 = vld [vmem:[%s12025_s3 + $0x158] sm:$0xff] }
 0x160   : > { %8364 = vmatpush3.msra.mxu1 %v10268_v28  ;;  %1089 = vmatprep.mubr.f32.mxu1 %v992_v12  ;;  %v7902_v12 = vld [vmem:[%s12025_s3 + $0x150] sm:$0xff] }
 0x161   : > { %8365 = vmatprep.subr.mxu1 %v10273_v31 }
 0x162   : > { %8366 = vmatpush3.msra.mxu1 %v10278_v34 }
 0x163   : > { %1090 = vmatmul.mubr.f32.gmra.mxu1 %v991_v41  ;;  %8367 = vmatprep.subr.mxu1 %v10281_v36  ;;  %v7905_v41 = vld [vmem:[%s12025_s3 + $0x168] sm:$0xff] }
 0x164   : > { %8368 = vmatpush3.msra.mxu1 %v10284_v54  ;;  %1094 = vmatprep.mubr.f32.mxu1 %v994_v14  ;;  %v7904_v14 = vld [vmem:[%s12025_s3 + $0x160] sm:$0xff] }
 0x165   : > { %8369 = vmatprep.subr.mxu1 %v10287_v50 }
 0x166   : > { %8370 = vmatpush3.msra.mxu1 %v10290_v2 }
 0x167   : > { %1095 = vmatmul.mubr.f32.gmra.mxu1 %v993_v58  ;;  %8371 = vmatprep.subr.mxu1 %v10293_v45  ;;  %v7907_v58 = vld [vmem:[%s12025_s3 + $0x178] sm:$0xff] }
 0x168   : > { %8372 = vmatpush3.msra.mxu1 %v10296_v52  ;;  %1182 = vmatprep.mubr.f32.mxu1 %v7858_v16  ;;  %v7906_v16 = vld [vmem:[%s12025_s3 + $0x170] sm:$0xff] }
 0x169   : > { %8373 = vmatprep.subr.mxu1 %v10299_v62 }
 0x16a   : > { %8374 = vmatpush3.msra.mxu1 %v10302_v63 }
 0x16b   : > { %1183 = vmatmul.mubr.f32.vlgmr.msra.gmra.mxu1 %v7857_v42  ;;  %8417 = vmatprep.subr.mxu1 %v10174_v19  ;;  %v7919_v42 = vld [vmem:[%s12025_s3 + $0x188] sm:$0xff] }
 0x16c   : > { %8418 = vmatpush3.msra.mxu1 %v10177_v23  ;;  %1187 = vmatprep.mubr.f32.mxu1 %v7860_v18  ;;  %v7918_v18 = vld [vmem:[%s12025_s3 + $0x180] sm:$0xff] }
 0x16d   : > { %8419 = vmatprep.subr.mxu1 %v10180_v26 }
 0x16e   : > { %8420 = vmatpush3.msra.mxu1 %v10184_v29 }
 0x16f   : > { %1188 = vmatmul.mubr.f32.gmra.mxu1 %v7859_v55  ;;  %8421 = vmatprep.subr.mxu1 %v10188_v32  ;;  %v7921_v55 = vld [vmem:[%s12025_s3 + $0x198] sm:$0xff] }
 0x170   : > { %8422 = vmatpush3.msra.mxu1 %v10192_v35  ;;  %1192 = vmatprep.mubr.f32.mxu1 %v7862_v21  ;;  %v7920_v21 = vld [vmem:[%s12025_s3 + $0x190] sm:$0xff] }
 0x171   : > { %8423 = vmatprep.subr.mxu1 %v10196_v48 }
 0x172   : > { %8424 = vmatpush3.msra.mxu1 %v10200_v51 }
 0x173   : > { %1193 = vmatmul.mubr.f32.gmra.mxu1 %v7861_v39  ;;  %8425 = vmatprep.subr.mxu1 %v10204_v61  ;;  %v7923_v39 = vld [vmem:[%s12025_s3 + $0x1a8] sm:$0xff] }
 0x174   : > { %8426 = vmatpush3.msra.mxu1 %v10209_v0  ;;  %1197 = vmatprep.mubr.f32.mxu1 %v7864_v24  ;;  %v7922_v24 = vld [vmem:[%s12025_s3 + $0x1a0] sm:$0xff] }
 0x175   : > { %8427 = vmatprep.subr.mxu1 %v10213_v3 }
 0x176   : > { %8428 = vmatpush3.msra.mxu1 %v10218_v5 }
 0x177   : > { %1198 = vmatmul.mubr.f32.gmra.mxu1 %v7863_v56  ;;  %8429 = vmatprep.subr.mxu1 %v10223_v7  ;;  %v7925_v56 = vld [vmem:[%s12025_s3 + $0x1b8] sm:$0xff] }
 0x178   : > { %8430 = vmatpush3.msra.mxu1 %v10228_v9  ;;  %1202 = vmatprep.mubr.f32.mxu1 %v7866_v27  ;;  %v7924_v27 = vld [vmem:[%s12025_s3 + $0x1b0] sm:$0xff] }
 0x179   : > { %8431 = vmatprep.subr.mxu1 %v10233_v11 }
 0x17a   : > { %8432 = vmatpush3.msra.mxu1 %v10238_v13 }
 0x17b   : > { %1203 = vmatmul.mubr.f32.gmra.mxu1 %v7865_v40  ;;  %8433 = vmatprep.subr.mxu1 %v10243_v15  ;;  %v7927_v40 = vld [vmem:[%s12025_s3 + $0x1c8] sm:$0xff] }
 0x17c   : > { %8434 = vmatpush3.msra.mxu1 %v10248_v17  ;;  %1207 = vmatprep.mubr.f32.mxu1 %v7868_v30  ;;  %v7926_v30 = vld [vmem:[%s12025_s3 + $0x1c0] sm:$0xff] }
 0x17d   : > { %8435 = vmatprep.subr.mxu1 %v10253_v20 }
 0x17e   : > { %8436 = vmatpush3.msra.mxu1 %v10258_v22 }
 0x17f   : > { %1208 = vmatmul.mubr.f32.gmra.mxu1 %v7867_v53  ;;  %8437 = vmatprep.subr.mxu1 %v10263_v25  ;;  %v7929_v53 = vld [vmem:[%s12025_s3 + $0x1d8] sm:$0xff] }
 0x180   : > { %8438 = vmatpush3.msra.mxu1 %v10268_v28  ;;  %1212 = vmatprep.mubr.f32.mxu1 %v7870_v33  ;;  %v7928_v33 = vld [vmem:[%s12025_s3 + $0x1d0] sm:$0xff] }
 0x181   : > { %8439 = vmatprep.subr.mxu1 %v10273_v31 }
 0x182   : > { %8440 = vmatpush3.msra.mxu1 %v10278_v34 }
 0x183   : > { %1213 = vmatmul.mubr.f32.gmra.mxu1 %v7869_v37  ;;  %8441 = vmatprep.subr.mxu1 %v10281_v36  ;;  %v7931_v37 = vld [vmem:[%s12025_s3 + $0x1e8] sm:$0xff] }
 0x184   : > { %8442 = vmatpush3.msra.mxu1 %v10284_v54  ;;  %1217 = vmatprep.mubr.f32.mxu1 %v7872_v47  ;;  %v7930_v47 = vld [vmem:[%s12025_s3 + $0x1e0] sm:$0xff] }
 0x185   : > { %8443 = vmatprep.subr.mxu1 %v10287_v50 }
 0x186   : > { %8444 = vmatpush3.msra.mxu1 %v10290_v2 }
 0x187   : > { %1218 = vmatmul.mubr.f32.gmra.mxu1 %v7871_v49  ;;  %8445 = vmatprep.subr.mxu1 %v10293_v45  ;;  %v7933_v49 = vld [vmem:[%s12025_s3 + $0x1f8] sm:$0xff] }
 0x188   : > { %8446 = vmatpush3.msra.mxu1 %v10296_v52  ;;  %1572 = vmatprep.mubr.f32.mxu1 %v7893_v38  ;;  %v7932_v38 = vld [vmem:[%s12025_s3 + $0x1f0] sm:$0xff] }
 0x189   : > { %8447 = vmatprep.subr.mxu1 %v10299_v62 }
 0x18a   : > { %8448 = vmatpush3.msra.mxu1 %v10302_v63 }
 0x18b   : > { %1573 = vmatmul.mubr.f32.vlgmr.msra.gmra.mxu1 %v7892_v46  ;;  %8482 = vmatprep.subr.mxu1 %v10174_v19  ;;  %v1100_v46 = vld [vmem:[%s12026_s4] sm:$0xf] }
 0x18c   : > { %8483 = vmatpush3.msra.mxu1 %v10177_v23  ;;  %1577 = vmatprep.mubr.f32.mxu1 %v7895_v1 }
 0x18d   : > { %8484 = vmatprep.subr.mxu1 %v10180_v26  ;;  %9185 = vmatprep.subr.msk.mxu0 %vm1250_vm2, %v1100_v46 }
 0x18e   : > { %8485 = vmatpush3.msra.mxu1 %v10184_v29 }
 0x18f   : > { %1578 = vmatmul.mubr.f32.gmra.mxu1 %v7894_v59  ;;  %8486 = vmatprep.subr.mxu1 %v10188_v32 }
 0x190   : > { %8487 = vmatpush3.msra.mxu1 %v10192_v35  ;;  %1582 = vmatprep.mubr.f32.mxu1 %v7897_v4 }
 0x191   : > { %8488 = vmatprep.subr.mxu1 %v10196_v48 }
 0x192   : > { %8489 = vmatpush3.msra.mxu1 %v10200_v51 }
 0x193   : > { %1583 = vmatmul.mubr.f32.gmra.mxu1 %v7896_v43  ;;  %8490 = vmatprep.subr.mxu1 %v10204_v61 }
 0x194   : > { %8491 = vmatpush3.msra.mxu1 %v10209_v0  ;;  %1587 = vmatprep.mubr.f32.mxu1 %v7899_v6 }
 0x195   : > { %8492 = vmatprep.subr.mxu1 %v10213_v3 }
 0x196   : > { %8493 = vmatpush3.msra.mxu1 %v10218_v5 }
 0x197   : > { %1588 = vmatmul.mubr.f32.gmra.mxu1 %v7898_v8  ;;  %8494 = vmatprep.subr.mxu1 %v10223_v7 }
 0x198   : > { %8495 = vmatpush3.msra.mxu1 %v10228_v9  ;;  %1592 = vmatprep.mubr.f32.mxu1 %v7901_v44 }
 0x199   : > { %8496 = vmatprep.subr.mxu1 %v10233_v11 }
 0x19a   : > { %8497 = vmatpush3.msra.mxu1 %v10238_v13 }
 0x19b   : > { %1593 = vmatmul.mubr.f32.gmra.mxu1 %v7900_v10  ;;  %8498 = vmatprep.subr.mxu1 %v10243_v15 }
 0x19c   : > { %8499 = vmatpush3.msra.mxu1 %v10248_v17  ;;  %1597 = vmatprep.mubr.f32.mxu1 %v7903_v57 }
 0x19d   : > { %8500 = vmatprep.subr.mxu1 %v10253_v20 }
 0x19e   : > { %8501 = vmatpush3.msra.mxu1 %v10258_v22 }
 0x19f   : > { %1598 = vmatmul.mubr.f32.gmra.mxu1 %v7902_v12  ;;  %8502 = vmatprep.subr.mxu1 %v10263_v25 }
 0x1a0   : > { %8503 = vmatpush3.msra.mxu1 %v10268_v28  ;;  %1602 = vmatprep.mubr.f32.mxu1 %v7905_v41 }
 0x1a1   : > { %8504 = vmatprep.subr.mxu1 %v10273_v31 }
 0x1a2   : > { %8505 = vmatpush3.msra.mxu1 %v10278_v34 }
 0x1a3   : > { %1603 = vmatmul.mubr.f32.gmra.mxu1 %v7904_v14  ;;  %8506 = vmatprep.subr.mxu1 %v10281_v36 }
 0x1a4   : > { %8507 = vmatpush3.msra.mxu1 %v10284_v54  ;;  %1607 = vmatprep.mubr.f32.mxu1 %v7907_v58 }
 0x1a5   : > { %8508 = vmatprep.subr.mxu1 %v10287_v50 }
 0x1a6   : > { %8509 = vmatpush3.msra.mxu1 %v10290_v2 }
 0x1a7   : > { %1608 = vmatmul.mubr.f32.gmra.mxu1 %v7906_v16  ;;  %8510 = vmatprep.subr.mxu1 %v10293_v45 }
 0x1a8   : > { %8511 = vmatpush3.msra.mxu1 %v10296_v52  ;;  %1836 = vmatprep.mubr.f32.mxu1 %v7919_v42 }
 0x1a9   : > { %8512 = vmatprep.subr.mxu1 %v10299_v62 }
 0x1aa   : > { %8513 = vmatpush3.msra.mxu1 %v10302_v63 }
 0x1ab   : > { %1837 = vmatmul.mubr.f32.vlgmr.msra.gmra.mxu1 %v7918_v18 }
 0x1ac   : > { %1841 = vmatprep.mubr.f32.mxu1 %v7921_v55 }
 0x1af   : > { %1842 = vmatmul.mubr.f32.gmra.mxu1 %v7920_v21 }
 0x1b0   : > { %1846 = vmatprep.mubr.f32.mxu1 %v7923_v39 }
 0x1b3   : > { %1847 = vmatmul.mubr.f32.gmra.mxu1 %v7922_v24 }
 0x1b4   : > { %1851 = vmatprep.mubr.f32.mxu1 %v7925_v56 }
 0x1b7   : > { %1852 = vmatmul.mubr.f32.gmra.mxu1 %v7924_v27 }
 0x1b8   : > { %1856 = vmatprep.mubr.f32.mxu1 %v7927_v40  ;;  %v7908_v40 = vld [vmem:[%s12026_s4 + $0x8] sm:$0xf] }
 0x1bb   : > { %1857 = vmatmul.mubr.f32.gmra.mxu1 %v7926_v30 }
 0x1bc   : > { %1861 = vmatprep.mubr.f32.mxu1 %v7929_v53 }
 0x1bf   : > { %1862 = vmatmul.mubr.f32.gmra.mxu1 %v7928_v33 }
 0x1c0   : > { %1866 = vmatprep.mubr.f32.mxu1 %v7931_v37 }
 0x1c3   : > { %1867 = vmatmul.mubr.f32.gmra.mxu1 %v7930_v47 }
 0x1c4   : > { %1871 = vmatprep.mubr.f32.mxu1 %v7933_v49 }
 0x1c7   : > { %1872 = vmatmul.mubr.f32.gmra.mxu1 %v7932_v38 }
 0x20b   : > { %v8319_v1 = vpop.f32.mrf.mxu1 }
 0x20d   : > { %v8320_v59 = vpop.f32.mrf.mxu1 }
 0x20f   : > { %v8322_v4 = vpop.f32.mrf.mxu1 }
 0x211   : > { %v8323_v43 = vpop.f32.mrf.mxu1 }
 0x213   : > { %v8325_v6 = vpop.f32.mrf.mxu1 }
 0x215   : > { %v8326_v60 = vpop.f32.mrf.mxu1 }
 0x217   : > { %v8328_v8 = vpop.f32.mrf.mxu1 }
 0x219   : > { %v8329_v44 = vpop.f32.mrf.mxu1 }
 0x21b   : > { %v8331_v10 = vpop.f32.mrf.mxu1 }
 0x21d   : > { %v8332_v57 = vpop.f32.mrf.mxu1 }
 0x21f   : > { %v8334_v12 = vpop.f32.mrf.mxu1 }
 0x221   : > { %v8335_v41 = vpop.f32.mrf.mxu1 }
 0x223   : > { %v8337_v14 = vpop.f32.mrf.mxu1 }
 0x225   : > { %v8338_v58 = vpop.f32.mrf.mxu1 }
 0x227   : > { %v10601_v16 = vpop.f32.mrf.mxu1 }
 0x229   : > { %v8341_v42 = vpop.f32.mrf.mxu1 }
 0x22b   : > { %v8375_v18 = vpop.f32.mrf.mxu1 }
 0x22d   : > { %v8376_v55 = vpop.f32.mrf.mxu1 }
 0x22e   : > { %v8377_v21 = vadd.f32 %v8376_v55, %v8375_v18 }
 0x22f   : > { %v8378_v39 = vpop.f32.mrf.mxu1 }
 0x230   : > { %9173 = vmatprep.mubr.msk.f32.mxu0 %vm1225_vm3, %v8377_v21 }
 0x231   : > { %v8379_v24 = vpop.f32.mrf.mxu1 }
 0x232   : > { %v8380_v56 = vadd.f32 %v8379_v24, %v8378_v39 }
 0x233   : > { %v8381_v27 = vpop.f32.mrf.mxu1 }
 0x234   : > { %9174 = vmatmul.mubr.msk.f32.vlgmr.msra.gmra.mxu0 %vm1225_vm3, %v8380_v56 }
 0x235   : > { %v8382_v30 = vpop.f32.mrf.mxu1  ;;  %9186 = vmatpush3.msk.msra.mxu0 %vm1250_vm2, %v1100_v46 }
 0x236   : > { %v8383_v53 = vadd.f32 %v8382_v30, %v8381_v27  ;;  %9199 = vmatprep.subr.msk.mxu0 %vm1250_vm2, %v7908_v40 }
 0x237   : > { %v8384_v33 = vpop.f32.mrf.mxu1 }
 0x238   : > { %9176 = vmatprep.mubr.msk.f32.mxu0 %vm1225_vm3, %v8383_v53 }
 0x239   : > { %v8385_v37 = vpop.f32.mrf.mxu1 }
 0x23a   : > { %v8386_v47 = vadd.f32 %v8385_v37, %v8384_v33  ;;  %v8321_v33 = vadd.f32 %v8320_v59, %v8319_v1  ;;  %v8330_v1 = vadd.f32 %v8329_v44, %v8328_v8  ;;  %v8333_v59 = vadd.f32 %v8332_v57, %v8331_v10 }
 0x23b   : > { %v8387_v49 = vpop.f32.mrf.mxu1 }
 0x23c   : > { %9177 = vmatmul.mubr.msk.f32.gmra.mxu0 %vm1225_vm3, %v8386_v47 }
 0x23d   : > { %v8388_v38 = vpop.f32.mrf.mxu1 }
 0x23e   : > { %v8389_v18 = vadd.f32 %v8388_v38, %v8387_v49  ;;  %v8324_v49 = vadd.f32 %v8323_v43, %v8322_v4  ;;  %v8327_v38 = vadd.f32 %v8326_v60, %v8325_v6  ;;  %v8336_v43 = vadd.f32 %v8335_v41, %v8334_v12 }
 0x23f   : > { %v8390_v55 = vpop.f32.mrf.mxu1  ;;  %v8339_v6 = vadd.f32 %v8338_v58, %v8337_v14 }
 0x240   : > { %9179 = vmatprep.mubr.msk.f32.mxu0 %vm1225_vm3, %v8389_v18 }
 0x241   : > { %v8391_v21 = vpop.f32.mrf.mxu1 }
 0x242   : > { %v8392_v39 = vadd.f32 %v8391_v21, %v8390_v55  ;;  %v7934_v55 = vld [vmem:[%s12026_s4 + $0xc] sm:$0xf] }
 0x243   : > { %v8393_v24 = vpop.f32.mrf.mxu1 }
 0x244   : > { %9180 = vmatmul.mubr.msk.f32.gmra.mxu0 %vm1225_vm3, %v8392_v39 }
 0x245   : > { %v8394_v46 = vpop.f32.mrf.mxu1 }
 0x246   : > { %v8395_v56 = vadd.f32 %v8394_v46, %v8393_v24 }
 0x247   : > { %v8396_v27 = vpop.f32.mrf.mxu1 }
 0x248   : > { %9182 = vmatprep.mubr.msk.f32.mxu0 %vm1225_vm3, %v8395_v56 }
 0x249   : > { %v8397_v30 = vpop.f32.mrf.mxu1 }
 0x24a   : > { %v8398_v53 = vadd.f32 %v8397_v30, %v8396_v27 }
 0x24b   : > { %v8449_v37 = vpop.f32.mrf.mxu1 }
 0x24c   : > { %9183 = vmatmul.mubr.msk.f32.gmra.mxu0 %vm1225_vm3, %v8398_v53 }
 0x24d   : > { %9187 = vmatprep.mubr.msk.f32.mxu0 %vm1225_vm3, %v8321_v33  ;;  %v8450_v47 = vpop.f32.mrf.mxu1 }
 0x24e   : > { %v8451_v8 = vadd.f32 %v8450_v47, %v8449_v37 }
 0x24f   : > { %v8452_v18 = vpop.f32.mrf.mxu1 }
 0x250   : > { %9188 = vmatmul.mubr.msk.f32.vlgmr.msra.gmra.mxu0 %vm1225_vm3, %v8324_v49 }
 0x251   : > { %9190 = vmatprep.mubr.msk.f32.mxu0 %vm1225_vm3, %v8327_v38  ;;  %v8453_v21 = vpop.f32.mrf.mxu1  ;;  %9200 = vmatpush3.msk.msra.mxu0 %vm1250_vm2, %v7908_v40  ;;  %v8342_v40 = vadd.f32 %v8341_v42, %v10601_v16 }
 0x252   : > { %9213 = vmatprep.subr.msk.mxu0 %vm1250_vm2, %v7934_v55  ;;  %v8454_v57 = vadd.f32 %v8453_v21, %v8452_v18 }
 0x253   : > { %v8455_v39 = vpop.f32.mrf.mxu1 }
 0x254   : > { %9191 = vmatmul.mubr.msk.f32.gmra.mxu0 %vm1225_vm3, %v8330_v1 }
 0x255   : > { %9193 = vmatprep.mubr.msk.f32.mxu0 %vm1225_vm3, %v8333_v59  ;;  %v8456_v4 = vpop.f32.mrf.mxu1 }
 0x256   : > { %v8457_v46 = vadd.f32 %v8456_v4, %v8455_v39 }
 0x257   : > { %v8458_v60 = vpop.f32.mrf.mxu1 }
 0x258   : > { %9194 = vmatmul.mubr.msk.f32.gmra.mxu0 %vm1225_vm3, %v8336_v43 }
 0x259   : > { %9196 = vmatprep.mubr.msk.f32.mxu0 %vm1225_vm3, %v8339_v6  ;;  %v8459_v24 = vpop.f32.mrf.mxu1 }
 0x25a   : > { %v8460_v41 = vadd.f32 %v8459_v24, %v8458_v60 }
 0x25b   : > { %v8461_v44 = vpop.f32.mrf.mxu1 }
 0x25c   : > { %9197 = vmatmul.mubr.msk.f32.gmra.mxu0 %vm1225_vm3, %v8342_v40 }
 0x25d   : > { %v8462_v10 = vpop.f32.mrf.mxu1  ;;  %9201 = vmatprep.mubr.msk.f32.mxu0 %vm1225_vm3, %v8451_v8 }
 0x25e   : > { %v8463_v14 = vadd.f32 %v8462_v10, %v8461_v44 }
 0x25f   : > { %v8464_v56 = vpop.f32.mrf.mxu1 }
 0x260   : > { %9202 = vmatmul.mubr.msk.f32.vlgmr.msra.gmra.mxu0 %vm1225_vm3, %v8454_v57 }
 0x261   : > { %9214 = vmatpush3.msk.msra.mxu0 %vm1250_vm2, %v7934_v55  ;;  %v8465_v12 = vpop.f32.mrf.mxu1  ;;  %9204 = vmatprep.mubr.msk.f32.mxu0 %vm1225_vm3, %v8457_v46 }
 0x262   : > { %8547 = vmatprep.subr.mxu0 %v10174_v19  ;;  %v8466_v42 = vadd.f32 %v8465_v12, %v8464_v56 }
 0x263   : > { %v8467_v58 = vpop.f32.mrf.mxu1 }
 0x264   : > { %9205 = vmatmul.mubr.msk.f32.gmra.mxu0 %vm1225_vm3, %v8460_v41 }
 0x265   : > { %v8468_v16 = vpop.f32.mrf.mxu1  ;;  %9207 = vmatprep.mubr.msk.f32.mxu0 %vm1225_vm3, %v8463_v14  ;;  %v7945_v14 = vld [vmem:[%s12025_s3 + $0x208] sm:$0xff] }
 0x266   : > { %v8469_v27 = vadd.f32 %v8468_v16, %v8467_v58  ;;  %v7944_v58 = vld [vmem:[%s12025_s3 + $0x200] sm:$0xff]  ;;  %v7947_v16 = vld [vmem:[%s12025_s3 + $0x218] sm:$0xff] }
 0x267   : > { %v8470_v30 = vpop.f32.mrf.mxu1 }
 0x268   : > { %9208 = vmatmul.mubr.msk.f32.gmra.mxu0 %vm1225_vm3, %v8466_v42  ;;  %v7946_v42 = vld [vmem:[%s12025_s3 + $0x210] sm:$0xff] }
 0x269   : > { %v8471_v53 = vpop.f32.mrf.mxu1  ;;  %9210 = vmatprep.mubr.msk.f32.mxu0 %vm1225_vm3, %v8469_v27  ;;  %v7949_v27 = vld [vmem:[%s12025_s3 + $0x228] sm:$0xff] }
 0x26a   : > { %v8472_v33 = vadd.f32 %v8471_v53, %v8470_v30  ;;  %v7948_v30 = vld [vmem:[%s12025_s3 + $0x220] sm:$0xff]  ;;  %v7951_v53 = vld [vmem:[%s12025_s3 + $0x238] sm:$0xff] }
 0x26b   : > { %v8514_v37 = vpop.f32.mrf.mxu1 }
 0x26c   : > { %9211 = vmatmul.mubr.msk.f32.gmra.mxu0 %vm1225_vm3, %v8472_v33  ;;  %v7950_v33 = vld [vmem:[%s12025_s3 + $0x230] sm:$0xff] }
 0x26d   : > { %v8515_v47 = vpop.f32.mrf.mxu1 }
 0x26e   : > { %v8516_v49 = vadd.f32 %v8515_v47, %v8514_v37  ;;  %v7953_v37 = vld [vmem:[%s12025_s3 + $0x248] sm:$0xff]  ;;  %v7952_v47 = vld [vmem:[%s12025_s3 + $0x240] sm:$0xff] }
 0x26f   : > { %v8517_v38 = vpop.f32.mrf.mxu1 }
 0x270   : > { %9215 = vmatprep.mubr.msk.f32.mxu0 %vm1225_vm3, %v8516_v49  ;;  %v7955_v49 = vld [vmem:[%s12025_s3 + $0x258] sm:$0xff] }
 0x271   : > { %v8518_v18 = vpop.f32.mrf.mxu1 }
 0x272   : > { %v8519_v55 = vadd.f32 %v8518_v18, %v8517_v38  ;;  %v7954_v38 = vld [vmem:[%s12025_s3 + $0x250] sm:$0xff]  ;;  %v7957_v18 = vld [vmem:[%s12025_s3 + $0x268] sm:$0xff] }
 0x273   : > { %v8520_v21 = vpop.f32.mrf.mxu1 }
 0x274   : > { %9216 = vmatmul.mubr.msk.f32.vlgmr.msra.gmra.mxu0 %vm1225_vm3, %v8519_v55  ;;  %v7956_v55 = vld [vmem:[%s12025_s3 + $0x260] sm:$0xff] }
 0x275   : > { %8548 = vmatpush3.msra.mxu0 %v10177_v23  ;;  %v8521_v1 = vpop.f32.mrf.mxu1 }
 0x276   : > { %v8522_v59 = vadd.f32 %v8521_v1, %v8520_v21  ;;  %8549 = vmatprep.subr.mxu0 %v10180_v26  ;;  %v7959_v21 = vld [vmem:[%s12025_s3 + $0x278] sm:$0xff]  ;;  %v7958_v1 = vld [vmem:[%s12025_s3 + $0x270] sm:$0xff] }
 0x277   : > { %8550 = vmatpush3.msra.mxu0 %v10184_v29  ;;  %v8523_v39 = vpop.f32.mrf.mxu1 }
 0x278   : > { %8551 = vmatprep.subr.mxu0 %v10188_v32  ;;  %9218 = vmatprep.mubr.msk.f32.mxu0 %vm1225_vm3, %v8522_v59  ;;  %v7971_v59 = vld [vmem:[%s12025_s3 + $0x288] sm:$0xff] }
 0x279   : > { %8552 = vmatpush3.msra.mxu0 %v10192_v35  ;;  %v8524_v4 = vpop.f32.mrf.mxu1 }
 0x27a   : > { %v8525_v43 = vadd.f32 %v8524_v4, %v8523_v39  ;;  %8553 = vmatprep.subr.mxu0 %v10196_v48  ;;  %v7970_v39 = vld [vmem:[%s12025_s3 + $0x280] sm:$0xff]  ;;  %v7973_v4 = vld [vmem:[%s12025_s3 + $0x298] sm:$0xff] }
 0x27b   : > { %8554 = vmatpush3.msra.mxu0 %v10200_v51  ;;  %v8526_v6 = vpop.f32.mrf.mxu1 }
 0x27c   : > { %8555 = vmatprep.subr.mxu0 %v10204_v61  ;;  %9219 = vmatmul.mubr.msk.f32.gmra.mxu0 %vm1225_vm3, %v8525_v43  ;;  %v7972_v43 = vld [vmem:[%s12025_s3 + $0x290] sm:$0xff] }
 0x27d   : > { %8556 = vmatpush3.msra.mxu0 %v10209_v0  ;;  %v8527_v60 = vpop.f32.mrf.mxu1 }
 0x27e   : > { %v8528_v24 = vadd.f32 %v8527_v60, %v8526_v6  ;;  %8557 = vmatprep.subr.mxu0 %v10213_v3  ;;  %v7975_v6 = vld [vmem:[%s12025_s3 + $0x2a8] sm:$0xff]  ;;  %v7974_v60 = vld [vmem:[%s12025_s3 + $0x2a0] sm:$0xff] }
 0x27f   : > { %8558 = vmatpush3.msra.mxu0 %v10218_v5  ;;  %v8529_v40 = vpop.f32.mrf.mxu1 }
 0x280   : > { %8559 = vmatprep.subr.mxu0 %v10223_v7  ;;  %9221 = vmatprep.mubr.msk.f32.mxu0 %vm1225_vm3, %v8528_v24  ;;  %v7977_v24 = vld [vmem:[%s12025_s3 + $0x2b8] sm:$0xff] }
 0x281   : > { %8560 = vmatpush3.msra.mxu0 %v10228_v9  ;;  %v8530_v8 = vpop.f32.mrf.mxu1 }
 0x282   : > { %v8531_v44 = vadd.f32 %v8530_v8, %v8529_v40  ;;  %8561 = vmatprep.subr.mxu0 %v10233_v11  ;;  %v7976_v40 = vld [vmem:[%s12025_s3 + $0x2b0] sm:$0xff]  ;;  %v7979_v8 = vld [vmem:[%s12025_s3 + $0x2c8] sm:$0xff] }
 0x283   : > { %8562 = vmatpush3.msra.mxu0 %v10238_v13  ;;  %v8532_v10 = vpop.f32.mrf.mxu1 }
 0x284   : > { %8563 = vmatprep.subr.mxu0 %v10243_v15  ;;  %9222 = vmatmul.mubr.msk.f32.gmra.mxu0 %vm1225_vm3, %v8531_v44  ;;  %v7978_v44 = vld [vmem:[%s12025_s3 + $0x2c0] sm:$0xff] }
 0x285   : > { %8564 = vmatpush3.msra.mxu0 %v10248_v17  ;;  %v8533_v57 = vpop.f32.mrf.mxu1 }
 0x286   : > { %v8534_v46 = vadd.f32 %v8533_v57, %v8532_v10  ;;  %8565 = vmatprep.subr.mxu0 %v10253_v20  ;;  %v7981_v10 = vld [vmem:[%s12025_s3 + $0x2d8] sm:$0xff]  ;;  %v7980_v57 = vld [vmem:[%s12025_s3 + $0x2d0] sm:$0xff] }
 0x287   : > { %8566 = vmatpush3.msra.mxu0 %v10258_v22  ;;  %v8535_v56 = vpop.f32.mrf.mxu1 }
 0x288   : > { %8567 = vmatprep.subr.mxu0 %v10263_v25  ;;  %9224 = vmatprep.mubr.msk.f32.mxu0 %vm1225_vm3, %v8534_v46  ;;  %v7983_v46 = vld [vmem:[%s12025_s3 + $0x2e8] sm:$0xff] }
 0x289   : > { %8568 = vmatpush3.msra.mxu0 %v10268_v28  ;;  %v8536_v12 = vpop.f32.mrf.mxu1 }
 0x28a   : > { %v8537_v41 = vadd.f32 %v8536_v12, %v8535_v56  ;;  %8569 = vmatprep.subr.mxu0 %v10273_v31  ;;  %v7982_v56 = vld [vmem:[%s12025_s3 + $0x2e0] sm:$0xff]  ;;  %v7985_v12 = vld [vmem:[%s12025_s3 + $0x2f8] sm:$0xff] }
 0x28b   : > { %8570 = vmatpush3.msra.mxu0 %v10278_v34 }
 0x28c   : > { %8571 = vmatprep.subr.mxu0 %v10281_v36  ;;  %9225 = vmatmul.mubr.msk.f32.gmra.mxu0 %vm1225_vm3, %v8537_v41  ;;  %v7984_v41 = vld [vmem:[%s12025_s3 + $0x2f0] sm:$0xff] }
 0x28d   : > { %8572 = vmatpush3.msra.mxu0 %v10284_v54  ;;  %2100 = vmatprep.mubr.f32.mxu0 %v7945_v14  ;;  %v7960_v14 = vld [vmem:[%s12026_s4 + $0x10] sm:$0xf] }
 0x28e   : > { %8573 = vmatprep.subr.mxu0 %v10287_v50  ;;  %9227 = vmatprep.subr.msk.mxu1 %vm1250_vm2, %v7960_v14 }
 0x28f   : > { %8574 = vmatpush3.msra.mxu0 %v10290_v2  ;;  %9228 = vmatpush3.msk.msra.mxu1 %vm1250_vm2, %v7960_v14 }
 0x290   : > { %8575 = vmatprep.subr.mxu0 %v10293_v45 }
 0x291   : > { %8576 = vmatpush3.msra.mxu0 %v10296_v52 }
 0x292   : > { %8577 = vmatprep.subr.mxu0 %v10299_v62 }
 0x293   : > { %8578 = vmatpush3.msra.mxu0 %v10302_v63 }
 0x294   : > { %2101 = vmatmul.mubr.f32.vlgmr.msra.gmra.mxu0 %v7944_v58  ;;  %8612 = vmatprep.subr.mxu0 %v10174_v19  ;;  %v7986_v58 = vld [vmem:[%s12026_s4 + $0x14] sm:$0xf] }
 0x295   : > { %8613 = vmatpush3.msra.mxu0 %v10177_v23  ;;  %2105 = vmatprep.mubr.f32.mxu0 %v7947_v16 }
 0x296   : > { %8614 = vmatprep.subr.mxu0 %v10180_v26  ;;  %9241 = vmatprep.subr.msk.mxu1 %vm1250_vm2, %v7986_v58 }
 0x297   : > { %8615 = vmatpush3.msra.mxu0 %v10184_v29 }
 0x298   : > { %2106 = vmatmul.mubr.f32.gmra.mxu0 %v7946_v42  ;;  %8616 = vmatprep.subr.mxu0 %v10188_v32 }
 0x299   : > { %8617 = vmatpush3.msra.mxu0 %v10192_v35  ;;  %2110 = vmatprep.mubr.f32.mxu0 %v7949_v27 }
 0x29a   : > { %8618 = vmatprep.subr.mxu0 %v10196_v48 }
 0x29b   : > { %8619 = vmatpush3.msra.mxu0 %v10200_v51 }
 0x29c   : > { %2111 = vmatmul.mubr.f32.gmra.mxu0 %v7948_v30  ;;  %8620 = vmatprep.subr.mxu0 %v10204_v61 }
 0x29d   : > { %8621 = vmatpush3.msra.mxu0 %v10209_v0  ;;  %2115 = vmatprep.mubr.f32.mxu0 %v7951_v53 }
 0x29e   : > { %8622 = vmatprep.subr.mxu0 %v10213_v3 }
 0x29f   : > { %8623 = vmatpush3.msra.mxu0 %v10218_v5 }
 0x2a0   : > { %2116 = vmatmul.mubr.f32.gmra.mxu0 %v7950_v33  ;;  %8624 = vmatprep.subr.mxu0 %v10223_v7 }
 0x2a1   : > { %8625 = vmatpush3.msra.mxu0 %v10228_v9  ;;  %2120 = vmatprep.mubr.f32.mxu0 %v7953_v37 }
 0x2a2   : > { %8626 = vmatprep.subr.mxu0 %v10233_v11 }
 0x2a3   : > { %8627 = vmatpush3.msra.mxu0 %v10238_v13 }
 0x2a4   : > { %2121 = vmatmul.mubr.f32.gmra.mxu0 %v7952_v47  ;;  %8628 = vmatprep.subr.mxu0 %v10243_v15 }
 0x2a5   : > { %8629 = vmatpush3.msra.mxu0 %v10248_v17  ;;  %2125 = vmatprep.mubr.f32.mxu0 %v7955_v49 }
 0x2a6   : > { %8630 = vmatprep.subr.mxu0 %v10253_v20 }
 0x2a7   : > { %8631 = vmatpush3.msra.mxu0 %v10258_v22 }
 0x2a8   : > { %2126 = vmatmul.mubr.f32.gmra.mxu0 %v7954_v38  ;;  %8632 = vmatprep.subr.mxu0 %v10263_v25 }
 0x2a9   : > { %8633 = vmatpush3.msra.mxu0 %v10268_v28  ;;  %2130 = vmatprep.mubr.f32.mxu0 %v7957_v18 }
 0x2aa   : > { %8634 = vmatprep.subr.mxu0 %v10273_v31 }
 0x2ab   : > { %8635 = vmatpush3.msra.mxu0 %v10278_v34 }
 0x2ac   : > { %2131 = vmatmul.mubr.f32.gmra.mxu0 %v7956_v55  ;;  %8636 = vmatprep.subr.mxu0 %v10281_v36 }
 0x2ad   : > { %8637 = vmatpush3.msra.mxu0 %v10284_v54  ;;  %2135 = vmatprep.mubr.f32.mxu0 %v7959_v21 }
 0x2ae   : > { %8638 = vmatprep.subr.mxu0 %v10287_v50 }
 0x2af   : > { %8639 = vmatpush3.msra.mxu0 %v10290_v2 }
 0x2b0   : > { %2136 = vmatmul.mubr.f32.gmra.mxu0 %v7958_v1  ;;  %8640 = vmatprep.subr.mxu0 %v10293_v45 }
 0x2b1   : > { %8641 = vmatpush3.msra.mxu0 %v10296_v52  ;;  %2364 = vmatprep.mubr.f32.mxu0 %v7971_v59 }
 0x2b2   : > { %8642 = vmatprep.subr.mxu0 %v10299_v62 }
 0x2b3   : > { %8643 = vmatpush3.msra.mxu0 %v10302_v63 }
 0x2b4   : > { %2365 = vmatmul.mubr.f32.vlgmr.msra.gmra.mxu0 %v7970_v39 }
 0x2b5   : > { %2369 = vmatprep.mubr.f32.mxu0 %v7973_v4 }
 0x2b8   : > { %2370 = vmatmul.mubr.f32.gmra.mxu0 %v7972_v43 }
 0x2b9   : > { %2374 = vmatprep.mubr.f32.mxu0 %v7975_v6 }
 0x2bc   : > { %2375 = vmatmul.mubr.f32.gmra.mxu0 %v7974_v60 }
 0x2bd   : > { %2379 = vmatprep.mubr.f32.mxu0 %v7977_v24 }
 0x2c0   : > { %2380 = vmatmul.mubr.f32.gmra.mxu0 %v7976_v40 }
 0x2c1   : > { %2384 = vmatprep.mubr.f32.mxu0 %v7979_v8 }
 0x2c4   : > { %2385 = vmatmul.mubr.f32.gmra.mxu0 %v7978_v44 }
 0x2c5   : > { %2389 = vmatprep.mubr.f32.mxu0 %v7981_v10 }
 0x2c8   : > { %2390 = vmatmul.mubr.f32.gmra.mxu0 %v7980_v57 }
 0x2c9   : > { %2394 = vmatprep.mubr.f32.mxu0 %v7983_v46 }
 0x2cc   : > { %2395 = vmatmul.mubr.f32.gmra.mxu0 %v7982_v56 }
 0x2cd   : > { %2399 = vmatprep.mubr.f32.mxu0 %v7985_v12 }
 0x2d0   : > { %2400 = vmatmul.mubr.f32.gmra.mxu0 %v7984_v41 }
 0x2f4   : > { %v9175_v16 = vpop.f32.mrf.mxu0 }
 0x2f6   : > { %v10816_v42 = vpop.f32.mrf.mxu0 }
 0x2f7   : > { %12059 = vst [vmem:[#allocation10_spill] sm:$0xff] %v10816_v42 }
 0x2fc   : > { %v9178_v27 = vpop.f32.mrf.mxu0 }
 0x2fe   : > { %v10818_v30 = vpop.f32.mrf.mxu0 }
 0x304   : > { %v9181_v53 = vpop.f32.mrf.mxu0 }
 0x306   : > { %v10820_v33 = vpop.f32.mrf.mxu0 }
 0x30c   : > { %v9184_v37 = vpop.f32.mrf.mxu0 }
 0x30e   : > { %v10822_v47 = vpop.f32.mrf.mxu0 }
 0x310   : > { %v9189_v49 = vpop.f32.mrf.mxu0 }
 0x311   : > { %v1458_v38 = vadd.f32 %v9189_v49, %v9175_v16 }
 0x312   : > { %v10824_v18 = vpop.f32.mrf.mxu0 }
 0x313   : > { %12060 = vst [vmem:[#allocation11_spill] sm:$0xff] %v10824_v18 }
 0x314   : > { %v9192_v55 = vpop.f32.mrf.mxu0 }
 0x315   : > { %v1468_v21 = vadd.f32 %v9192_v55, %v9178_v27 }
 0x316   : > { %v10826_v1 = vpop.f32.mrf.mxu0 }
 0x318   : > { %v9195_v59 = vpop.f32.mrf.mxu0 }
 0x319   : > { %v1478_v39 = vadd.f32 %v9195_v59, %v9181_v53 }
 0x31a   : > { %v10828_v4 = vpop.f32.mrf.mxu0 }
 0x31c   : > { %v9198_v43 = vpop.f32.mrf.mxu0 }
 0x31d   : > { %v1488_v6 = vadd.f32 %v9198_v43, %v9184_v37 }
 0x31e   : > { %v10830_v60 = vpop.f32.mrf.mxu0 }
 0x320   : > { %v9203_v24 = vpop.f32.mrf.mxu0 }
 0x321   : > { %v1748_v40 = vadd.f32 %v9203_v24, %v1458_v38 }
 0x322   : > { %v10832_v8 = vpop.f32.mrf.mxu0 }
 0x323   : > { %12061 = vst [vmem:[#allocation12_spill] sm:$0xff] %v10832_v8 }
 0x324   : > { %v9206_v44 = vpop.f32.mrf.mxu0 }
 0x325   : > { %v1750_v10 = vadd.f32 %v9206_v44, %v1468_v21 }
 0x326   : > { %v10834_v57 = vpop.f32.mrf.mxu0 }
 0x328   : > { %v9209_v46 = vpop.f32.mrf.mxu0 }
 0x329   : > { %v1752_v56 = vadd.f32 %v9209_v46, %v1478_v39 }
 0x32a   : > { %v10836_v12 = vpop.f32.mrf.mxu0 }
 0x32c   : > { %v9212_v41 = vpop.f32.mrf.mxu0 }
 0x32d   : > { %v1754_v14 = vadd.f32 %v9212_v41, %v1488_v6 }
 0x32e   : > { %v10838_v16 = vpop.f32.mrf.mxu0 }
 0x334   : > { %v9217_v27 = vpop.f32.mrf.mxu0 }
 0x335   : > { %v10840_v53 = vadd.f32 %v9217_v27, %v1748_v40 }
 0x336   : > { %v10842_v37 = vpop.f32.mrf.mxu0 }
 0x337   : > { %12062 = vst [vmem:[#allocation13_spill] sm:$0xff] %v10842_v37 }
 0x33c   : > { %v9220_v49 = vpop.f32.mrf.mxu0 }
 0x33d   : > { %v10844_v38 = vadd.f32 %v9220_v49, %v1750_v10 }
 0x33e   : > { %v10846_v55 = vpop.f32.mrf.mxu0 }
 0x344   : > { %v9223_v21 = vpop.f32.mrf.mxu0 }
 0x345   : > { %v10848_v59 = vadd.f32 %v9223_v21, %v1752_v56 }
 0x346   : > { %v10850_v39 = vpop.f32.mrf.mxu0 }
 0x34c   : > { %v9226_v43 = vpop.f32.mrf.mxu0 }
 0x34d   : > { %v10852_v24 = vadd.f32 %v9226_v43, %v1754_v14 }
 0x34e   : > { %v10854_v6 = vpop.f32.mrf.mxu0 }
 0x354   : > { %v8579_v44 = vpop.f32.mrf.mxu0 }
 0x356   : > { %v8580_v40 = vpop.f32.mrf.mxu0 }
 0x357   : > { %v8581_v46 = vadd.f32 %v8580_v40, %v8579_v44 }
 0x358   : > { %v8582_v41 = vpop.f32.mrf.mxu0 }
 0x359   : > { %9229 = vmatprep.mubr.msk.f32.mxu1 %vm1225_vm3, %v8581_v46 }
 0x35a   : > { %v8583_v10 = vpop.f32.mrf.mxu0 }
 0x35b   : > { %v8584_v27 = vadd.f32 %v8583_v10, %v8582_v41 }
 0x35c   : > { %v8585_v49 = vpop.f32.mrf.mxu0 }
 0x35d   : > { %9230 = vmatmul.mubr.msk.f32.vlgmr.msra.gmra.mxu1 %vm1225_vm3, %v8584_v27 }
 0x35e   : > { %9242 = vmatpush3.msk.msra.mxu1 %vm1250_vm2, %v7986_v58  ;;  %v8586_v56 = vpop.f32.mrf.mxu0 }
 0x35f   : > { %v8587_v21 = vadd.f32 %v8586_v56, %v8585_v49  ;;  %8677 = vmatprep.subr.mxu1 %v10174_v19 }
 0x360   : > { %v8588_v14 = vpop.f32.mrf.mxu0 }
 0x361   : > { %9232 = vmatprep.mubr.msk.f32.mxu1 %vm1225_vm3, %v8587_v21 }
 0x362   : > { %v8589_v43 = vpop.f32.mrf.mxu0 }
 0x363   : > { %v8590_v37 = vadd.f32 %v8589_v43, %v8588_v14 }
 0x364   : > { %v8591_v44 = vpop.f32.mrf.mxu0 }
 0x365   : > { %9233 = vmatmul.mubr.msk.f32.gmra.mxu1 %vm1225_vm3, %v8590_v37 }
 0x366   : > { %v8592_v40 = vpop.f32.mrf.mxu0 }
 0x367   : > { %v8593_v46 = vadd.f32 %v8592_v40, %v8591_v44 }
 0x368   : > { %v8594_v41 = vpop.f32.mrf.mxu0 }
 0x369   : > { %9235 = vmatprep.mubr.msk.f32.mxu1 %vm1225_vm3, %v8593_v46 }
 0x36a   : > { %v8595_v10 = vpop.f32.mrf.mxu0 }
 0x36b   : > { %v8596_v27 = vadd.f32 %v8595_v10, %v8594_v41 }
 0x36c   : > { %v8597_v58 = vpop.f32.mrf.mxu0 }
 0x36d   : > { %9236 = vmatmul.mubr.msk.f32.gmra.mxu1 %vm1225_vm3, %v8596_v27 }
 0x36e   : > { %v8598_v49 = vpop.f32.mrf.mxu0 }
 0x36f   : > { %v8599_v56 = vadd.f32 %v8598_v49, %v8597_v58 }
 0x370   : > { %v8600_v8 = vpop.f32.mrf.mxu0 }
 0x371   : > { %9238 = vmatprep.mubr.msk.f32.mxu1 %vm1225_vm3, %v8599_v56 }
 0x372   : > { %v8601_v21 = vpop.f32.mrf.mxu0 }
 0x373   : > { %v8602_v14 = vadd.f32 %v8601_v21, %v8600_v8 }
 0x374   : > { %v8644_v43 = vpop.f32.mrf.mxu0 }
 0x375   : > { %9239 = vmatmul.mubr.msk.f32.gmra.mxu1 %vm1225_vm3, %v8602_v14 }
 0x376   : > { %v8645_v37 = vpop.f32.mrf.mxu0 }
 0x377   : > { %v8646_v44 = vadd.f32 %v8645_v37, %v8644_v43 }
 0x378   : > { %v8647_v40 = vpop.f32.mrf.mxu0 }
 0x379   : > { %9243 = vmatprep.mubr.msk.f32.mxu1 %vm1225_vm3, %v8646_v44 }
 0x37a   : > { %v8648_v46 = vpop.f32.mrf.mxu0 }
 0x37b   : > { %v8649_v41 = vadd.f32 %v8648_v46, %v8647_v40 }
 0x37c   : > { %v8650_v10 = vpop.f32.mrf.mxu0 }
 0x37d   : > { %9244 = vmatmul.mubr.msk.f32.vlgmr.msra.gmra.mxu1 %vm1225_vm3, %v8649_v41 }
 0x37e   : > { %8678 = vmatpush3.msra.mxu1 %v10177_v23  ;;  %v8651_v27 = vpop.f32.mrf.mxu0 }
 0x37f   : > { %v8652_v58 = vadd.f32 %v8651_v27, %v8650_v10  ;;  %8679 = vmatprep.subr.mxu1 %v10180_v26 }
 0x380   : > { %8680 = vmatpush3.msra.mxu1 %v10184_v29  ;;  %v8653_v8 = vpop.f32.mrf.mxu0 }
 0x381   : > { %8681 = vmatprep.subr.mxu1 %v10188_v32  ;;  %9246 = vmatprep.mubr.msk.f32.mxu1 %vm1225_vm3, %v8652_v58 }
 0x382   : > { %8682 = vmatpush3.msra.mxu1 %v10192_v35  ;;  %v8654_v49 = vpop.f32.mrf.mxu0 }
 0x383   : > { %v8655_v56 = vadd.f32 %v8654_v49, %v8653_v8  ;;  %8683 = vmatprep.subr.mxu1 %v10196_v48  ;;  %v7997_v49 = vld [vmem:[%s12025_s3 + $0x308] sm:$0xff] }
 0x384   : > { %8684 = vmatpush3.msra.mxu1 %v10200_v51  ;;  %v8656_v21 = vpop.f32.mrf.mxu0 }
 0x385   : > { %8685 = vmatprep.subr.mxu1 %v10204_v61  ;;  %9247 = vmatmul.mubr.msk.f32.gmra.mxu1 %vm1225_vm3, %v8655_v56  ;;  %v7996_v56 = vld [vmem:[%s12025_s3 + $0x300] sm:$0xff] }
 0x386   : > { %8686 = vmatpush3.msra.mxu1 %v10209_v0  ;;  %v8657_v14 = vpop.f32.mrf.mxu0 }
 0x387   : > { %v8658_v43 = vadd.f32 %v8657_v14, %v8656_v21  ;;  %8687 = vmatprep.subr.mxu1 %v10213_v3  ;;  %v7999_v21 = vld [vmem:[%s12025_s3 + $0x318] sm:$0xff]  ;;  %v7998_v14 = vld [vmem:[%s12025_s3 + $0x310] sm:$0xff] }
 0x388   : > { %8688 = vmatpush3.msra.mxu1 %v10218_v5  ;;  %v8659_v37 = vpop.f32.mrf.mxu0 }
 0x389   : > { %8689 = vmatprep.subr.mxu1 %v10223_v7  ;;  %9249 = vmatprep.mubr.msk.f32.mxu1 %vm1225_vm3, %v8658_v43  ;;  %v8001_v43 = vld [vmem:[%s12025_s3 + $0x328] sm:$0xff] }
 0x38a   : > { %8690 = vmatpush3.msra.mxu1 %v10228_v9  ;;  %v8660_v44 = vpop.f32.mrf.mxu0 }
 0x38b   : > { %v8661_v40 = vadd.f32 %v8660_v44, %v8659_v37  ;;  %8691 = vmatprep.subr.mxu1 %v10233_v11  ;;  %v8000_v37 = vld [vmem:[%s12025_s3 + $0x320] sm:$0xff]  ;;  %v8003_v44 = vld [vmem:[%s12025_s3 + $0x338] sm:$0xff] }
 0x38c   : > { %8692 = vmatpush3.msra.mxu1 %v10238_v13  ;;  %v8662_v46 = vpop.f32.mrf.mxu0 }
 0x38d   : > { %8693 = vmatprep.subr.mxu1 %v10243_v15  ;;  %9250 = vmatmul.mubr.msk.f32.gmra.mxu1 %vm1225_vm3, %v8661_v40  ;;  %v8002_v40 = vld [vmem:[%s12025_s3 + $0x330] sm:$0xff] }
 0x38e   : > { %8694 = vmatpush3.msra.mxu1 %v10248_v17  ;;  %v8663_v41 = vpop.f32.mrf.mxu0 }
 0x38f   : > { %v8664_v10 = vadd.f32 %v8663_v41, %v8662_v46  ;;  %8695 = vmatprep.subr.mxu1 %v10253_v20  ;;  %v8005_v46 = vld [vmem:[%s12025_s3 + $0x348] sm:$0xff]  ;;  %v8004_v41 = vld [vmem:[%s12025_s3 + $0x340] sm:$0xff] }
 0x390   : > { %8696 = vmatpush3.msra.mxu1 %v10258_v22  ;;  %v8665_v27 = vpop.f32.mrf.mxu0 }
 0x391   : > { %8697 = vmatprep.subr.mxu1 %v10263_v25  ;;  %9252 = vmatprep.mubr.msk.f32.mxu1 %vm1225_vm3, %v8664_v10  ;;  %v8007_v10 = vld [vmem:[%s12025_s3 + $0x358] sm:$0xff] }
 0x392   : > { %8698 = vmatpush3.msra.mxu1 %v10268_v28  ;;  %v8666_v58 = vpop.f32.mrf.mxu0 }
 0x393   : > { %v8667_v8 = vadd.f32 %v8666_v58, %v8665_v27  ;;  %8699 = vmatprep.subr.mxu1 %v10273_v31  ;;  %v8006_v27 = vld [vmem:[%s12025_s3 + $0x350] sm:$0xff]  ;;  %v8009_v58 = vld [vmem:[%s12025_s3 + $0x368] sm:$0xff] }
 0x394   : > { %8700 = vmatpush3.msra.mxu1 %v10278_v34 }
 0x395   : > { %8701 = vmatprep.subr.mxu1 %v10281_v36  ;;  %9253 = vmatmul.mubr.msk.f32.gmra.mxu1 %vm1225_vm3, %v8667_v8  ;;  %v8008_v8 = vld [vmem:[%s12025_s3 + $0x360] sm:$0xff] }
 0x396   : > { %8702 = vmatpush3.msra.mxu1 %v10284_v54  ;;  %2628 = vmatprep.mubr.f32.mxu1 %v7997_v49  ;;  %v8011_v49 = vld [vmem:[%s12025_s3 + $0x378] sm:$0xff] }
 0x397   : > { %8703 = vmatprep.subr.mxu1 %v10287_v50 }
 0x398   : > { %8704 = vmatpush3.msra.mxu1 %v10290_v2 }
 0x399   : > { %8705 = vmatprep.subr.mxu1 %v10293_v45 }
 0x39a   : > { %8706 = vmatpush3.msra.mxu1 %v10296_v52 }
 0x39b   : > { %8707 = vmatprep.subr.mxu1 %v10299_v62 }
 0x39c   : > { %8708 = vmatpush3.msra.mxu1 %v10302_v63 }
 0x39d   : > { %2629 = vmatmul.mubr.f32.vlgmr.msra.gmra.mxu1 %v7996_v56  ;;  %8742 = vmatprep.subr.mxu1 %v10174_v19  ;;  %v8010_v56 = vld [vmem:[%s12025_s3 + $0x370] sm:$0xff] }
 0x39e   : > { %8743 = vmatpush3.msra.mxu1 %v10177_v23  ;;  %2633 = vmatprep.mubr.f32.mxu1 %v7999_v21  ;;  %v8023_v21 = vld [vmem:[%s12025_s3 + $0x388] sm:$0xff] }
 0x39f   : > { %8744 = vmatprep.subr.mxu1 %v10180_v26 }
 0x3a0   : > { %8745 = vmatpush3.msra.mxu1 %v10184_v29 }
 0x3a1   : > { %2634 = vmatmul.mubr.f32.gmra.mxu1 %v7998_v14  ;;  %8746 = vmatprep.subr.mxu1 %v10188_v32  ;;  %v8022_v14 = vld [vmem:[%s12025_s3 + $0x380] sm:$0xff] }
 0x3a2   : > { %8747 = vmatpush3.msra.mxu1 %v10192_v35  ;;  %2638 = vmatprep.mubr.f32.mxu1 %v8001_v43  ;;  %v8025_v43 = vld [vmem:[%s12025_s3 + $0x398] sm:$0xff] }
 0x3a3   : > { %8748 = vmatprep.subr.mxu1 %v10196_v48 }
 0x3a4   : > { %8749 = vmatpush3.msra.mxu1 %v10200_v51 }
 0x3a5   : > { %2639 = vmatmul.mubr.f32.gmra.mxu1 %v8000_v37  ;;  %8750 = vmatprep.subr.mxu1 %v10204_v61  ;;  %v8024_v37 = vld [vmem:[%s12025_s3 + $0x390] sm:$0xff] }
 0x3a6   : > { %8751 = vmatpush3.msra.mxu1 %v10209_v0  ;;  %2643 = vmatprep.mubr.f32.mxu1 %v8003_v44  ;;  %v8027_v44 = vld [vmem:[%s12025_s3 + $0x3a8] sm:$0xff] }
 0x3a7   : > { %8752 = vmatprep.subr.mxu1 %v10213_v3 }
 0x3a8   : > { %8753 = vmatpush3.msra.mxu1 %v10218_v5 }
 0x3a9   : > { %2644 = vmatmul.mubr.f32.gmra.mxu1 %v8002_v40  ;;  %8754 = vmatprep.subr.mxu1 %v10223_v7  ;;  %v8026_v40 = vld [vmem:[%s12025_s3 + $0x3a0] sm:$0xff] }
 0x3aa   : > { %8755 = vmatpush3.msra.mxu1 %v10228_v9  ;;  %2648 = vmatprep.mubr.f32.mxu1 %v8005_v46  ;;  %v8029_v46 = vld [vmem:[%s12025_s3 + $0x3b8] sm:$0xff] }
 0x3ab   : > { %8756 = vmatprep.subr.mxu1 %v10233_v11 }
 0x3ac   : > { %8757 = vmatpush3.msra.mxu1 %v10238_v13 }
 0x3ad   : > { %2649 = vmatmul.mubr.f32.gmra.mxu1 %v8004_v41  ;;  %8758 = vmatprep.subr.mxu1 %v10243_v15  ;;  %v8028_v41 = vld [vmem:[%s12025_s3 + $0x3b0] sm:$0xff] }
 0x3ae   : > { %8759 = vmatpush3.msra.mxu1 %v10248_v17  ;;  %2653 = vmatprep.mubr.f32.mxu1 %v8007_v10  ;;  %v8031_v10 = vld [vmem:[%s12025_s3 + $0x3c8] sm:$0xff] }
 0x3af   : > { %8760 = vmatprep.subr.mxu1 %v10253_v20 }
 0x3b0   : > { %8761 = vmatpush3.msra.mxu1 %v10258_v22 }
 0x3b1   : > { %2654 = vmatmul.mubr.f32.gmra.mxu1 %v8006_v27  ;;  %8762 = vmatprep.subr.mxu1 %v10263_v25  ;;  %v8030_v27 = vld [vmem:[%s12025_s3 + $0x3c0] sm:$0xff] }
 0x3b2   : > { %8763 = vmatpush3.msra.mxu1 %v10268_v28  ;;  %2658 = vmatprep.mubr.f32.mxu1 %v8009_v58  ;;  %v8033_v58 = vld [vmem:[%s12025_s3 + $0x3d8] sm:$0xff] }
 0x3b3   : > { %8764 = vmatprep.subr.mxu1 %v10273_v31 }
 0x3b4   : > { %8765 = vmatpush3.msra.mxu1 %v10278_v34 }
 0x3b5   : > { %2659 = vmatmul.mubr.f32.gmra.mxu1 %v8008_v8  ;;  %8766 = vmatprep.subr.mxu1 %v10281_v36  ;;  %v8032_v8 = vld [vmem:[%s12025_s3 + $0x3d0] sm:$0xff] }
 0x3b6   : > { %8767 = vmatpush3.msra.mxu1 %v10284_v54  ;;  %2663 = vmatprep.mubr.f32.mxu1 %v8011_v49  ;;  %v8035_v49 = vld [vmem:[%s12025_s3 + $0x3e8] sm:$0xff] }
 0x3b7   : > { %8768 = vmatprep.subr.mxu1 %v10287_v50 }
 0x3b8   : > { %8769 = vmatpush3.msra.mxu1 %v10290_v2 }
 0x3b9   : > { %2664 = vmatmul.mubr.f32.gmra.mxu1 %v8010_v56  ;;  %8770 = vmatprep.subr.mxu1 %v10293_v45  ;;  %v8034_v56 = vld [vmem:[%s12025_s3 + $0x3e0] sm:$0xff] }
 0x3ba   : > { %8771 = vmatpush3.msra.mxu1 %v10296_v52  ;;  %2892 = vmatprep.mubr.f32.mxu1 %v8023_v21  ;;  %v8037_v21 = vld [vmem:[%s12025_s3 + $0x3f8] sm:$0xff] }
 0x3bb   : > { %8772 = vmatprep.subr.mxu1 %v10299_v62 }
 0x3bc   : > { %8773 = vmatpush3.msra.mxu1 %v10302_v63 }
 0x3bd   : > { %2893 = vmatmul.mubr.f32.vlgmr.msra.gmra.mxu1 %v8022_v14  ;;  %v8036_v14 = vld [vmem:[%s12025_s3 + $0x3f0] sm:$0xff] }
 0x3be   : > { %2897 = vmatprep.mubr.f32.mxu1 %v8025_v43  ;;  %v8012_v43 = vld [vmem:[%s12026_s4 + $0x18] sm:$0xf] }
 0x3bf   : > { %9255 = vmatprep.subr.msk.mxu0 %vm1250_vm2, %v8012_v43 }
 0x3c0   : > { %9256 = vmatpush3.msk.msra.mxu0 %vm1250_vm2, %v8012_v43 }
 0x3c1   : > { %2898 = vmatmul.mubr.f32.gmra.mxu1 %v8024_v37  ;;  %v8038_v37 = vld [vmem:[%s12026_s4 + $0x1c] sm:$0xf] }
 0x3c2   : > { %2902 = vmatprep.mubr.f32.mxu1 %v8027_v44  ;;  %9269 = vmatprep.subr.msk.mxu0 %vm1250_vm2, %v8038_v37 }
 0x3c5   : > { %2903 = vmatmul.mubr.f32.gmra.mxu1 %v8026_v40 }
 0x3c6   : > { %2907 = vmatprep.mubr.f32.mxu1 %v8029_v46 }
 0x3c9   : > { %2908 = vmatmul.mubr.f32.gmra.mxu1 %v8028_v41 }
 0x3ca   : > { %2912 = vmatprep.mubr.f32.mxu1 %v8031_v10 }
 0x3cd   : > { %2913 = vmatmul.mubr.f32.gmra.mxu1 %v8030_v27 }
 0x3ce   : > { %2917 = vmatprep.mubr.f32.mxu1 %v8033_v58 }
 0x3d1   : > { %2918 = vmatmul.mubr.f32.gmra.mxu1 %v8032_v8 }
 0x3d2   : > { %2922 = vmatprep.mubr.f32.mxu1 %v8035_v49 }
 0x3d5   : > { %2923 = vmatmul.mubr.f32.gmra.mxu1 %v8034_v56 }
 0x3d6   : > { %2927 = vmatprep.mubr.f32.mxu1 %v8037_v21 }
 0x3d9   : > { %2928 = vmatmul.mubr.f32.gmra.mxu1 %v8036_v14 }
 0x41d   : > { %v9231_v44 = vpop.f32.mrf.mxu1 }
 0x41e   : > { %v2276_v40 = vadd.f32 %v9231_v44, %v10840_v53  ;;  %v1463_v53 = vadd.f32 %v10826_v1, %v10818_v30 }
 0x41f   : > { %v11043_v46 = vpop.f32.mrf.mxu1 }
 0x420   : > { %12063 = vst [vmem:[#allocation14_spill] sm:$0xff] %v11043_v46  ;;  %v1749_v44 = vadd.f32 %v10834_v57, %v1463_v53 }
 0x425   : > { %v9234_v41 = vpop.f32.mrf.mxu1 }
 0x426   : > { %v2278_v10 = vadd.f32 %v9234_v41, %v10844_v38  ;;  %v2013_v38 = vadd.f32 %v10846_v55, %v1749_v44  ;;  %v1483_v55 = vadd.f32 %v10830_v60, %v10822_v47 }
 0x427   : > { %v2246_v27 = vpop.f32.mrf.mxu1 }
 0x428   : > { %v2277_v42 = vadd.f32 %v2246_v27, %v2013_v38  ;;  %v1753_v27 = vadd.f32 %v10838_v16, %v1483_v55 }
 0x42d   : > { %v9237_v58 = vpop.f32.mrf.mxu1 }
 0x42e   : > { %v2280_v8 = vadd.f32 %v9237_v58, %v10848_v59 }
 0x42f   : > { %v2256_v49 = vpop.f32.mrf.mxu1 }
 0x435   : > { %v9240_v56 = vpop.f32.mrf.mxu1 }
 0x436   : > { %v2282_v21 = vadd.f32 %v9240_v56, %v10852_v24  ;;  %v1473_v24 = vadd.f32 %v10828_v4, %v10820_v33  ;;  %v2017_v33 = vadd.f32 %v10854_v6, %v1753_v27 }
 0x437   : > { %v2266_v14 = vpop.f32.mrf.mxu1 }
 0x438   : > { %v2281_v4 = vadd.f32 %v2266_v14, %v2017_v33 }
 0x43d   : > { %v9245_v43 = vpop.f32.mrf.mxu1 }
 0x43e   : > { %v11048_v18 = vadd.f32 %v9245_v43, %v2276_v40  ;;  %v1751_v40 = vadd.f32 %v10836_v12, %v1473_v24 }
 0x43f   : > { %v11053_v46 = vpop.f32.mrf.mxu1 }
 0x440   : > { %v2015_v30 = vadd.f32 %v10850_v39, %v1751_v40 }
 0x442   : > { %v2279_v57 = vadd.f32 %v2256_v49, %v2015_v30 }
 0x445   : > { %v9248_v41 = vpop.f32.mrf.mxu1 }
 0x446   : > { %v11056_v59 = vadd.f32 %v9248_v41, %v2278_v10 }
 0x447   : > { %v2510_v58 = vpop.f32.mrf.mxu1 }
 0x448   : > { %v11060_v56 = vadd.f32 %v2510_v58, %v2277_v42 }
 0x44d   : > { %v9251_v1 = vpop.f32.mrf.mxu1 }
 0x44e   : > { %v11064_v43 = vadd.f32 %v9251_v1, %v2280_v8 }
 0x44f   : > { %v2520_v53 = vpop.f32.mrf.mxu1 }
 0x450   : > { %v11068_v10 = vadd.f32 %v2520_v53, %v2279_v57 }
 0x455   : > { %v9254_v42 = vpop.f32.mrf.mxu1 }
 0x456   : > { %v11072_v44 = vadd.f32 %v9254_v42, %v2282_v21 }
 0x457   : > { %v2530_v12 = vpop.f32.mrf.mxu1 }
 0x458   : > { %v11074_v39 = vadd.f32 %v2530_v12, %v2281_v4 }
 0x45d   : > { %v8709_v49 = vpop.f32.mrf.mxu1 }
 0x45f   : > { %v8710_v8 = vpop.f32.mrf.mxu1 }
 0x460   : > { %v8711_v38 = vadd.f32 %v8710_v8, %v8709_v49 }
 0x461   : > { %v8712_v41 = vpop.f32.mrf.mxu1 }
 0x462   : > { %9257 = vmatprep.mubr.msk.f32.mxu0 %vm1225_vm3, %v8711_v38 }
 0x463   : > { %v8713_v47 = vpop.f32.mrf.mxu1 }
 0x464   : > { %v8714_v60 = vadd.f32 %v8713_v47, %v8712_v41 }
 0x465   : > { %v8715_v58 = vpop.f32.mrf.mxu1 }
 0x466   : > { %9258 = vmatmul.mubr.msk.f32.vlgmr.msra.gmra.mxu0 %vm1225_vm3, %v8714_v60 }
 0x467   : > { %9270 = vmatpush3.msk.msra.mxu0 %vm1250_vm2, %v8038_v37  ;;  %v8716_v16 = vpop.f32.mrf.mxu1 }
 0x468   : > { %v8717_v6 = vadd.f32 %v8716_v16, %v8715_v58  ;;  %8807 = vmatprep.subr.mxu0 %v10174_v19 }
 0x469   : > { %v8718_v21 = vpop.f32.mrf.mxu1 }
 0x46a   : > { %9260 = vmatprep.mubr.msk.f32.mxu0 %vm1225_vm3, %v8717_v6 }
 0x46b   : > { %v8719_v14 = vpop.f32.mrf.mxu1 }
 0x46c   : > { %v8720_v24 = vadd.f32 %v8719_v14, %v8718_v21 }
 0x46d   : > { %v8721_v40 = vpop.f32.mrf.mxu1 }
 0x46e   : > { %9261 = vmatmul.mubr.msk.f32.gmra.mxu0 %vm1225_vm3, %v8720_v24 }
 0x46f   : > { %v8722_v30 = vpop.f32.mrf.mxu1 }
 0x470   : > { %v8723_v1 = vadd.f32 %v8722_v30, %v8721_v40  ;;  %v12066_v40 = vld [vmem:[#allocation12_spill] sm:$0xff] }
 0x471   : > { %v8724_v57 = vpop.f32.mrf.mxu1 }
 0x472   : > { %9263 = vmatprep.mubr.msk.f32.mxu0 %vm1225_vm3, %v8723_v1  ;;  %v12067_v1 = vld [vmem:[#allocation13_spill] sm:$0xff] }
 0x473   : > { %v8725_v53 = vpop.f32.mrf.mxu1 }
 0x474   : > { %v8726_v55 = vadd.f32 %v8725_v53, %v8724_v57  ;;  %v12068_v53 = vld [vmem:[#allocation14_spill] sm:$0xff] }
 0x475   : > { %v8727_v37 = vpop.f32.mrf.mxu1 }
 0x476   : > { %9264 = vmatmul.mubr.msk.f32.gmra.mxu0 %vm1225_vm3, %v8726_v55 }
 0x477   : > { %v8728_v27 = vpop.f32.mrf.mxu1 }
 0x478   : > { %v8729_v19 = vadd.f32 %v8728_v27, %v8727_v37 }
 0x479   : > { %v8730_v33 = vpop.f32.mrf.mxu1 }
 0x47a   : > { %9266 = vmatprep.mubr.msk.f32.mxu0 %vm1225_vm3, %v8729_v19 }
 0x47b   : > { %v8731_v42 = vpop.f32.mrf.mxu1 }
 0x47c   : > { %v8732_v4 = vadd.f32 %v8731_v42, %v8730_v33 }
 0x47d   : > { %v8774_v12 = vpop.f32.mrf.mxu1 }
 0x47e   : > { %9267 = vmatmul.mubr.msk.f32.gmra.mxu0 %vm1225_vm3, %v8732_v4 }
 0x47f   : > { %v8775_v49 = vpop.f32.mrf.mxu1 }
 0x480   : > { %v8776_v8 = vadd.f32 %v8775_v49, %v8774_v12 }
 0x481   : > { %v8777_v38 = vpop.f32.mrf.mxu1 }
 0x482   : > { %9271 = vmatprep.mubr.msk.f32.mxu0 %vm1225_vm3, %v8776_v8 }
 0x483   : > { %v8778_v41 = vpop.f32.mrf.mxu1 }
 0x484   : > { %v8779_v47 = vadd.f32 %v8778_v41, %v8777_v38 }
 0x485   : > { %v8780_v60 = vpop.f32.mrf.mxu1 }
 0x486   : > { %9272 = vmatmul.mubr.msk.f32.vlgmr.msra.gmra.mxu0 %vm1225_vm3, %v8779_v47 }
 0x487   : > { %8808 = vmatpush3.msra.mxu0 %v10177_v23  ;;  %v8781_v58 = vpop.f32.mrf.mxu1 }
 0x488   : > { %v8782_v16 = vadd.f32 %v8781_v58, %v8780_v60  ;;  %8809 = vmatprep.subr.mxu0 %v10180_v26 }
 0x489   : > { %8810 = vmatpush3.msra.mxu0 %v10184_v29  ;;  %v8783_v6 = vpop.f32.mrf.mxu1 }
 0x48a   : > { %8811 = vmatprep.subr.mxu0 %v10188_v32  ;;  %9274 = vmatprep.mubr.msk.f32.mxu0 %vm1225_vm3, %v8782_v16 }
 0x48b   : > { %8812 = vmatpush3.msra.mxu0 %v10192_v35  ;;  %v8784_v21 = vpop.f32.mrf.mxu1 }
 0x48c   : > { %v8785_v14 = vadd.f32 %v8784_v21, %v8783_v6  ;;  %8813 = vmatprep.subr.mxu0 %v10196_v48 }
 0x48d   : > { %8814 = vmatpush3.msra.mxu0 %v10200_v51  ;;  %v8786_v23 = vpop.f32.mrf.mxu1 }
 0x48e   : > { %8815 = vmatprep.subr.mxu0 %v10204_v61  ;;  %9275 = vmatmul.mubr.msk.f32.gmra.mxu0 %vm1225_vm3, %v8785_v14 }
 0x48f   : > { %8816 = vmatpush3.msra.mxu0 %v10209_v0  ;;  %v8787_v26 = vpop.f32.mrf.mxu1 }
 0x490   : > { %v8788_v29 = vadd.f32 %v8787_v26, %v8786_v23  ;;  %8817 = vmatprep.subr.mxu0 %v10213_v3 }
 0x491   : > { %8818 = vmatpush3.msra.mxu0 %v10218_v5  ;;  %v8789_v32 = vpop.f32.mrf.mxu1 }
 0x492   : > { %8819 = vmatprep.subr.mxu0 %v10223_v7  ;;  %9277 = vmatprep.mubr.msk.f32.mxu0 %vm1225_vm3, %v8788_v29 }
 0x493   : > { %8820 = vmatpush3.msra.mxu0 %v10228_v9  ;;  %v8790_v35 = vpop.f32.mrf.mxu1  ;;  %v8049_v9 = vld [vmem:[%s12025_s3 + $0x408] sm:$0xff] }
 0x494   : > { %v8791_v48 = vadd.f32 %v8790_v35, %v8789_v32  ;;  %8821 = vmatprep.subr.mxu0 %v10233_v11  ;;  %v8048_v11 = vld [vmem:[%s12025_s3 + $0x400] sm:$0xff] }
 0x495   : > { %8822 = vmatpush3.msra.mxu0 %v10238_v13  ;;  %v8792_v51 = vpop.f32.mrf.mxu1  ;;  %v8051_v13 = vld [vmem:[%s12025_s3 + $0x418] sm:$0xff] }
 0x496   : > { %8823 = vmatprep.subr.mxu0 %v10243_v15  ;;  %9278 = vmatmul.mubr.msk.f32.gmra.mxu0 %vm1225_vm3, %v8791_v48  ;;  %v8050_v15 = vld [vmem:[%s12025_s3 + $0x410] sm:$0xff] }
 0x497   : > { %8824 = vmatpush3.msra.mxu0 %v10248_v17  ;;  %v8793_v61 = vpop.f32.mrf.mxu1  ;;  %v8053_v17 = vld [vmem:[%s12025_s3 + $0x428] sm:$0xff] }
 0x498   : > { %v8794_v0 = vadd.f32 %v8793_v61, %v8792_v51  ;;  %8825 = vmatprep.subr.mxu0 %v10253_v20  ;;  %v8052_v20 = vld [vmem:[%s12025_s3 + $0x420] sm:$0xff] }
 0x499   : > { %8826 = vmatpush3.msra.mxu0 %v10258_v22  ;;  %v8795_v3 = vpop.f32.mrf.mxu1  ;;  %v8055_v22 = vld [vmem:[%s12025_s3 + $0x438] sm:$0xff] }
 0x49a   : > { %8827 = vmatprep.subr.mxu0 %v10263_v25  ;;  %9280 = vmatprep.mubr.msk.f32.mxu0 %vm1225_vm3, %v8794_v0  ;;  %v8054_v25 = vld [vmem:[%s12025_s3 + $0x430] sm:$0xff] }
 0x49b   : > { %8828 = vmatpush3.msra.mxu0 %v10268_v28  ;;  %v8796_v5 = vpop.f32.mrf.mxu1  ;;  %v8057_v28 = vld [vmem:[%s12025_s3 + $0x448] sm:$0xff] }
 0x49c   : > { %v8797_v7 = vadd.f32 %v8796_v5, %v8795_v3  ;;  %8829 = vmatprep.subr.mxu0 %v10273_v31  ;;  %v8056_v31 = vld [vmem:[%s12025_s3 + $0x440] sm:$0xff] }
 0x49d   : > { %8830 = vmatpush3.msra.mxu0 %v10278_v34  ;;  %v8059_v34 = vld [vmem:[%s12025_s3 + $0x458] sm:$0xff] }
 0x49e   : > { %8831 = vmatprep.subr.mxu0 %v10281_v36  ;;  %9281 = vmatmul.mubr.msk.f32.gmra.mxu0 %vm1225_vm3, %v8797_v7  ;;  %v8058_v36 = vld [vmem:[%s12025_s3 + $0x450] sm:$0xff] }
 0x49f   : > { %8832 = vmatpush3.msra.mxu0 %v10284_v54  ;;  %3156 = vmatprep.mubr.f32.mxu0 %v8049_v9  ;;  %v8061_v54 = vld [vmem:[%s12025_s3 + $0x468] sm:$0xff] }
 0x4a0   : > { %8833 = vmatprep.subr.mxu0 %v10287_v50  ;;  %v8060_v50 = vld [vmem:[%s12025_s3 + $0x460] sm:$0xff] }
 0x4a1   : > { %8834 = vmatpush3.msra.mxu0 %v10290_v2  ;;  %v8063_v2 = vld [vmem:[%s12025_s3 + $0x478] sm:$0xff] }
 0x4a2   : > { %8835 = vmatprep.subr.mxu0 %v10293_v45  ;;  %v8062_v45 = vld [vmem:[%s12025_s3 + $0x470] sm:$0xff] }
 0x4a3   : > { %8836 = vmatpush3.msra.mxu0 %v10296_v52  ;;  %v8064_v52 = vld [vmem:[%s12026_s4 + $0x20] sm:$0xf] }
 0x4a4   : > { %8837 = vmatprep.subr.mxu0 %v10299_v62  ;;  %9283 = vmatprep.subr.msk.mxu1 %vm1250_vm2, %v8064_v52  ;;  %v12064_v62 = vld [vmem:[#allocation10_spill] sm:$0xff] }
 0x4a5   : > { %8838 = vmatpush3.msra.mxu0 %v10302_v63  ;;  %9284 = vmatpush3.msk.msra.mxu1 %vm1250_vm2, %v8064_v52  ;;  %v12065_v63 = vld [vmem:[#allocation11_spill] sm:$0xff] }
 0x4a6   : > { %3157 = vmatmul.mubr.f32.vlgmr.msra.gmra.mxu0 %v8048_v11  ;;  %v1453_v24 = vadd.f32 %v12065_v63, %v12064_v62 }
 0x4a7   : > { %3161 = vmatprep.mubr.f32.mxu0 %v8051_v13 }
 0x4a8   : > { %v1747_v30 = vadd.f32 %v12066_v40, %v1453_v24  ;;  %v3370_v24 = vld [vmem:[%s12028_s6] sm:$0xff]  ;;  %v8077_v40 = vld [vmem:[%s12028_s6 + $0x10] sm:$0xff] }
 0x4aa   : > { %3162 = vmatmul.mubr.f32.gmra.mxu0 %v8050_v15  ;;  %v2011_v57 = vadd.f32 %v12067_v1, %v1747_v30 }
 0x4ab   : > { %3166 = vmatprep.mubr.f32.mxu0 %v8053_v17 }
 0x4ac   : > { %v2275_v55 = vadd.f32 %v12068_v53, %v2011_v57 }
 0x4ae   : > { %3167 = vmatmul.mubr.f32.gmra.mxu0 %v8052_v20  ;;  %v2539_v27 = vadd.f32 %v11053_v46, %v2275_v55 }
 0x4af   : > { %3171 = vmatprep.mubr.f32.mxu0 %v8055_v22 }
 0x4b2   : > { %3172 = vmatmul.mubr.f32.gmra.mxu0 %v8054_v25 }
 0x4b3   : > { %3176 = vmatprep.mubr.f32.mxu0 %v8057_v28 }
 0x4b6   : > { %3177 = vmatmul.mubr.f32.gmra.mxu0 %v8056_v31 }
 0x4b7   : > { %3181 = vmatprep.mubr.f32.mxu0 %v8059_v34 }
 0x4ba   : > { %3182 = vmatmul.mubr.f32.gmra.mxu0 %v8058_v36 }
 0x4bb   : > { %3186 = vmatprep.mubr.f32.mxu0 %v8061_v54 }
 0x4be   : > { %3187 = vmatmul.mubr.f32.gmra.mxu0 %v8060_v50 }
 0x4bf   : > { %3191 = vmatprep.mubr.f32.mxu0 %v8063_v2 }
 0x4c2   : > { %3192 = vmatmul.mubr.f32.gmra.mxu0 %v8062_v45 }
 0x4c3   : > { %9332 = vmatprep.mubr.msk.f32.mxu0 %vm3372_vm4, %v8077_v40 }
 0x526   : > { %v9259_v37 = vpop.f32.mrf.mxu0 }
 0x527   : > { %v2804_v19 = vadd.f32 %v9259_v37, %v11048_v18 }
 0x528   : > { %v2764_v33 = vpop.f32.mrf.mxu0 }
 0x529   : > { %v2803_v42 = vadd.f32 %v2764_v33, %v2539_v27 }
 0x52e   : > { %v9262_v4 = vpop.f32.mrf.mxu0 }
 0x52f   : > { %v2806_v12 = vadd.f32 %v9262_v4, %v11056_v59  ;;  %v8074_v4 = vld [vmem:[%s12027_s5] ss:$0 sm:$0xff] }
 0x530   : > { %v2774_v49 = vpop.f32.mrf.mxu0 }
 0x531   : > { %v2805_v8 = vadd.f32 %v2774_v49, %v11060_v56 }
 0x536   : > { %v9265_v38 = vpop.f32.mrf.mxu0 }
 0x537   : > { %v2808_v41 = vadd.f32 %v9265_v38, %v11064_v43 }
 0x538   : > { %v2784_v47 = vpop.f32.mrf.mxu0 }
 0x539   : > { %v2807_v60 = vadd.f32 %v2784_v47, %v11068_v10 }
 0x53e   : > { %v9268_v58 = vpop.f32.mrf.mxu0 }
 0x53f   : > { %v2810_v16 = vadd.f32 %v9268_v58, %v11072_v44 }
 0x540   : > { %v2794_v46 = vpop.f32.mrf.mxu0 }
 0x541   : > { %v2809_v18 = vadd.f32 %v2794_v46, %v11074_v39 }
 0x546   : > { %v9273_v6 = vpop.f32.mrf.mxu0 }
 0x547   : > { %v11191_v21 = vadd.f32 %v9273_v6, %v2804_v19 }
 0x548   : > { %v3028_v14 = vpop.f32.mrf.mxu0 }
 0x549   : > { %v11193_v59 = vadd.f32 %v3028_v14, %v2803_v42 }
 0x54e   : > { %v9276_v23 = vpop.f32.mrf.mxu0 }
 0x54f   : > { %v3070_v56 = vadd.f32 %v9276_v23, %v2806_v12 }
 0x550   : > { %v3038_v26 = vpop.f32.mrf.mxu0 }
 0x551   : > { %v3069_v29 = vadd.f32 %v3038_v26, %v2805_v8 }
 0x556   : > { %v9279_v43 = vpop.f32.mrf.mxu0 }
 0x557   : > { %v3072_v32 = vadd.f32 %v9279_v43, %v2808_v41 }
 0x558   : > { %v3048_v35 = vpop.f32.mrf.mxu0 }
 0x559   : > { %v3071_v10 = vadd.f32 %v3048_v35, %v2807_v60 }
 0x55e   : > { %v9282_v48 = vpop.f32.mrf.mxu0 }
 0x55f   : > { %v3074_v51 = vadd.f32 %v9282_v48, %v2810_v16 }
 0x560   : > { %v3058_v44 = vpop.f32.mrf.mxu0 }
 0x561   : > { %v3073_v61 = vadd.f32 %v3058_v44, %v2809_v18 }
 0x566   : > { %v8839_v0 = vpop.f32.mrf.mxu0 }
 0x568   : > { %v8840_v39 = vpop.f32.mrf.mxu0 }
 0x569   : > { %v8841_v3 = vadd.f32 %v8840_v39, %v8839_v0 }
 0x56a   : > { %v8842_v5 = vpop.f32.mrf.mxu0 }
 0x56b   : > { %9285 = vmatprep.mubr.msk.f32.mxu1 %vm1225_vm3, %v8841_v3 }
 0x56c   : > { %v8843_v7 = vpop.f32.mrf.mxu0 }
 0x56d   : > { %v8844_v9 = vadd.f32 %v8843_v7, %v8842_v5  ;;  %v3371_v5 = vld [vmem:[%s12028_s6 + $0x8] sm:$0xff]  ;;  %v8078_v7 = vld [vmem:[%s12028_s6 + $0x18] sm:$0xff] }
 0x56e   : > { %v8845_v11 = vpop.f32.mrf.mxu0 }
 0x56f   : > { %9286 = vmatmul.mubr.msk.f32.vlgmr.msra.gmra.mxu1 %vm1225_vm3, %v8844_v9  ;;  %v8081_v9 = vld [vmem:[%s12029_s7 + $0x8] sm:$0xff] }
 0x570   : > { %v8846_v13 = vpop.f32.mrf.mxu0 }
 0x571   : > { %v8847_v15 = vadd.f32 %v8846_v13, %v8845_v11  ;;  %v3454_v11 = vld [vmem:[%s12029_s7] sm:$0xff]  ;;  %v8090_v13 = vld [vmem:[%s12029_s7 + $0x10] sm:$0xff] }
 0x572   : > { %v8848_v17 = vpop.f32.mrf.mxu0 }
 0x573   : > { %9288 = vmatprep.mubr.msk.f32.mxu1 %vm1225_vm3, %v8847_v15 }
 0x574   : > { %v8849_v20 = vpop.f32.mrf.mxu0 }
 0x575   : > { %v8850_v22 = vadd.f32 %v8849_v20, %v8848_v17 }
 0x576   : > { %v8851_v25 = vpop.f32.mrf.mxu0 }
 0x577   : > { %9289 = vmatmul.mubr.msk.f32.gmra.mxu1 %vm1225_vm3, %v8850_v22 }
 0x578   : > { %v8852_v28 = vpop.f32.mrf.mxu0 }
 0x579   : > { %v8853_v31 = vadd.f32 %v8852_v28, %v8851_v25  ;;  %v8086_v25 = vld [vmem:[%s12028_s6 + $0x20] sm:$0xff]  ;;  %v8087_v28 = vld [vmem:[%s12028_s6 + $0x28] sm:$0xff] }
 0x57a   : > { %v8854_v34 = vpop.f32.mrf.mxu0 }
 0x57b   : > { %9291 = vmatprep.mubr.msk.f32.mxu1 %vm1225_vm3, %v8853_v31  ;;  %v8097_v31 = vld [vmem:[%s12029_s7 + $0x18] sm:$0xff] }
 0x57c   : > { %v8855_v36 = vpop.f32.mrf.mxu0 }
 0x57d   : > { %v8856_v54 = vadd.f32 %v8855_v36, %v8854_v34 }
 0x57e   : > { %v8857_v50 = vpop.f32.mrf.mxu0 }
 0x57f   : > { %9292 = vmatmul.mubr.msk.f32.gmra.mxu1 %vm1225_vm3, %v8856_v54 }
 0x580   : > { %v8858_v2 = vpop.f32.mrf.mxu0 }
 0x581   : > { %v8859_v45 = vadd.f32 %v8858_v2, %v8857_v50 }
 0x582   : > { %v8860_v52 = vpop.f32.mrf.mxu0 }
 0x583   : > { %9294 = vmatprep.mubr.msk.f32.mxu1 %vm1225_vm3, %v8859_v45 }
 0x584   : > { %v8861_v62 = vpop.f32.mrf.mxu0 }
 0x585   : > { %v8862_v63 = vadd.f32 %v8861_v62, %v8860_v52  ;;  %v8093_v52 = vld [vmem:[%s12028_s6 + $0x30] sm:$0xff]  ;;  %v8094_v62 = vld [vmem:[%s12028_s6 + $0x38] sm:$0xff] }
 0x587   : > { %9295 = vmatmul.mubr.msk.f32.gmra.mxu1 %vm1225_vm3, %v8862_v63  ;;  %v8104_v63 = vld [vmem:[%s12029_s7 + $0x20] sm:$0xff] }
 0x588   : > { %9313 = vmatprep.mubr.msk.f32.mxu1 %vm3372_vm4, %v3370_v24 }
 0x62f   : > { %v9287_v30 = vpop.f32.mrf.mxu1 }
 0x630   : > { %v3332_v46 = vadd.f32 %v9287_v30, %v11191_v21 }
 0x631   : > { %v3292_v1 = vpop.f32.mrf.mxu1 }
 0x632   : > { %v3331_v26 = vadd.f32 %v3292_v1, %v11193_v59  ;;  %v3347_v21 = vadd.f32 %v8074_v4, %v3332_v46 }
 0x634   : > { %v3346_v59 = vadd.f32 %v8074_v4, %v3331_v26  ;;  %v8114_v26 = vld [vmem:[%s12028_s6 + $0x60] sm:$0xff] }
 0x637   : > { %v9290_v57 = vpop.f32.mrf.mxu1 }
 0x638   : > { %v3334_v49 = vadd.f32 %v9290_v57, %v3070_v56 }
 0x639   : > { %v3302_v53 = vpop.f32.mrf.mxu1 }
 0x63a   : > { %v3333_v47 = vadd.f32 %v3302_v53, %v3069_v29  ;;  %v3349_v18 = vadd.f32 %v8074_v4, %v3334_v49 }
 0x63c   : > { %v3348_v43 = vadd.f32 %v8074_v4, %v3333_v47  ;;  %v3357_v56 = vmul.f32 0.2, %v3349_v18  ;;  %v8108_v47 = vld [vmem:[%s12028_s6 + $0x58] sm:$0xff] }
 0x63e   : > { %v11236_v44 = vmax.f32 %v3349_v18, %v3357_v56 }
 0x63f   : > { %v9293_v55 = vpop.f32.mrf.mxu1 }
 0x640   : > { %v3336_v27 = vadd.f32 %v9293_v55, %v3072_v32 }
 0x641   : > { %v3312_v37 = vpop.f32.mrf.mxu1 }
 0x642   : > { %v3335_v33 = vadd.f32 %v3312_v37, %v3071_v10  ;;  %v3351_v8 = vadd.f32 %v8074_v4, %v3336_v27  ;;  %v3356_v10 = vmul.f32 0.2, %v3348_v43  ;;  %v8100_v27 = vld [vmem:[%s12028_s6 + $0x40] sm:$0xff] }
 0x644   : > { %v3350_v60 = vadd.f32 %v8074_v4, %v3335_v33  ;;  %v3359_v6 = vmul.f32 0.2, %v3351_v8  ;;  %v11242_v0 = vmax.f32 %v3348_v43, %v3356_v10  ;;  %v8111_v33 = vld [vmem:[%s12029_s7 + $0x28] sm:$0xff] }
 0x645   : > { %v8115_v43 = vld [vmem:[%s12028_s6 + $0x68] sm:$0xff] }
 0x646   : > { %v3358_v32 = vmul.f32 0.2, %v3350_v60  ;;  %v11224_v29 = vmax.f32 %v3351_v8, %v3359_v6 }
 0x647   : > { %v9296_v19 = vpop.f32.mrf.mxu1 }
 0x648   : > { %v3338_v42 = vadd.f32 %v9296_v19, %v3074_v51  ;;  %v11230_v48 = vmax.f32 %v3350_v60, %v3358_v32  ;;  %v3355_v51 = vmul.f32 0.2, %v3347_v21  ;;  %v8101_v19 = vld [vmem:[%s12028_s6 + $0x48] sm:$0xff]  ;;  %v8118_v60 = vld [vmem:[%s12029_s7 + $0x30] sm:$0xff]  ;;  %v8125_v32 = vld [vmem:[%s12029_s7 + $0x38] sm:$0xff] }
 0x649   : > { %v3322_v12 = vpop.f32.mrf.mxu1 }
 0x64a   : > { %v3353_v38 = vadd.f32 %v8074_v4, %v3338_v42  ;;  %v3337_v41 = vadd.f32 %v3322_v12, %v3073_v61  ;;  %v3354_v61 = vmul.f32 0.2, %v3346_v59  ;;  %v11248_v39 = vmax.f32 %v3347_v21, %v3355_v51 }
 0x64c   : > { %v3361_v58 = vmul.f32 0.2, %v3353_v38  ;;  %v3352_v16 = vadd.f32 %v8074_v4, %v3337_v41  ;;  %v11254_v3 = vmax.f32 %v3346_v59, %v3354_v61  ;;  %v8107_v41 = vld [vmem:[%s12028_s6 + $0x50] sm:$0xff] }
 0x64e   : > { %v11215_v14 = vmax.f32 %v3353_v38, %v3361_v58  ;;  %v3360_v23 = vmul.f32 0.2, %v3352_v16 }
 0x650   : > { %v11218_v35 = vmax.f32 %v3352_v16, %v3360_v23  ;;  %9297 = vmatprep.subr.mxu1 %v11215_v14  ;;  %9316 = vmatprep.subr.mxu0 %v11215_v14 }
 0x651   : > { %9298 = vmatpush3.msra.mxu1 %v11215_v14  ;;  %9317 = vmatpush3.msra.mxu0 %v11215_v14 }
 0x652   : > { %9299 = vmatprep.subr.mxu1 %v11218_v35  ;;  %9318 = vmatprep.subr.mxu0 %v11218_v35 }
 0x653   : > { %9300 = vmatpush3.msra.mxu1 %v11218_v35  ;;  %9319 = vmatpush3.msra.mxu0 %v11218_v35 }
 0x654   : > { %9301 = vmatprep.subr.mxu1 %v11224_v29  ;;  %9320 = vmatprep.subr.mxu0 %v11224_v29 }
 0x655   : > { %9302 = vmatpush3.msra.mxu1 %v11224_v29  ;;  %9321 = vmatpush3.msra.mxu0 %v11224_v29 }
 0x656   : > { %9303 = vmatprep.subr.mxu1 %v11230_v48  ;;  %9322 = vmatprep.subr.mxu0 %v11230_v48 }
 0x657   : > { %9304 = vmatpush3.msra.mxu1 %v11230_v48  ;;  %9323 = vmatpush3.msra.mxu0 %v11230_v48 }
 0x658   : > { %9305 = vmatprep.subr.mxu1 %v11236_v44  ;;  %9324 = vmatprep.subr.mxu0 %v11236_v44 }
 0x659   : > { %9306 = vmatpush3.msra.mxu1 %v11236_v44  ;;  %9325 = vmatpush3.msra.mxu0 %v11236_v44 }
 0x65a   : > { %9307 = vmatprep.subr.mxu1 %v11242_v0  ;;  %9326 = vmatprep.subr.mxu0 %v11242_v0 }
 0x65b   : > { %9308 = vmatpush3.msra.mxu1 %v11242_v0  ;;  %9327 = vmatpush3.msra.mxu0 %v11242_v0 }
 0x65c   : > { %9309 = vmatprep.subr.mxu1 %v11248_v39  ;;  %9328 = vmatprep.subr.mxu0 %v11248_v39 }
 0x65d   : > { %9310 = vmatpush3.msra.mxu1 %v11248_v39  ;;  %9329 = vmatpush3.msra.mxu0 %v11248_v39 }
 0x65e   : > { %9311 = vmatprep.subr.mxu1 %v11254_v3  ;;  %9330 = vmatprep.subr.mxu0 %v11254_v3 }
 0x65f   : > { %9312 = vmatpush3.msra.mxu1 %v11254_v3  ;;  %9331 = vmatpush3.msra.mxu0 %v11254_v3 }
 0x660   : > { %9314 = vmatmul.mubr.msk.f32.vlgmr.msra.gmra.mxu1 %vm3372_vm4, %v3371_v5  ;;  %9333 = vmatmul.mubr.msk.f32.vlgmr.msra.gmra.mxu0 %vm3372_vm4, %v8078_v7  ;;  %v8121_v5 = vld [vmem:[%s12028_s6 + $0x70] sm:$0xff]  ;;  %v8122_v7 = vld [vmem:[%s12028_s6 + $0x78] sm:$0xff] }
 0x661   : > { %9335 = vmatprep.subr.mxu0 %v8081_v9  ;;  %9340 = vmatprep.subr.mxu1 %v3454_v11 }
 0x662   : > { %9336 = vmatpush3.msra.mxu0 %v8081_v9  ;;  %9341 = vmatpush3.msra.mxu1 %v3454_v11 }
 0x663   : > { %9345 = vmatprep.subr.mxu0 %v11215_v14  ;;  %9364 = vmatprep.subr.mxu1 %v8090_v13 }
 0x720   : > { %v9315_v15 = vpop.f32.mrf.mxu1  ;;  %v9334_v17 = vpop.f32.mrf.mxu0 }
 0x722   : > { %v3445_v20 = vpop.f32.mrf.mxu1  ;;  %v3530_v22 = vpop.f32.mrf.mxu0 }
 0x723   : > { %9337 = vmatprep.mubr.msk.f32.mxu0 %vm3541_vm5, %v3530_v22  ;;  %9342 = vmatprep.mubr.msk.f32.mxu1 %vm3541_vm5, %v3445_v20  ;;  %v8128_v22 = vld [vmem:[%s12028_s6 + $0x80] sm:$0xff] }
 0x724   : > { %9338 = vmatmul.mubr.msk.f32.vlgmr.msra.gmra.mxu0 %vm3541_vm5, %v9334_v17  ;;  %9343 = vmatmul.mubr.msk.f32.vlgmr.msra.gmra.mxu1 %vm3541_vm5, %v9315_v15 }
 0x725   : > { %9346 = vmatpush3.msra.mxu0 %v11215_v14  ;;  %9365 = vmatpush3.msra.mxu1 %v8090_v13 }
 0x726   : > { %9347 = vmatprep.subr.mxu0 %v11218_v35  ;;  %9369 = vmatprep.subr.mxu1 %v11215_v14 }
 0x727   : > { %9348 = vmatpush3.msra.mxu0 %v11218_v35  ;;  %9361 = vmatprep.mubr.msk.f32.mxu0 %vm3372_vm4, %v8086_v25 }
 0x728   : > { %9349 = vmatprep.subr.mxu0 %v11224_v29 }
 0x729   : > { %9350 = vmatpush3.msra.mxu0 %v11224_v29 }
 0x72a   : > { %9351 = vmatprep.subr.mxu0 %v11230_v48 }
 0x72b   : > { %9352 = vmatpush3.msra.mxu0 %v11230_v48 }
 0x72c   : > { %9353 = vmatprep.subr.mxu0 %v11236_v44 }
 0x72d   : > { %9354 = vmatpush3.msra.mxu0 %v11236_v44 }
 0x72e   : > { %9355 = vmatprep.subr.mxu0 %v11242_v0 }
 0x72f   : > { %9356 = vmatpush3.msra.mxu0 %v11242_v0 }
 0x730   : > { %9357 = vmatprep.subr.mxu0 %v11248_v39 }
 0x731   : > { %9358 = vmatpush3.msra.mxu0 %v11248_v39 }
 0x732   : > { %9359 = vmatprep.subr.mxu0 %v11254_v3 }
 0x733   : > { %9360 = vmatpush3.msra.mxu0 %v11254_v3 }
 0x734   : > { %9362 = vmatmul.mubr.msk.f32.vlgmr.msra.gmra.mxu0 %vm3372_vm4, %v8087_v28  ;;  %9388 = vmatprep.subr.mxu0 %v8097_v31  ;;  %v9905_v28 = vmov 0.0  }
 0x735   : > { %9389 = vmatpush3.msra.mxu0 %v8097_v31  ;;  %v8135_v31 = vld [vmem:[%s12030_s8] ss:$0 sm:$0xff] }
 0x736   : > { %9393 = vmatprep.subr.mxu0 %v11215_v14 }
 0x7e4   : > { %v9339_v34 = vpop.f32.mrf.mxu0  ;;  %v9344_v36 = vpop.f32.mrf.mxu1 }
 0x7e5   : > { %v3701_v54 = vadd.f32 %v9344_v36, %v9339_v34 }
 0x7e6   : > { %v3614_v50 = vpop.f32.mrf.mxu0  ;;  %v3695_v24 = vpop.f32.mrf.mxu1 }
 0x7e7   : > { %v3696_v30 = vadd.f32 %v3695_v24, %v3614_v50  ;;  %v4900_v24 = vld [vmem:[%s12031_s9] sm:$0xf] }
 0x7f4   : > { %v9363_v2 = vpop.f32.mrf.mxu0 }
 0x7f6   : > { %v3779_v45 = vpop.f32.mrf.mxu0 }
 0x7f7   : > { %9366 = vmatprep.mubr.msk.f32.mxu1 %vm3541_vm5, %v3779_v45 }
 0x7f8   : > { %9367 = vmatmul.mubr.msk.f32.vlgmr.msra.gmra.mxu1 %vm3541_vm5, %v9363_v2 }
 0x7f9   : > { %9370 = vmatpush3.msra.mxu1 %v11215_v14  ;;  %9385 = vmatprep.mubr.msk.f32.mxu1 %vm3372_vm4, %v8093_v52 }
 0x7fa   : > { %9371 = vmatprep.subr.mxu1 %v11218_v35 }
 0x7fb   : > { %9372 = vmatpush3.msra.mxu1 %v11218_v35 }
 0x7fc   : > { %9373 = vmatprep.subr.mxu1 %v11224_v29 }
 0x7fd   : > { %9374 = vmatpush3.msra.mxu1 %v11224_v29 }
 0x7fe   : > { %9375 = vmatprep.subr.mxu1 %v11230_v48 }
 0x7ff   : > { %9376 = vmatpush3.msra.mxu1 %v11230_v48 }
 0x800   : > { %9377 = vmatprep.subr.mxu1 %v11236_v44 }
 0x801   : > { %9378 = vmatpush3.msra.mxu1 %v11236_v44 }
 0x802   : > { %9379 = vmatprep.subr.mxu1 %v11242_v0 }
 0x803   : > { %9380 = vmatpush3.msra.mxu1 %v11242_v0 }
 0x804   : > { %9381 = vmatprep.subr.mxu1 %v11248_v39 }
 0x805   : > { %9382 = vmatpush3.msra.mxu1 %v11248_v39 }
 0x806   : > { %9383 = vmatprep.subr.mxu1 %v11254_v3 }
 0x807   : > { %9384 = vmatpush3.msra.mxu1 %v11254_v3 }
 0x808   : > { %9386 = vmatmul.mubr.msk.f32.vlgmr.msra.gmra.mxu1 %vm3372_vm4, %v8094_v62  ;;  %9412 = vmatprep.subr.mxu1 %v8104_v63 }
 0x809   : > { %9413 = vmatpush3.msra.mxu1 %v8104_v63 }
 0x80a   : > { %9417 = vmatprep.subr.mxu1 %v11215_v14 }
 0x8b8   : > { %v9368_v40 = vpop.f32.mrf.mxu1 }
 0x8b9   : > { %v3872_v1 = vadd.f32 %v9368_v40, %v3701_v54  ;;  %v8137_v40 = vld [vmem:[%s12031_s9 + $0x4] sm:$0xf] }
 0x8ba   : > { %v3862_v57 = vpop.f32.mrf.mxu1 }
 0x8bb   : > { %v3871_v53 = vadd.f32 %v3862_v57, %v3696_v30  ;;  %v4976_v30 = vld [vmem:[%s12032_s10 + $0x8] sm:$0xff]  ;;  %v4975_v57 = vld [vmem:[%s12032_s10] sm:$0xff] }
 0x8c8   : > { %v9387_v55 = vpop.f32.mrf.mxu1 }
 0x8ca   : > { %v3948_v37 = vpop.f32.mrf.mxu1 }
 0x8cb   : > { %9390 = vmatprep.mubr.msk.f32.mxu0 %vm3541_vm5, %v3948_v37 }
 0x8cc   : > { %9391 = vmatmul.mubr.msk.f32.vlgmr.msra.gmra.mxu0 %vm3541_vm5, %v9387_v55 }
 0x8cd   : > { %9394 = vmatpush3.msra.mxu0 %v11215_v14  ;;  %9409 = vmatprep.mubr.msk.f32.mxu0 %vm3372_vm4, %v8100_v27 }
 0x8ce   : > { %9395 = vmatprep.subr.mxu0 %v11218_v35 }
 0x8cf   : > { %9396 = vmatpush3.msra.mxu0 %v11218_v35 }
 0x8d0   : > { %9397 = vmatprep.subr.mxu0 %v11224_v29 }
 0x8d1   : > { %9398 = vmatpush3.msra.mxu0 %v11224_v29 }
 0x8d2   : > { %9399 = vmatprep.subr.mxu0 %v11230_v48 }
 0x8d3   : > { %9400 = vmatpush3.msra.mxu0 %v11230_v48 }
 0x8d4   : > { %9401 = vmatprep.subr.mxu0 %v11236_v44 }
 0x8d5   : > { %9402 = vmatpush3.msra.mxu0 %v11236_v44 }
 0x8d6   : > { %9403 = vmatprep.subr.mxu0 %v11242_v0 }
 0x8d7   : > { %9404 = vmatpush3.msra.mxu0 %v11242_v0 }
 0x8d8   : > { %9405 = vmatprep.subr.mxu0 %v11248_v39 }
 0x8d9   : > { %9406 = vmatpush3.msra.mxu0 %v11248_v39 }
 0x8da   : > { %9407 = vmatprep.subr.mxu0 %v11254_v3 }
 0x8db   : > { %9408 = vmatpush3.msra.mxu0 %v11254_v3 }
 0x8dc   : > { %9410 = vmatmul.mubr.msk.f32.vlgmr.msra.gmra.mxu0 %vm3372_vm4, %v8101_v19  ;;  %9436 = vmatprep.subr.mxu0 %v8111_v33  ;;  %v8143_v19 = vld [vmem:[%s12031_s9 + $0x8] sm:$0xf] }
 0x8dd   : > { %9437 = vmatpush3.msra.mxu0 %v8111_v33 }
 0x8de   : > { %9441 = vmatprep.subr.mxu0 %v11215_v14 }
 0x98c   : > { %v9392_v42 = vpop.f32.mrf.mxu0 }
 0x98d   : > { %v4041_v4 = vadd.f32 %v9392_v42, %v3872_v1  ;;  %v8140_v1 = vld [vmem:[%s12032_s10 + $0x18] sm:$0xff]  ;;  %v8148_v42 = vld [vmem:[%s12031_s9 + $0xc] sm:$0xf] }
 0x98e   : > { %v4031_v12 = vpop.f32.mrf.mxu0 }
 0x98f   : > { %v4040_v49 = vadd.f32 %v4031_v12, %v3871_v53  ;;  %v8139_v53 = vld [vmem:[%s12032_s10 + $0x10] sm:$0xff] }
 0x990   : > { %v8158_v12 = vld [vmem:[%s12031_s9 + $0x14] sm:$0xf] }
 0x99c   : > { %v9411_v8 = vpop.f32.mrf.mxu0 }
 0x99e   : > { %v4117_v38 = vpop.f32.mrf.mxu0 }
 0x99f   : > { %9414 = vmatprep.mubr.msk.f32.mxu1 %vm3541_vm5, %v4117_v38  ;;  %v8173_v38 = vld [vmem:[%s12031_s9 + $0x20] sm:$0xf] }
 0x9a0   : > { %9415 = vmatmul.mubr.msk.f32.vlgmr.msra.gmra.mxu1 %vm3541_vm5, %v9411_v8  ;;  %v8168_v8 = vld [vmem:[%s12031_s9 + $0x1c] sm:$0xf] }
 0x9a1   : > { %9418 = vmatpush3.msra.mxu1 %v11215_v14  ;;  %9433 = vmatprep.mubr.msk.f32.mxu1 %vm3372_vm4, %v8107_v41  ;;  %v8146_v41 = vld [vmem:[%s12032_s10 + $0x28] sm:$0xff] }
 0x9a2   : > { %9419 = vmatprep.subr.mxu1 %v11218_v35 }
 0x9a3   : > { %9420 = vmatpush3.msra.mxu1 %v11218_v35 }
 0x9a4   : > { %9421 = vmatprep.subr.mxu1 %v11224_v29 }
 0x9a5   : > { %9422 = vmatpush3.msra.mxu1 %v11224_v29 }
 0x9a6   : > { %9423 = vmatprep.subr.mxu1 %v11230_v48 }
 0x9a7   : > { %9424 = vmatpush3.msra.mxu1 %v11230_v48 }
 0x9a8   : > { %9425 = vmatprep.subr.mxu1 %v11236_v44 }
 0x9a9   : > { %9426 = vmatpush3.msra.mxu1 %v11236_v44 }
 0x9aa   : > { %9427 = vmatprep.subr.mxu1 %v11242_v0 }
 0x9ab   : > { %9428 = vmatpush3.msra.mxu1 %v11242_v0 }
 0x9ac   : > { %9429 = vmatprep.subr.mxu1 %v11248_v39 }
 0x9ad   : > { %9430 = vmatpush3.msra.mxu1 %v11248_v39 }
 0x9ae   : > { %9431 = vmatprep.subr.mxu1 %v11254_v3 }
 0x9af   : > { %9432 = vmatpush3.msra.mxu1 %v11254_v3 }
 0x9b0   : > { %9434 = vmatmul.mubr.msk.f32.vlgmr.msra.gmra.mxu1 %vm3372_vm4, %v8108_v47  ;;  %9460 = vmatprep.subr.mxu1 %v8118_v60  ;;  %v8145_v47 = vld [vmem:[%s12032_s10 + $0x20] sm:$0xff] }
 0x9b1   : > { %9461 = vmatpush3.msra.mxu1 %v8118_v60 }
 0x9b2   : > { %9465 = vmatprep.subr.mxu1 %v11215_v14 }
 0xa60   : > { %v9416_v58 = vpop.f32.mrf.mxu1 }
 0xa61   : > { %v4210_v16 = vadd.f32 %v9416_v58, %v4041_v4  ;;  %v8153_v4 = vld [vmem:[%s12031_s9 + $0x10] sm:$0xf] }
 0xa62   : > { %v4200_v46 = vpop.f32.mrf.mxu1 }
 0xa63   : > { %v4209_v18 = vadd.f32 %v4200_v46, %v4040_v49  ;;  %v8163_v49 = vld [vmem:[%s12031_s9 + $0x18] sm:$0xf] }
 0xa70   : > { %v9435_v6 = vpop.f32.mrf.mxu1 }
 0xa72   : > { %v4286_v23 = vpop.f32.mrf.mxu1 }
 0xa73   : > { %9438 = vmatprep.mubr.msk.f32.mxu0 %vm3541_vm5, %v4286_v23 }
 0xa74   : > { %9439 = vmatmul.mubr.msk.f32.vlgmr.msra.gmra.mxu0 %vm3541_vm5, %v9435_v6  ;;  %v8151_v6 = vld [vmem:[%s12032_s10 + $0x38] sm:$0xff] }
 0xa75   : > { %9442 = vmatpush3.msra.mxu0 %v11215_v14  ;;  %9457 = vmatprep.mubr.msk.f32.mxu0 %vm3372_vm4, %v8114_v26  ;;  %v8150_v26 = vld [vmem:[%s12032_s10 + $0x30] sm:$0xff] }
 0xa76   : > { %9443 = vmatprep.subr.mxu0 %v11218_v35 }
 0xa77   : > { %9444 = vmatpush3.msra.mxu0 %v11218_v35 }
 0xa78   : > { %9445 = vmatprep.subr.mxu0 %v11224_v29 }
 0xa79   : > { %9446 = vmatpush3.msra.mxu0 %v11224_v29 }
 0xa7a   : > { %9447 = vmatprep.subr.mxu0 %v11230_v48 }
 0xa7b   : > { %9448 = vmatpush3.msra.mxu0 %v11230_v48 }
 0xa7c   : > { %9449 = vmatprep.subr.mxu0 %v11236_v44 }
 0xa7d   : > { %9450 = vmatpush3.msra.mxu0 %v11236_v44 }
 0xa7e   : > { %9451 = vmatprep.subr.mxu0 %v11242_v0 }
 0xa7f   : > { %9452 = vmatpush3.msra.mxu0 %v11242_v0 }
 0xa80   : > { %9453 = vmatprep.subr.mxu0 %v11248_v39 }
 0xa81   : > { %9454 = vmatpush3.msra.mxu0 %v11248_v39 }
 0xa82   : > { %9455 = vmatprep.subr.mxu0 %v11254_v3 }
 0xa83   : > { %9456 = vmatpush3.msra.mxu0 %v11254_v3 }
 0xa84   : > { %9458 = vmatmul.mubr.msk.f32.vlgmr.msra.gmra.mxu0 %vm3372_vm4, %v8115_v43  ;;  %9484 = vmatprep.subr.mxu0 %v8125_v32 }
 0xa85   : > { %9485 = vmatpush3.msra.mxu0 %v8125_v32  ;;  %v8156_v32 = vld [vmem:[%s12032_s10 + $0x48] sm:$0xff] }
 0xa86   : > { %9489 = vmatprep.subr.mxu0 %v11215_v14 }
 0xb34   : > { %v9440_v21 = vpop.f32.mrf.mxu0 }
 0xb35   : > { %v4379_v56 = vadd.f32 %v9440_v21, %v4210_v16 }
 0xb36   : > { %v4369_v59 = vpop.f32.mrf.mxu0 }
 0xb37   : > { %v4378_v10 = vadd.f32 %v4369_v59, %v4209_v18 }
 0xb44   : > { %v9459_v51 = vpop.f32.mrf.mxu0 }
 0xb46   : > { %v4455_v61 = vpop.f32.mrf.mxu0 }
 0xb47   : > { %9462 = vmatprep.mubr.msk.f32.mxu1 %vm3541_vm5, %v4455_v61  ;;  %v8160_v61 = vld [vmem:[%s12032_s10 + $0x50] sm:$0xff] }
 0xb48   : > { %9463 = vmatmul.mubr.msk.f32.vlgmr.msra.gmra.mxu1 %vm3541_vm5, %v9459_v51 }
 0xb49   : > { %9466 = vmatpush3.msra.mxu1 %v11215_v14  ;;  %9481 = vmatprep.mubr.msk.f32.mxu1 %vm3372_vm4, %v8121_v5 }
 0xb4a   : > { %9467 = vmatprep.subr.mxu1 %v11218_v35 }
 0xb4b   : > { %9468 = vmatpush3.msra.mxu1 %v11218_v35 }
 0xb4c   : > { %9469 = vmatprep.subr.mxu1 %v11224_v29 }
 0xb4d   : > { %9470 = vmatpush3.msra.mxu1 %v11224_v29 }
 0xb4e   : > { %9471 = vmatprep.subr.mxu1 %v11230_v48 }
 0xb4f   : > { %9472 = vmatpush3.msra.mxu1 %v11230_v48 }
 0xb50   : > { %9473 = vmatprep.subr.mxu1 %v11236_v44 }
 0xb51   : > { %9474 = vmatpush3.msra.mxu1 %v11236_v44 }
 0xb52   : > { %9475 = vmatprep.subr.mxu1 %v11242_v0 }
 0xb53   : > { %9476 = vmatpush3.msra.mxu1 %v11242_v0 }
 0xb54   : > { %9477 = vmatprep.subr.mxu1 %v11248_v39 }
 0xb55   : > { %9478 = vmatpush3.msra.mxu1 %v11248_v39 }
 0xb56   : > { %9479 = vmatprep.subr.mxu1 %v11254_v3 }
 0xb57   : > { %9480 = vmatpush3.msra.mxu1 %v11254_v3 }
 0xb58   : > { %9482 = vmatmul.mubr.msk.f32.vlgmr.msra.gmra.mxu1 %vm3372_vm4, %v8122_v7  ;;  %v8166_v7 = vld [vmem:[%s12032_s10 + $0x68] sm:$0xff] }
 0xc08   : > { %v9464_v9 = vpop.f32.mrf.mxu1 }
 0xc09   : > { %v4548_v11 = vadd.f32 %v9464_v9, %v4379_v56  ;;  %v8155_v56 = vld [vmem:[%s12032_s10 + $0x40] sm:$0xff] }
 0xc0a   : > { %v4538_v13 = vpop.f32.mrf.mxu1 }
 0xc0b   : > { %v4547_v15 = vadd.f32 %v4538_v13, %v4378_v10  ;;  %v8161_v10 = vld [vmem:[%s12032_s10 + $0x58] sm:$0xff] }
 0xc18   : > { %v9483_v17 = vpop.f32.mrf.mxu1 }
 0xc1a   : > { %v4624_v20 = vpop.f32.mrf.mxu1 }
 0xc1b   : > { %9486 = vmatprep.mubr.msk.f32.mxu0 %vm3541_vm5, %v4624_v20  ;;  %v8170_v20 = vld [vmem:[%s12032_s10 + $0x70] sm:$0xff] }
 0xc1c   : > { %9487 = vmatmul.mubr.msk.f32.vlgmr.msra.gmra.mxu0 %vm3541_vm5, %v9483_v17 }
 0xc1d   : > { %9490 = vmatpush3.msra.mxu0 %v11215_v14  ;;  %9505 = vmatprep.mubr.msk.f32.mxu0 %vm3372_vm4, %v8128_v22  ;;  %v8129_v14 = vld [vmem:[%s12028_s6 + $0x88] sm:$0xff] }
 0xc1e   : > { %9491 = vmatprep.subr.mxu0 %v11218_v35 }
 0xc1f   : > { %9492 = vmatpush3.msra.mxu0 %v11218_v35  ;;  %v8132_v35 = vld [vmem:[%s12029_s7 + $0x40] sm:$0xff] }
 0xc20   : > { %9493 = vmatprep.subr.mxu0 %v11224_v29  ;;  %9508 = vmatprep.subr.mxu1 %v8132_v35 }
 0xc21   : > { %9494 = vmatpush3.msra.mxu0 %v11224_v29  ;;  %9509 = vmatpush3.msra.mxu1 %v8132_v35 }
 0xc22   : > { %9495 = vmatprep.subr.mxu0 %v11230_v48  ;;  %9513 = vmatprep.subr.mxu1 %v9905_v28 }
 0xc23   : > { %9496 = vmatpush3.msra.mxu0 %v11230_v48 }
 0xc24   : > { %9497 = vmatprep.subr.mxu0 %v11236_v44 }
 0xc25   : > { %9498 = vmatpush3.msra.mxu0 %v11236_v44 }
 0xc26   : > { %9499 = vmatprep.subr.mxu0 %v11242_v0 }
 0xc27   : > { %9500 = vmatpush3.msra.mxu0 %v11242_v0 }
 0xc28   : > { %9501 = vmatprep.subr.mxu0 %v11248_v39 }
 0xc29   : > { %9502 = vmatpush3.msra.mxu0 %v11248_v39 }
 0xc2a   : > { %9503 = vmatprep.subr.mxu0 %v11254_v3 }
 0xc2b   : > { %9504 = vmatpush3.msra.mxu0 %v11254_v3 }
 0xc2c   : > { %9506 = vmatmul.mubr.msk.f32.vlgmr.msra.gmra.mxu0 %vm3372_vm4, %v8129_v14  ;;  %9534 = vmatprep.subr.mxu0 %v9905_v28  ;;  %v8176_v14 = vld [vmem:[%s12032_s10 + $0x88] sm:$0xff] }
 0xc2d   : > { %9538 = vmatprep.mubr.msk.f32.mxu0 %vm9906_vm6, %v9905_v28  ;;  %9535 = vmatpush3.msra.mxu0 %v4976_v30 }
 0xc2e   : > { %9536 = vmatprep.subr.mxu0 %v9905_v28 }
 0xc2f   : > { %9537 = vmatpush3.msra.mxu0 %v4975_v57 }
 0xc30   : > { %9548 = vmatprep.subr.mxu0 %v9905_v28 }
 0xcdc   : > { %v9488_v29 = vpop.f32.mrf.mxu0 }
 0xcdd   : > { %v4717_v48 = vadd.f32 %v9488_v29, %v4548_v11  ;;  %v8165_v11 = vld [vmem:[%s12032_s10 + $0x60] sm:$0xff] }
 0xcde   : > { %v4707_v44 = vpop.f32.mrf.mxu0  ;;  %v8175_v29 = vld [vmem:[%s12032_s10 + $0x80] sm:$0xff] }
 0xcdf   : > { %v4716_v0 = vadd.f32 %v4707_v44, %v4547_v15  ;;  %v8171_v15 = vld [vmem:[%s12032_s10 + $0x78] sm:$0xff] }
 0xcec   : > { %v9507_v39 = vpop.f32.mrf.mxu0 }
 0xcee   : > { %v4793_v25 = vpop.f32.mrf.mxu0 }
 0xcef   : > { %9510 = vmatprep.mubr.msk.f32.mxu1 %vm3541_vm5, %v4793_v25 }
 0xcf0   : > { %9511 = vmatmul.mubr.msk.f32.vlgmr.msra.gmra.mxu1 %vm3541_vm5, %v9507_v39 }
 0xcf1   : > { %9517 = vmatprep.mubr.msk.f32.mxu1 %vm9906_vm6, %v9905_v28 }
 0xdb0   : > { %v9512_v3 = vpop.f32.mrf.mxu1 }
 0xdb1   : > { %v4886_v34 = vadd.f32 %v9512_v3, %v4717_v48 }
 0xdb2   : > { %v4876_v36 = vpop.f32.mrf.mxu1 }
 0xdb3   : > { %v4895_v54 = vadd.f32 %v8135_v31, %v4886_v34  ;;  %v4885_v50 = vadd.f32 %v4876_v36, %v4716_v0 }
 0xdb5   : > { %v4897_v2 = vmul.f32 0.2, %v4895_v54  ;;  %v4894_v45 = vadd.f32 %v8135_v31, %v4885_v50 }
 0xdb7   : > { %v11494_v52 = vmax.f32 %v4895_v54, %v4897_v2  ;;  %v4896_v62 = vmul.f32 0.2, %v4894_v45 }
 0xdb9   : > { %v11496_v63 = vmax.f32 %v4894_v45, %v4896_v62  ;;  %9514 = vmatpush3.msra.mxu1 %v11494_v52 }
 0xdba   : > { %9515 = vmatprep.subr.mxu1 %v9905_v28 }
 0xdbb   : > { %9516 = vmatpush3.msra.mxu1 %v11496_v63 }
 0xdbc   : > { %9518 = vmatmul.mubr.msk.f32.vlgmr.msra.gmra.mxu1 %vm4901_vm7, %v4900_v24  ;;  %9520 = vmatprep.subr.mxu1 %v9905_v28 }
 0xdbd   : > { %9521 = vmatpush3.msra.mxu1 %v11494_v52  ;;  %9524 = vmatprep.mubr.msk.f32.mxu1 %vm9906_vm6, %v9905_v28 }
 0xdbe   : > { %9522 = vmatprep.subr.mxu1 %v9905_v28 }
 0xdbf   : > { %9523 = vmatpush3.msra.mxu1 %v11496_v63 }
 0xdc0   : > { %9525 = vmatmul.mubr.msk.f32.vlgmr.msra.gmra.mxu1 %vm4901_vm7, %v8137_v40  ;;  %9527 = vmatprep.subr.mxu1 %v9905_v28 }
 0xdc1   : > { %9531 = vmatprep.mubr.msk.f32.mxu1 %vm9906_vm6, %v9905_v28  ;;  %9528 = vmatpush3.msra.mxu1 %v8140_v1 }
 0xdc2   : > { %9529 = vmatprep.subr.mxu1 %v9905_v28 }
 0xdc3   : > { %9530 = vmatpush3.msra.mxu1 %v8139_v53 }
 0xdc4   : > { %9541 = vmatprep.subr.mxu1 %v9905_v28 }
 0xe7c   : > { %v4971_v55 = vpop.f32.mrf.mxu1 }
 0xe7d   : > { %9539 = vmatmul.mubr.msk.f32.vlgmr.msra.gmra.mxu0 %vm4901_vm7, %v4971_v55  ;;  %v8178_v55 = vld [vmem:[%s12033_s11] ss:$0 sm:$0xff] }
 0xe7e   : > { %v9519_v37 = vpop.f32.mrf.mxu1  ;;  %9552 = vmatprep.mubr.msk.f32.mxu0 %vm9906_vm6, %v9905_v28  ;;  %9549 = vmatpush3.msra.mxu0 %v8146_v41  ;;  %v8184_v41 = vld [vmem:[%s12035_s13 + $0x20] sm:$0xff] }
 0xe7f   : > { %9550 = vmatprep.subr.mxu0 %v9905_v28 }
 0xe80   : > { %v5048_v27 = vpop.f32.mrf.mxu1  ;;  %9551 = vmatpush3.msra.mxu0 %v8145_v47  ;;  %v6355_v47 = vld [vmem:[%s12035_s13 + $0x18] sm:$0xff] }
 0xe81   : > { %9532 = vmatmul.mubr.msk.f32.vlgmr.msra.gmra.mxu1 %vm4901_vm7, %v5048_v27  ;;  %9562 = vmatprep.subr.mxu0 %v9905_v28 }
 0xe82   : > { %9542 = vmatpush3.msra.mxu1 %v11494_v52  ;;  %9545 = vmatprep.mubr.msk.f32.mxu1 %vm9906_vm6, %v9905_v28  ;;  %v9526_v33 = vpop.f32.mrf.mxu1 }
 0xe83   : > { %9543 = vmatprep.subr.mxu1 %v9905_v28 }
 0xe84   : > { %9544 = vmatpush3.msra.mxu1 %v11496_v63 }
 0xe85   : > { %9555 = vmatprep.subr.mxu1 %v9905_v28  ;;  %9546 = vmatmul.mubr.msk.f32.vlgmr.msra.gmra.mxu1 %vm4901_vm7, %v8143_v19 }
 0xe86   : > { %9556 = vmatpush3.msra.mxu1 %v11494_v52  ;;  %9559 = vmatprep.mubr.msk.f32.mxu1 %vm9906_vm6, %v9905_v28 }
 0xe87   : > { %9557 = vmatprep.subr.mxu1 %v9905_v28 }
 0xe88   : > { %9558 = vmatpush3.msra.mxu1 %v11496_v63 }
 0xe89   : > { %9569 = vmatprep.subr.mxu1 %v9905_v28  ;;  %9560 = vmatmul.mubr.msk.f32.vlgmr.msra.gmra.mxu1 %vm4901_vm7, %v8148_v42 }
 0xe8a   : > { %9570 = vmatpush3.msra.mxu1 %v11494_v52  ;;  %9573 = vmatprep.mubr.msk.f32.mxu1 %vm9906_vm6, %v9905_v28 }
 0xe8b   : > { %9571 = vmatprep.subr.mxu1 %v9905_v28 }
 0xe8c   : > { %9572 = vmatpush3.msra.mxu1 %v11496_v63 }
 0xe8d   : > { %9583 = vmatprep.subr.mxu1 %v9905_v28  ;;  %9574 = vmatmul.mubr.msk.f32.vlgmr.msra.gmra.mxu1 %vm4901_vm7, %v8153_v4  ;;  %v8181_v4 = vld [vmem:[%s12034_s12 + $0x1] sm:$0x1] }
 0xe8e   : > { %9584 = vmatpush3.msra.mxu1 %v11494_v52  ;;  %9587 = vmatprep.mubr.msk.f32.mxu1 %vm9906_vm6, %v9905_v28 }
 0xe8f   : > { %9585 = vmatprep.subr.mxu1 %v9905_v28 }
 0xe90   : > { %9586 = vmatpush3.msra.mxu1 %v11496_v63 }
 0xe91   : > { %9597 = vmatprep.subr.mxu1 %v9905_v28  ;;  %9588 = vmatmul.mubr.msk.f32.vlgmr.msra.gmra.mxu1 %vm4901_vm7, %v8158_v12  ;;  %v6275_v12 = vld [vmem:[%s12034_s12] sm:$0x1] }
 0xe92   : > { %9598 = vmatpush3.msra.mxu1 %v11494_v52  ;;  %9601 = vmatprep.mubr.msk.f32.mxu1 %vm9906_vm6, %v9905_v28 }
 0xe93   : > { %9599 = vmatprep.subr.mxu1 %v9905_v28 }
 0xe94   : > { %9600 = vmatpush3.msra.mxu1 %v11496_v63 }
 0xe95   : > { %9611 = vmatprep.subr.mxu1 %v9905_v28  ;;  %9602 = vmatmul.mubr.msk.f32.vlgmr.msra.gmra.mxu1 %vm4901_vm7, %v8163_v49  ;;  %v8187_v49 = vld [vmem:[%s12035_s13 + $0x38] sm:$0xff] }
 0xe96   : > { %9612 = vmatpush3.msra.mxu1 %v11494_v52  ;;  %9615 = vmatprep.mubr.msk.f32.mxu1 %vm9906_vm6, %v9905_v28 }
 0xe97   : > { %9613 = vmatprep.subr.mxu1 %v9905_v28 }
 0xe98   : > { %9614 = vmatpush3.msra.mxu1 %v11496_v63 }
 0xe99   : > { %9625 = vmatprep.subr.mxu1 %v9905_v28  ;;  %9616 = vmatmul.mubr.msk.f32.vlgmr.msra.gmra.mxu1 %vm4901_vm7, %v8168_v8  ;;  %v8186_v8 = vld [vmem:[%s12035_s13 + $0x30] sm:$0xff] }
 0xe9a   : > { %9626 = vmatpush3.msra.mxu1 %v11494_v52  ;;  %9629 = vmatprep.mubr.msk.f32.mxu1 %vm9906_vm6, %v9905_v28 }
 0xe9b   : > { %9627 = vmatprep.subr.mxu1 %v9905_v28 }
 0xe9c   : > { %9628 = vmatpush3.msra.mxu1 %v11496_v63 }
 0xe9d   : > { %9630 = vmatmul.mubr.msk.f32.vlgmr.msra.gmra.mxu1 %vm4901_vm7, %v8173_v38  ;;  %9639 = vmatprep.subr.mxu1 %v9905_v28  ;;  %v8185_v38 = vld [vmem:[%s12035_s13 + $0x28] sm:$0xff] }
 0xe9e   : > { %9641 = vmatprep.mubr.msk.f32.mxu1 %vm9906_vm6, %v9905_v28 }
 0xf3d   : > { %v5197_v60 = vpop.f32.mrf.mxu0 }
 0xf3f   : > { %v9540_v58 = vpop.f32.mrf.mxu0 }
 0xf40   : > { %v6353_v58 = vld [vmem:[%s12035_s13 + $0x8] sm:$0xff] }
 0xf41   : > { %v5124_v16 = vpop.f32.mrf.mxu1 }
 0xf42   : > { %v11618_v46 = vadd.f32 %v5197_v60, %v5124_v16  ;;  %v6354_v60 = vld [vmem:[%s12035_s13 + $0x10] sm:$0xff]  ;;  %v6352_v16 = vld [vmem:[%s12035_s13] sm:$0xff] }
 0xf43   : > { %v9533_v18 = vpop.f32.mrf.mxu1 }
 0xf45   : > { %v5272_v23 = vpop.f32.mrf.mxu1 }
 0xf46   : > { %9553 = vmatmul.mubr.msk.f32.vlgmr.msra.gmra.mxu0 %vm4901_vm7, %v5272_v23  ;;  %v8190_v23 = vld [vmem:[%s12034_s12 + $0x2] sm:$0x1] }
 0xf47   : > { %v9547_v43 = vpop.f32.mrf.mxu1  ;;  %9563 = vmatpush3.msra.mxu0 %v8151_v6  ;;  %9566 = vmatprep.mubr.msk.f32.mxu0 %vm9906_vm6, %v9905_v28  ;;  %v8196_v6 = vld [vmem:[%s12035_s13 + $0x58] sm:$0xff] }
 0xf48   : > { %9564 = vmatprep.subr.mxu0 %v9905_v28 }
 0xf49   : > { %v5424_v21 = vpop.f32.mrf.mxu1  ;;  %9565 = vmatpush3.msra.mxu0 %v8150_v26 }
 0xf4a   : > { %9567 = vmatmul.mubr.msk.f32.vlgmr.msra.gmra.mxu0 %vm4901_vm7, %v5424_v21  ;;  %9576 = vmatprep.subr.mxu0 %v9905_v28  ;;  %v8198_v21 = vld [vmem:[%s12034_s12 + $0x3] sm:$0x1] }
 0xf4b   : > { %v9561_v59 = vpop.f32.mrf.mxu1  ;;  %9577 = vmatpush3.msra.mxu0 %v8156_v32  ;;  %9580 = vmatprep.mubr.msk.f32.mxu0 %vm9906_vm6, %v9905_v28  ;;  %v8195_v32 = vld [vmem:[%s12035_s13 + $0x50] sm:$0xff] }
 0xf4c   : > { %9578 = vmatprep.subr.mxu0 %v9905_v28  ;;  %v8204_v59 = vld [vmem:[%s12035_s13 + $0x78] sm:$0xff] }
 0xf4d   : > { %v5576_v51 = vpop.f32.mrf.mxu1  ;;  %9579 = vmatpush3.msra.mxu0 %v8155_v56  ;;  %v8194_v56 = vld [vmem:[%s12035_s13 + $0x48] sm:$0xff] }
 0xf4e   : > { %9581 = vmatmul.mubr.msk.f32.vlgmr.msra.gmra.mxu0 %vm4901_vm7, %v5576_v51  ;;  %9590 = vmatprep.subr.mxu0 %v9905_v28  ;;  %v8203_v51 = vld [vmem:[%s12035_s13 + $0x70] sm:$0xff] }
 0xf4f   : > { %v9575_v5 = vpop.f32.mrf.mxu1  ;;  %9591 = vmatpush3.msra.mxu0 %v8161_v10  ;;  %9594 = vmatprep.mubr.msk.f32.mxu0 %vm9906_vm6, %v9905_v28  ;;  %v8193_v10 = vld [vmem:[%s12035_s13 + $0x40] sm:$0xff] }
 0xf50   : > { %9592 = vmatprep.subr.mxu0 %v9905_v28  ;;  %v8201_v5 = vld [vmem:[%s12035_s13 + $0x60] sm:$0xff] }
 0xf51   : > { %v5728_v9 = vpop.f32.mrf.mxu1  ;;  %9593 = vmatpush3.msra.mxu0 %v8160_v61  ;;  %v8202_v61 = vld [vmem:[%s12035_s13 + $0x68] sm:$0xff] }
 0xf52   : > { %9595 = vmatmul.mubr.msk.f32.vlgmr.msra.gmra.mxu0 %vm4901_vm7, %v5728_v9  ;;  %9604 = vmatprep.subr.mxu0 %v9905_v28 }
 0xf53   : > { %v9589_v13 = vpop.f32.mrf.mxu1  ;;  %9605 = vmatpush3.msra.mxu0 %v8166_v7  ;;  %9608 = vmatprep.mubr.msk.f32.mxu0 %vm9906_vm6, %v9905_v28 }
 0xf54   : > { %9606 = vmatprep.subr.mxu0 %v9905_v28 }
 0xf55   : > { %v5880_v17 = vpop.f32.mrf.mxu1  ;;  %9607 = vmatpush3.msra.mxu0 %v8165_v11 }
 0xf56   : > { %9609 = vmatmul.mubr.msk.f32.vlgmr.msra.gmra.mxu0 %vm4901_vm7, %v5880_v17  ;;  %9618 = vmatprep.subr.mxu0 %v9905_v28 }
 0xf57   : > { %v9603_v22 = vpop.f32.mrf.mxu1  ;;  %9619 = vmatpush3.msra.mxu0 %v8171_v15  ;;  %9622 = vmatprep.mubr.msk.f32.mxu0 %vm9906_vm6, %v9905_v28 }
 0xf58   : > { %9620 = vmatprep.subr.mxu0 %v9905_v28  ;;  %v8206_v22 = vld [vmem:[%s12034_s12 + $0x4] sm:$0x1] }
 0xf59   : > { %v6032_v35 = vpop.f32.mrf.mxu1  ;;  %9621 = vmatpush3.msra.mxu0 %v8170_v20 }
 0xf5a   : > { %9623 = vmatmul.mubr.msk.f32.vlgmr.msra.gmra.mxu0 %vm4901_vm7, %v6032_v35  ;;  %9632 = vmatprep.subr.mxu0 %v9905_v28  ;;  %v8212_v35 = vld [vmem:[%s12035_s13 + $0x98] sm:$0xff] }
 0xf5b   : > { %v9617_v48 = vpop.f32.mrf.mxu1  ;;  %9633 = vmatpush3.msra.mxu0 %v8176_v14  ;;  %9636 = vmatprep.mubr.msk.f32.mxu0 %vm9906_vm6, %v9905_v28 }
 0xf5c   : > { %9634 = vmatprep.subr.mxu0 %v9905_v28  ;;  %v8211_v48 = vld [vmem:[%s12035_s13 + $0x90] sm:$0xff] }
 0xf5d   : > { %v6184_v44 = vpop.f32.mrf.mxu1  ;;  %9635 = vmatpush3.msra.mxu0 %v8175_v29  ;;  %v8214_v29 = vld [vmem:[%s12034_s12 + $0x5] sm:$0x1] }
 0xf5e   : > { %9637 = vmatmul.mubr.msk.f32.vlgmr.msra.gmra.mxu0 %vm4901_vm7, %v6184_v44  ;;  %9644 = vmatprep.subr.mxu0 %v9905_v28 }
 0xf5f   : > { %v9631_v0 = vpop.f32.mrf.mxu1  ;;  %9646 = vmatprep.mubr.msk.f32.mxu0 %vm9906_vm6, %v9905_v28 }
 0xf60   : > { %v8210_v0 = vld [vmem:[%s12035_s13 + $0x88] sm:$0xff] }
0x1006   : > { %v5348_v39 = vpop.f32.mrf.mxu0 }
0x1007   : > { %v5352_v50 = vadd.f32 %v5348_v39, %v11618_v46  ;;  %v8220_v39 = vld [vmem:[%s12035_s13 + $0xb8] sm:$0xff] }
0x1008   : > { %v9554_v25 = vpop.f32.mrf.mxu0 }
0x1009   : > { %v8209_v25 = vld [vmem:[%s12035_s13 + $0x80] sm:$0xff] }
0x100a   : > { %v5500_v3 = vpop.f32.mrf.mxu0 }
0x100b   : > { %v5504_v45 = vadd.f32 %v5500_v3, %v5352_v50  ;;  %v8219_v3 = vld [vmem:[%s12035_s13 + $0xb0] sm:$0xff] }
0x100c   : > { %v9568_v31 = vpop.f32.mrf.mxu0 }
0x100d   : > { %v8218_v31 = vld [vmem:[%s12035_s13 + $0xa8] sm:$0xff] }
0x100e   : > { %v5652_v34 = vpop.f32.mrf.mxu0 }
0x100f   : > { %v5656_v62 = vadd.f32 %v5652_v34, %v5504_v45  ;;  %v8217_v34 = vld [vmem:[%s12035_s13 + $0xa0] sm:$0xff] }
0x1010   : > { %v9582_v36 = vpop.f32.mrf.mxu0 }
0x1012   : > { %v5804_v54 = vpop.f32.mrf.mxu0 }
0x1013   : > { %v5808_v24 = vadd.f32 %v5804_v54, %v5656_v62 }
0x1014   : > { %v9596_v2 = vpop.f32.mrf.mxu0 }
0x1016   : > { %v5956_v52 = vpop.f32.mrf.mxu0 }
0x1017   : > { %v5960_v30 = vadd.f32 %v5956_v52, %v5808_v24 }
0x1018   : > { %v9610_v63 = vpop.f32.mrf.mxu0 }
0x1019   : > { %v8222_v63 = vld [vmem:[%s12034_s12 + $0x6] sm:$0x1] }
0x101a   : > { %v6108_v40 = vpop.f32.mrf.mxu0 }
0x101b   : > { %v6112_v57 = vadd.f32 %v6108_v40, %v5960_v30  ;;  %v8228_v30 = vld [vmem:[%s12035_s13 + $0xd8] sm:$0xff] }
0x101c   : > { %v9624_v1 = vpop.f32.mrf.mxu0 }
0x101d   : > { %v8230_v1 = vld [vmem:[%s12034_s12 + $0x7] sm:$0x1] }
0x101e   : > { %v6260_v53 = vpop.f32.mrf.mxu0 }
0x101f   : > { %v6264_v37 = vadd.f32 %v6260_v53, %v6112_v57  ;;  %v8227_v57 = vld [vmem:[%s12035_s13 + $0xd0] sm:$0xff] }
0x1020   : > { %v9638_v27 = vpop.f32.mrf.mxu0 }
0x1021   : > { %v6272_v19 = vadd.f32 %v8178_v55, %v6264_v37  ;;  %v8226_v55 = vld [vmem:[%s12035_s13 + $0xc8] sm:$0xff]  ;;  %v8236_v37 = vld [vmem:[%s12035_s13 + $0xf8] sm:$0xff]  ;;  %v8225_v27 = vld [vmem:[%s12035_s13 + $0xc0] sm:$0xff] }
0x1023   : > { %v6273_v33 = vmul.f32 0.2, %v6272_v19 }
0x1025   : > { %v11693_v42 = vmax.f32 %v6272_v19, %v6273_v33  ;;  %v8235_v19 = vld [vmem:[%s12035_s13 + $0xf0] sm:$0xff]  ;;  %v8234_v33 = vld [vmem:[%s12035_s13 + $0xe8] sm:$0xff] }
0x1027   : > { %9640 = vmatpush3.msk.msra.mxu1 %vm1250_vm2, %v11693_v42  ;;  %9645 = vmatpush3.msk.msra.mxu0 %vm1250_vm2, %v11693_v42 }
0x1028   : > { %9647 = vmatmul.mubr.msk.f32.vlgmr.msra.gmra.mxu0 %vm1225_vm3, %v8181_v4  ;;  %9642 = vmatmul.mubr.msk.f32.vlgmr.msra.gmra.mxu1 %vm1225_vm3, %v6275_v12  ;;  %v8233_v4 = vld [vmem:[%s12035_s13 + $0xe0] sm:$0xff] }
0x1029   : > { %9649 = vmatprep.subr.mxu1 %v9905_v28  ;;  %9657 = vmatprep.mubr.msk.f32.mxu1 %vm9906_vm6, %v9905_v28 }
0x102a   : > { %9650 = vmatpush3.msra.mxu1 %v8187_v49  ;;  %9660 = vmatprep.subr.mxu0 %v9905_v28 }
0x102b   : > { %9651 = vmatprep.subr.mxu1 %v9905_v28  ;;  %9668 = vmatprep.mubr.msk.f32.mxu0 %vm9906_vm6, %v9905_v28 }
0x102c   : > { %9652 = vmatpush3.msra.mxu1 %v8186_v8  ;;  %9661 = vmatpush3.msra.mxu0 %v6355_v47 }
0x102d   : > { %9653 = vmatprep.subr.mxu1 %v9905_v28  ;;  %9662 = vmatprep.subr.mxu0 %v9905_v28 }
0x102e   : > { %9654 = vmatpush3.msra.mxu1 %v8185_v38  ;;  %9663 = vmatpush3.msra.mxu0 %v6354_v60 }
0x102f   : > { %9655 = vmatprep.subr.mxu1 %v9905_v28  ;;  %9664 = vmatprep.subr.mxu0 %v9905_v28 }
0x1030   : > { %9656 = vmatpush3.msra.mxu1 %v8184_v41  ;;  %9665 = vmatpush3.msra.mxu0 %v6353_v58  ;;  %v8238_v58 = vld [vmem:[%s12034_s12 + $0x8] sm:$0x1] }
0x1031   : > { %9671 = vmatprep.subr.mxu1 %v9905_v28  ;;  %9666 = vmatprep.subr.mxu0 %v9905_v28 }
0x1032   : > { %9667 = vmatpush3.msra.mxu0 %v6352_v16 }
0x1033   : > { %9676 = vmatprep.subr.mxu0 %v9905_v28 }
0x10e8   : > { %v6427_v46 = vpop.f32.mrf.mxu0  ;;  %v6348_v18 = vpop.f32.mrf.mxu1 }
0x10e9   : > { %9658 = vmatmul.mubr.msk.f32.vlgmr.msra.gmra.mxu1 %vm6436_vm8, %v6427_v46  ;;  %9669 = vmatmul.mubr.msk.f32.vlgmr.msra.gmra.mxu0 %vm6436_vm8, %v6348_v18  ;;  %v8244_v46 = vld [vmem:[%s12035_s13 + $0x118] sm:$0xff] }
0x10ea   : > { %9672 = vmatpush3.msk.msra.mxu1 %vm1250_vm2, %v11693_v42  ;;  %9673 = vmatprep.mubr.msk.f32.mxu1 %vm9906_vm6, %v9905_v28  ;;  %v9648_v26 = vpop.f32.mrf.mxu0  ;;  %v9643_v43 = vpop.f32.mrf.mxu1 }
0x10eb   : > { %9687 = vmatprep.subr.mxu1 %v9905_v28  ;;  %9677 = vmatpush3.msra.mxu0 %v8196_v6  ;;  %v8243_v6 = vld [vmem:[%s12035_s13 + $0x110] sm:$0xff]  ;;  %v8241_v26 = vld [vmem:[%s12035_s13 + $0x100] sm:$0xff]  ;;  %v7672_v43 = vld [vmem:[%s12037_s15 + $0x38] sm:$0xff] }
0x10ec   : > { %9678 = vmatprep.subr.mxu0 %v9905_v28  ;;  %9684 = vmatprep.mubr.msk.f32.mxu0 %vm9906_vm6, %v9905_v28 }
0x10ed   : > { %9674 = vmatmul.mubr.msk.f32.vlgmr.msra.gmra.mxu1 %vm1225_vm3, %v8190_v23  ;;  %9679 = vmatpush3.msra.mxu0 %v8195_v32  ;;  %v8242_v23 = vld [vmem:[%s12035_s13 + $0x108] sm:$0xff]  ;;  %v7671_v32 = vld [vmem:[%s12037_s15 + $0x30] sm:$0xff] }
0x10ee   : > { %9688 = vmatpush3.msk.msra.mxu1 %vm1250_vm2, %v11693_v42  ;;  %9689 = vmatprep.mubr.msk.f32.mxu1 %vm9906_vm6, %v9905_v28 }
0x10ef   : > { %9680 = vmatprep.subr.mxu0 %v9905_v28  ;;  %9692 = vmatprep.subr.mxu1 %v9905_v28 }
0x10f0   : > { %9681 = vmatpush3.msra.mxu0 %v8194_v56 }
0x10f1   : > { %9690 = vmatmul.mubr.msk.f32.vlgmr.msra.gmra.mxu1 %vm1225_vm3, %v8198_v21  ;;  %9682 = vmatprep.subr.mxu0 %v9905_v28  ;;  %v7670_v21 = vld [vmem:[%s12037_s15 + $0x28] sm:$0xff] }
0x10f2   : > { %9700 = vmatprep.mubr.msk.f32.mxu1 %vm9906_vm6, %v9905_v28  ;;  %9693 = vmatpush3.msra.mxu1 %v8204_v59 }
0x10f3   : > { %9694 = vmatprep.subr.mxu1 %v9905_v28  ;;  %9683 = vmatpush3.msra.mxu0 %v8193_v10 }
0x10f4   : > { %9695 = vmatpush3.msra.mxu1 %v8203_v51  ;;  %9703 = vmatprep.subr.mxu0 %v9905_v28 }
0x10f5   : > { %9696 = vmatprep.subr.mxu1 %v9905_v28 }
0x10f6   : > { %9697 = vmatpush3.msra.mxu1 %v8202_v61 }
0x10f7   : > { %9698 = vmatprep.subr.mxu1 %v9905_v28 }
0x10f8   : > { %9699 = vmatpush3.msra.mxu1 %v8201_v5 }
0x10f9   : > { %9719 = vmatprep.subr.mxu1 %v9905_v28 }
0x11a9   : > { %v6506_v7 = vpop.f32.mrf.mxu1  ;;  %v6579_v9 = vpop.f32.mrf.mxu0 }
0x11aa   : > { %v6580_v11 = vadd.f32 %v6579_v9, %v6506_v7 }
0x11ab   : > { %v9659_v13 = vpop.f32.mrf.mxu1  ;;  %v9670_v15 = vpop.f32.mrf.mxu0 }
0x11ac   : > { %v7668_v13 = vld [vmem:[%s12037_s15 + $0x18] sm:$0xff]  ;;  %v7667_v15 = vld [vmem:[%s12037_s15 + $0x10] sm:$0xff] }
0x11ad   : > { %v6654_v17 = vpop.f32.mrf.mxu1 }
0x11ae   : > { %9685 = vmatmul.mubr.msk.f32.vlgmr.msra.gmra.mxu0 %vm6436_vm8, %v6654_v17  ;;  %v7666_v17 = vld [vmem:[%s12037_s15 + $0x8] sm:$0xff] }
0x11af   : > { %9704 = vmatpush3.msk.msra.mxu0 %vm1250_vm2, %v11693_v42  ;;  %v9675_v20 = vpop.f32.mrf.mxu1  ;;  %9705 = vmatprep.mubr.msk.f32.mxu0 %vm9906_vm6, %v9905_v28 }
0x11b0   : > { %9708 = vmatprep.subr.mxu0 %v9905_v28  ;;  %v7665_v20 = vld [vmem:[%s12037_s15] sm:$0xff] }
0x11b1   : > { %v6808_v14 = vpop.f32.mrf.mxu1 }
0x11b2   : > { %9701 = vmatmul.mubr.msk.f32.vlgmr.msra.gmra.mxu1 %vm6436_vm8, %v6808_v14  ;;  %9706 = vmatmul.mubr.msk.f32.vlgmr.msra.gmra.mxu0 %vm1225_vm3, %v8206_v22  ;;  %v7661_v14 = vld [vmem:[%s12036_s14] sm:$0x1] }
0x11b3   : > { %9720 = vmatpush3.msk.msra.mxu1 %vm1250_vm2, %v11693_v42  ;;  %9721 = vmatprep.mubr.msk.f32.mxu1 %vm9906_vm6, %v9905_v28  ;;  %v9691_v44 = vpop.f32.mrf.mxu1 }
0x11b4   : > { %9709 = vmatpush3.msra.mxu0 %v8212_v35  ;;  %9724 = vmatprep.subr.mxu1 %v9905_v28 }
0x11b5   : > { %9710 = vmatprep.subr.mxu0 %v9905_v28  ;;  %9716 = vmatprep.mubr.msk.f32.mxu0 %vm9906_vm6, %v9905_v28 }
0x11b6   : > { %9722 = vmatmul.mubr.msk.f32.vlgmr.msra.gmra.mxu1 %vm1225_vm3, %v8214_v29  ;;  %9711 = vmatpush3.msra.mxu0 %v8211_v48 }
0x11b7   : > { %9712 = vmatprep.subr.mxu0 %v9905_v28  ;;  %9732 = vmatprep.mubr.msk.f32.mxu1 %vm9906_vm6, %v9905_v28 }
0x11b8   : > { %9713 = vmatpush3.msra.mxu0 %v8210_v0  ;;  %9725 = vmatpush3.msra.mxu1 %v8220_v39  ;;  %v7673_v39 = vld [vmem:[%s12038_s16] sm:$0x1] }
0x11b9   : > { %9714 = vmatprep.subr.mxu0 %v9905_v28  ;;  %9726 = vmatprep.subr.mxu1 %v9905_v28 }
0x11ba   : > { %9715 = vmatpush3.msra.mxu0 %v8209_v25  ;;  %9727 = vmatpush3.msra.mxu1 %v8219_v3 }
0x11bb   : > { %9728 = vmatprep.subr.mxu1 %v9905_v28  ;;  %9735 = vmatprep.subr.mxu0 %v9905_v28 }
0x11bc   : > { %9729 = vmatpush3.msra.mxu1 %v8218_v31 }
0x11bd   : > { %9730 = vmatprep.subr.mxu1 %v9905_v28 }
0x11be   : > { %9731 = vmatpush3.msra.mxu1 %v8217_v34 }
0x11bf   : > { %9751 = vmatprep.subr.mxu1 %v9905_v28 }
0x126e   : > { %v6732_v36 = vpop.f32.mrf.mxu0 }
0x126f   : > { %v6736_v54 = vadd.f32 %v6732_v36, %v6580_v11  ;;  %v7669_v11 = vld [vmem:[%s12037_s15 + $0x20] sm:$0xff] }
0x1270   : > { %v9686_v50 = vpop.f32.mrf.mxu0 }
0x1272   : > { %v6886_v2 = vpop.f32.mrf.mxu1  ;;  %v6962_v45 = vpop.f32.mrf.mxu0 }
0x1273   : > { %v6890_v52 = vadd.f32 %v6886_v2, %v6736_v54  ;;  %9717 = vmatmul.mubr.msk.f32.vlgmr.msra.gmra.mxu0 %vm6436_vm8, %v6962_v45 }
0x1274   : > { %9736 = vmatpush3.msk.msra.mxu0 %vm1250_vm2, %v11693_v42  ;;  %v9702_v62 = vpop.f32.mrf.mxu1  ;;  %9737 = vmatprep.mubr.msk.f32.mxu0 %vm9906_vm6, %v9905_v28  ;;  %v9707_v24 = vpop.f32.mrf.mxu0 }
0x1275   : > { %9740 = vmatprep.subr.mxu0 %v9905_v28 }
0x1276   : > { %v7116_v40 = vpop.f32.mrf.mxu1 }
0x1277   : > { %9733 = vmatmul.mubr.msk.f32.vlgmr.msra.gmra.mxu1 %vm6436_vm8, %v7116_v40  ;;  %9738 = vmatmul.mubr.msk.f32.vlgmr.msra.gmra.mxu0 %vm1225_vm3, %v8222_v63 }
0x1278   : > { %9752 = vmatpush3.msk.msra.mxu1 %vm1250_vm2, %v11693_v42  ;;  %9753 = vmatprep.mubr.msk.f32.mxu1 %vm9906_vm6, %v9905_v28  ;;  %v9723_v53 = vpop.f32.mrf.mxu1 }
0x1279   : > { %9741 = vmatpush3.msra.mxu0 %v8228_v30  ;;  %9756 = vmatprep.subr.mxu1 %v9905_v28 }
0x127a   : > { %9742 = vmatprep.subr.mxu0 %v9905_v28  ;;  %9748 = vmatprep.mubr.msk.f32.mxu0 %vm9906_vm6, %v9905_v28 }
0x127b   : > { %9754 = vmatmul.mubr.msk.f32.vlgmr.msra.gmra.mxu1 %vm1225_vm3, %v8230_v1  ;;  %9743 = vmatpush3.msra.mxu0 %v8227_v57 }
0x127c   : > { %9744 = vmatprep.subr.mxu0 %v9905_v28  ;;  %9764 = vmatprep.mubr.msk.f32.mxu1 %vm9906_vm6, %v9905_v28 }
0x127d   : > { %9745 = vmatpush3.msra.mxu0 %v8226_v55  ;;  %9757 = vmatpush3.msra.mxu1 %v8236_v37 }
0x127e   : > { %9746 = vmatprep.subr.mxu0 %v9905_v28  ;;  %9758 = vmatprep.subr.mxu1 %v9905_v28 }
0x127f   : > { %9747 = vmatpush3.msra.mxu0 %v8225_v27  ;;  %9759 = vmatpush3.msra.mxu1 %v8235_v19 }
0x1280   : > { %9767 = vmatprep.subr.mxu0 %v9905_v28  ;;  %9760 = vmatprep.subr.mxu1 %v9905_v28 }
0x1281   : > { %9761 = vmatpush3.msra.mxu1 %v8234_v33 }
0x1282   : > { %9762 = vmatprep.subr.mxu1 %v9905_v28 }
0x1283   : > { %9763 = vmatpush3.msra.mxu1 %v8233_v4 }
0x1284   : > { %9783 = vmatprep.subr.mxu1 %v9905_v28 }
0x1333   : > { %v7040_v12 = vpop.f32.mrf.mxu0 }
0x1334   : > { %v7044_v49 = vadd.f32 %v7040_v12, %v6890_v52 }
0x1335   : > { %v9718_v8 = vpop.f32.mrf.mxu0 }
0x1337   : > { %v7194_v38 = vpop.f32.mrf.mxu1  ;;  %v7270_v41 = vpop.f32.mrf.mxu0 }
0x1338   : > { %v7198_v47 = vadd.f32 %v7194_v38, %v7044_v49  ;;  %9749 = vmatmul.mubr.msk.f32.vlgmr.msra.gmra.mxu0 %vm6436_vm8, %v7270_v41 }
0x1339   : > { %9768 = vmatpush3.msk.msra.mxu0 %vm1250_vm2, %v11693_v42  ;;  %v9734_v60 = vpop.f32.mrf.mxu1  ;;  %9769 = vmatprep.mubr.msk.f32.mxu0 %vm9906_vm6, %v9905_v28  ;;  %v9739_v16 = vpop.f32.mrf.mxu0 }
0x133a   : > { %9772 = vmatprep.subr.mxu0 %v9905_v28 }
0x133b   : > { %v7424_v18 = vpop.f32.mrf.mxu1 }
0x133c   : > { %9765 = vmatmul.mubr.msk.f32.vlgmr.msra.gmra.mxu1 %vm6436_vm8, %v7424_v18  ;;  %9770 = vmatmul.mubr.msk.f32.vlgmr.msra.gmra.mxu0 %vm1225_vm3, %v8238_v58 }
0x133d   : > { %9773 = vmatpush3.msra.mxu0 %v8244_v46  ;;  %v9755_v42 = vpop.f32.mrf.mxu1  ;;  %9780 = vmatprep.mubr.msk.f32.mxu0 %vm9906_vm6, %v9905_v28 }
0x133e   : > { %9774 = vmatprep.subr.mxu0 %v9905_v28  ;;  %9799 = vmatprep.mubr.msk.f32.mxu1 %vm9906_vm6, %v9905_v28 }
0x133f   : > { %9775 = vmatpush3.msra.mxu0 %v8243_v6  ;;  %9784 = vmatpush3.msra.mxu1 %v7672_v43 }
0x1340   : > { %9776 = vmatprep.subr.mxu0 %v9905_v28  ;;  %9785 = vmatprep.subr.mxu1 %v9905_v28 }
0x1341   : > { %9777 = vmatpush3.msra.mxu0 %v8242_v23  ;;  %9786 = vmatpush3.msra.mxu1 %v7671_v32 }
0x1342   : > { %9778 = vmatprep.subr.mxu0 %v9905_v28  ;;  %9787 = vmatprep.subr.mxu1 %v9905_v28 }
0x1343   : > { %9779 = vmatpush3.msra.mxu0 %v8241_v26  ;;  %9788 = vmatpush3.msra.mxu1 %v7670_v21 }
0x1344   : > { %9789 = vmatprep.subr.mxu1 %v9905_v28 }
0x1345   : > { %9790 = vmatpush3.msra.mxu1 %v7669_v11 }
0x1346   : > { %9791 = vmatprep.subr.mxu1 %v9905_v28 }
0x1347   : > { %9792 = vmatpush3.msra.mxu1 %v7668_v13 }
0x1348   : > { %9793 = vmatprep.subr.mxu1 %v9905_v28 }
0x1349   : > { %9794 = vmatpush3.msra.mxu1 %v7667_v15 }
0x134a   : > { %9795 = vmatprep.subr.mxu1 %v9905_v28 }
0x134b   : > { %9796 = vmatpush3.msra.mxu1 %v7666_v17 }
0x134c   : > { %9797 = vmatprep.subr.mxu1 %v9905_v28 }
0x134d   : > { %9798 = vmatpush3.msra.mxu1 %v7665_v20 }
0x13f8   : > { %v7348_v56 = vpop.f32.mrf.mxu0 }
0x13f9   : > { %v7352_v59 = vadd.f32 %v7348_v56, %v7198_v47 }
0x13fa   : > { %v9750_v10 = vpop.f32.mrf.mxu0 }
0x13fc   : > { %v7502_v51 = vpop.f32.mrf.mxu1  ;;  %v7578_v61 = vpop.f32.mrf.mxu0 }
0x13fd   : > { %v7506_v5 = vadd.f32 %v7502_v51, %v7352_v59  ;;  %9781 = vmatmul.mubr.msk.f32.vlgmr.msra.gmra.mxu0 %vm6436_vm8, %v7578_v61 }
0x13fe   : > { %v9771_v7 = vpop.f32.mrf.mxu0  ;;  %v9766_v9 = vpop.f32.mrf.mxu1 }
0x14bd   : > { %v7656_v22 = vpop.f32.mrf.mxu0 }
0x14be   : > { %v7660_v35 = vadd.f32 %v7656_v22, %v7506_v5 }
0x14bf   : > { %v9782_v29 = vpop.f32.mrf.mxu0 }
0x14c0   : > { %v7662_v48 = vadd.f32 %v7661_v14, %v7660_v35 }
0x14c2   : > { %v7663_v44 = vmul.f32 0.2, %v7662_v48 }
0x14c4   : > { %v7664_v0 = vmax.f32 %v7662_v48, %v7663_v44 }
0x14c6   : > { %9800 = vmatmul.mubr.msk.f32.vlgmr.msra.gmra.mxu1 %vm3372_vm4, %v7664_v0 }
0x1586   : > { %v7743_v28 = vpop.f32.mrf.mxu1 }
0x1587   : > { %v7744_v25 = vadd.f32 %v7743_v28, %v7673_v39 }
0x1588   : > { %v9801_v3 = vpop.f32.mrf.mxu1 }
0x1589   : > { %7748 = vst.msk [vmem:[%s540_s20] sm:$0x1] %vm7747_vm9, %v7744_v25 }
0x158a   : > { %9856 = shalt.err (!%p9853_p3)
}
0x158b   : > { %s9857_s19 = scalar_lea.hbm %s11987_s29, 16  ;;  %s9861_s21 = scalar_lea.hbm %s12039_s17, 32 }
0x158c   : > { %p9858_p4 = scmp.ne.s32.totalorder %s11987_s29, %s9857_s19  ;;  %p9862_p9 = scmp.lt.s32.totalorder %s11987_s29, %s12039_s17 }
0x158d   : > { %p9863_p10 = scmp.lt.s32.totalorder %s9861_s21, %s9857_s19 }
0x158e   : > { %p9859_p7 = pnand %p9858_p4, %p10036_p5 }
0x158f   : > { %p9864_p11 = por %p9863_p10, %p9862_p9 }
0x1590   : > { %p9860_p8 = pneg %p9859_p7 }
0x1592   : > { %p9865_p12 = pnand %p9864_p11, %p9860_p8 }
0x1594   : > { %9868 = shalt.err (!%p9865_p12)
}
0x1595   : > { %9802 = dma.vmem_to_hbm [thread:$0]  (%p10036_p5), %s7763_s18, 16, %s11987_s29, %s7750_s30  }
0x1596 PF: > { %s12069_s2 = sld [smem:[#allocation5_spill]]  ;;  %p9808_p13 = scmp.ge.s32.totalorder %s9903_s27, 2 }
0x1598   : > { %p9805_p0 = pnand %p9808_p13, %p10040_p6 }
0x159a   : > { %p9806_p1 = pneg %p9805_p0 }
0x159c   : > { %s7774_s24 = sand.u32 1, %s12069_s2  }
0x159d   : > { %s7775_s26 = scalar_lea.sflag [#allocation3], %s7774_s24 }
0x159e   : > { %9886 = dma.done.wait (%p9806_p1), %s7775_s26, 16  }
0x159f   : > { %9888 = vsyncadd (%p9806_p1), %s7775_s26, 4294967280  ;;  %s12071_s27 = sld [smem:[#allocation7_spill]]  ;;  %s12074_s24 = smov %s9895_s25 }
0x15a0   : > { %s12072_s19 = sld [smem:[#allocation6_spill]] }
0x15a1   : > { %s12073_s26 = sld [smem:[#allocation8_spill]] }
0x15a5   : > { %p27_p2 = scmp.ge.s32.totalorder %s12071_s27, 4  }
0x15a6   : > { %s12075_s25 = smov %s12072_s19 }
0x15a7   :  { %29 = sbr.rel (!%p27_p2) target bundleno = 7 (0x7), region = 187 }
0x15ac   :  { %7779 = vsyncpa [#allocation3], 1 }
0x15ad   :  { %7781 = vsyncpa [#allocation3 + $0x1], 1 }

</bundles_post_ra>
